<compile_context>
chip_gen: v6e
topology: v6e:2x2x1
jax: 0.10.0
libtpu: 0.0.40
codegen_flags: <defaults>
</compile_context>

<pallas_src>
import functools
import math

import jax
import jax.numpy as jnp
from jax import lax
from jax.experimental import pallas as pl
from jax.experimental.pallas import tpu as pltpu


def _round_up(x, m):
    return ((x + m - 1) // m) * m


# ------------------------------ Pallas kernel -------------------------------

def _subsampling6_kernel(xtap_ref, w1_ref, b1_ref, w2_ref, b2_ref,
                         wlin_ref, blin_ref, pe_ref, out_ref, out1_ref,
                         *, TT, F2, odim_p, scale):
    """Fused conv(3x3,s2)+ReLU -> conv(5x5,s3)+ReLU -> Linear -> x*scale + PE.

    One grid step = one batch element x one tile of TT output frames.
      xtap_ref : (1, 1, 9, F2+1, U1p, 9) bf16
                 xtap[3*pt+pf, g, v, 3*ki+kj] = x[6*(t0+v)+2*pt+ki, 6*g+2*pf+kj]
      w1_ref   : (9, odim_p)           bf16  w1[3*ki+kj, c]      = conv1_w[c,0,ki,kj]
      w2_ref   : (25, odim_p, odim_p)  bf16  w2[5*ki+kj, ci, co] = conv2_w[co,ci,ki,kj]
      wlin_ref : (F2, odim_p, odim_p)  bf16  wlin[f2, ci, o]     = lin_w[o, ci*F2+f2]
      pe_ref   : (TT, odim_p) f32
      out_ref  : (1, TT, odim_p) f32
      out1_ref : (9, F2+1, U1p, odim_p) bf16 VMEM scratch, conv1 output stored
                 freq-major (g) / time-on-sublanes (v) / channels-on-lanes.
    """
    U1p = TT + 8
    M1 = (F2 + 1) * U1p

    # ---- conv1: 3x3 stride 2, C_in=1  ->  9 MXU matmuls with K=9 ------------
    b1 = b1_ref[...]
    w1 = w1_ref[...]
    for pt in range(3):
        for pf in range(3):
            q = 3 * pt + pf
            lhs = xtap_ref[0, 0, q, :, :, :].reshape(M1, 9)
            r = jnp.dot(lhs, w1, preferred_element_type=jnp.float32)
            r = jnp.maximum(r + b1, 0.0).astype(jnp.bfloat16)
            out1_ref[q, :, :, :] = r.reshape(F2 + 1, U1p, odim_p)

    # ---- conv2: 5x5 stride 3 -> 25 matmuls over all F2 output freqs at once -
    acc = jnp.zeros((F2 * TT, odim_p), jnp.float32)
    for ki in range(5):
        pt, du = ki % 3, ki // 3
        for kj in range(5):
            pf, dg = kj % 3, kj // 3
            q = 3 * pt + pf
            lhs = out1_ref[q, dg:dg + F2, du:du + TT, :].reshape(F2 * TT, odim_p)
            acc = acc + jnp.dot(lhs, w2_ref[5 * ki + kj, :, :],
                                preferred_element_type=jnp.float32)
    h = jnp.maximum(acc + b2_ref[...], 0.0).astype(jnp.bfloat16)

    # ---- linear over (channel, freq) features, per-freq accumulated dots ----
    y = jnp.zeros((TT, odim_p), jnp.float32)
    for f2 in range(F2):
        y = y + jnp.dot(h[f2 * TT:(f2 + 1) * TT, :], wlin_ref[f2, :, :],
                        preferred_element_type=jnp.float32)

    # ---- positional-encoding epilogue ---------------------------------------
    out_ref[0] = (y + blin_ref[...]) * scale + pe_ref[...]


# ------------------------------ JAX glue ------------------------------------

def _vmem_estimate(TT, F2, odim_p):
    """Rough per-tile VMEM footprint (bytes) used to size TT / vmem limit."""
    U1p = TT + 8
    est = 2 * 9 * (F2 + 1) * U1p * 128 * 2        # xtap block (taps lane-padded), 2 buffers
    est += 9 * (F2 + 1) * U1p * odim_p * 2        # out1 scratch (bf16)
    est += 2 * 25 * odim_p * odim_p * 2           # conv2 weights (bf16, 2 buffers)
    est += 2 * F2 * odim_p * odim_p * 2           # linear weights
    est += 3 * F2 * TT * odim_p * 4               # conv2 accumulator + live temporaries
    est += 6 * TT * odim_p * 4                    # out / pe blocks
    return est + (2 << 20)


def _build_conv1_taps(x, T2p, F2, TT):
    """conv1 tap patches (B, NT, 9, F2+1, U1p, 9) bf16 from x (B, T, idim).

    xtap[b, nt, 3*pt+pf, g, v, 3*ki+kj] = x[b, 6*(nt*TT+v)+2*pt+ki, 6*g+2*pf+kj]
    (zero where the index falls outside the real input).
    """
    B, T, idim = x.shape
    NT = T2p // TT
    U1p = TT + 8
    Tpad = 6 * T2p + 49
    Fpad = 6 * F2 + 7
    tt, ff = min(T, Tpad), min(idim, Fpad)
    xpad = jnp.zeros((B, Tpad, Fpad), jnp.float32)
    xpad = xpad.at[:, :tt, :ff].set(x[:, :tt, :ff].astype(jnp.float32))

    nt = jnp.arange(NT)[:, None, None, None]
    pt = jnp.arange(3)[None, :, None, None]
    v = jnp.arange(U1p)[None, None, :, None]
    ki = jnp.arange(3)[None, None, None, :]
    t_idx = 6 * (nt * TT + v) + 2 * pt + ki                     # (NT, 3, U1p, 3)

    pf = jnp.arange(3)[:, None, None]
    g = jnp.arange(F2 + 1)[None, :, None]
    kj = jnp.arange(3)[None, None, :]
    f_idx = 6 * g + 2 * pf + kj                                 # (3, F2+1, 3)

    t_full = t_idx[:, :, None, None, :, :, None]                # (NT,3,1,1,U1p,3,1)
    f_full = f_idx[None, None, :, :, None, None, :]             # (1,1,3,F2+1,1,1,3)
    xtap = xpad[:, t_full, f_full]                              # (B,NT,3,3,F2+1,U1p,3,3)
    xtap = xtap.reshape(B, NT, 3, 3, F2 + 1, U1p, 9)
    return xtap.reshape(B, NT, 9, F2 + 1, U1p, 9).astype(jnp.bfloat16)


def _pack_params(params, odim_p, F2):
    """Torch-layout weights -> kernel layouts (MXU operands in bf16, lane-padded)."""
    w1t, w2t, wlt = params["conv1_w"], params["conv2_w"], params["lin_w"]
    odim = w1t.shape[0]
    pad_c = odim_p - odim

    def pad_last(a, n_axes):
        pads = [(0, 0)] * (a.ndim - n_axes) + [(0, pad_c)] * n_axes
        return jnp.pad(a, pads)

    w1 = jnp.transpose(w1t[:, 0], (1, 2, 0)).reshape(9, odim)        # [3ki+kj, c]
    w2 = jnp.transpose(w2t, (2, 3, 1, 0)).reshape(25, odim, odim)    # [5ki+kj, ci, co]
    wlin = jnp.transpose(wlt.reshape(odim, odim, F2), (2, 1, 0))     # [f2, ci, o]
    return {
        "w1": pad_last(w1, 1).astype(jnp.bfloat16),
        "b1": pad_last(params["conv1_b"].reshape(1, odim), 1).astype(jnp.float32),
        "w2": pad_last(w2, 2).astype(jnp.bfloat16),
        "b2": pad_last(params["conv2_b"].reshape(1, odim), 1).astype(jnp.float32),
        "wlin": pad_last(wlin, 2).astype(jnp.bfloat16),
        "blin": pad_last(params["lin_b"].reshape(1, odim), 1).astype(jnp.float32),
    }


def _sinusoid_pos_enc(length, d_model, offset=0):
    pos = jnp.arange(offset, offset + length, dtype=jnp.float32)[:, None]
    div = jnp.exp(jnp.arange(0, d_model, 2, dtype=jnp.float32)
                  * -(math.log(10000.0) / d_model))
    pe = jnp.zeros((length, d_model), jnp.float32)
    pe = pe.at[:, 0::2].set(jnp.sin(pos * div))
    pe = pe.at[:, 1::2].set(jnp.cos(pos * div))
    return pe                                   # (length, d_model)


def conv2d_subsampling6(x, x_mask, params, offset=0):
    """x: (B, time, idim), x_mask: (B, 1, time) -> (out, pos_emb, mask)."""
    B, T, idim = x.shape
    odim = params["conv1_w"].shape[0]
    T1, F1 = (T - 1) // 2, (idim - 1) // 2
    T2, F2 = (T1 - 2) // 3, (F1 - 2) // 3
    assert T2 >= 1 and F2 >= 1, "input too short/narrow for 6x subsampling"

    odim_p = _round_up(odim, 128)               # channels on 128 lanes

    # Time tile: multiple of 8 (layout-preserving reshapes), <=128, shrunk if
    # the per-tile VMEM estimate is too large (keeps v7x's 64 MiB VMEM happy).
    TT = min(128, _round_up(T2, 8))
    while TT > 8 and _vmem_estimate(TT, F2, odim_p) > 36 * 2**20:
        TT = max(8, _round_up(TT // 2, 8))
    NT = -(-T2 // TT)
    T2p = NT * TT
    U1p = TT + 8

    packed = _pack_params(params, odim_p, F2)
    xtap = _build_conv1_taps(x, T2p, F2, TT)
    pe = _sinusoid_pos_enc(T2, odim, offset)
    pe_pad = jnp.zeros((T2p, odim_p), jnp.float32).at[:T2, :odim].set(pe)

    kernel = functools.partial(_subsampling6_kernel, TT=TT, F2=F2,
                               odim_p=odim_p, scale=math.sqrt(float(odim)))

    cp = dict(dimension_semantics=("parallel", "parallel"))
    est = _vmem_estimate(TT, F2, odim_p)
    if est > 28 * 2**20:                         # only raise when actually needed
        cp["vmem_limit_bytes"] = int(min(100 * 2**20, est + (8 << 20)))

    out = pl.pallas_call(
        kernel,
        out_shape=jax.ShapeDtypeStruct((B, T2p, odim_p), jnp.float32),
        grid=(B, NT),
        in_specs=[
            pl.BlockSpec((1, 1, 9, F2 + 1, U1p, 9),
                         lambda b, t: (b, t, 0, 0, 0, 0)),           # conv1 taps
            pl.BlockSpec((9, odim_p), lambda b, t: (0, 0)),          # conv1 weight
            pl.BlockSpec((1, odim_p), lambda b, t: (0, 0)),          # conv1 bias
            pl.BlockSpec((25, odim_p, odim_p), lambda b, t: (0, 0, 0)),  # conv2 weight
            pl.BlockSpec((1, odim_p), lambda b, t: (0, 0)),          # conv2 bias
            pl.BlockSpec((F2, odim_p, odim_p), lambda b, t: (0, 0, 0)),  # linear weight
            pl.BlockSpec((1, odim_p), lambda b, t: (0, 0)),          # linear bias
            pl.BlockSpec((TT, odim_p), lambda b, t: (t, 0)),         # pos. encoding
        ],
        out_specs=pl.BlockSpec((1, TT, odim_p), lambda b, t: (b, t, 0)),
        scratch_shapes=[pltpu.VMEM((9, F2 + 1, U1p, odim_p), jnp.bfloat16)],
        compiler_params=pltpu.CompilerParams(**cp),
    )(xtap, packed["w1"], packed["b1"], packed["w2"], packed["b2"],
      packed["wlin"], packed["blin"], pe_pad)

    out = out[:, :T2, :odim]
    mask = x_mask[:, :, :-2:2][:, :, :-4:3]
    return out, pe[None], mask


# --------------------------- pure-JAX reference -----------------------------

def reference_forward(x, x_mask, params, offset=0):
    odim = params["conv1_w"].shape[0]
    prec = lax.Precision.HIGHEST
    h = x[:, None, :, :]
    h = lax.conv_general_dilated(h, params["conv1_w"], (2, 2), "VALID",
                                 dimension_numbers=("NCHW", "OIHW", "NCHW"),
                                 precision=prec)
    h = jnp.maximum(h + params["conv1_b"][None, :, None, None], 0.0)
    h = lax.conv_general_dilated(h, params["conv2_w"], (3, 3), "VALID",
                                 dimension_numbers=("NCHW", "OIHW", "NCHW"),
                                 precision=prec)
    h = jnp.maximum(h + params["conv2_b"][None, :, None, None], 0.0)
    b, c, t, f = h.shape
    h = jnp.transpose(h, (0, 2, 1, 3)).reshape(b, t, c * f)
    y = jnp.dot(h, params["lin_w"].T, precision=prec) + params["lin_b"]
    pe = _sinusoid_pos_enc(t, odim, offset)
    out = y * math.sqrt(float(odim)) + pe[None]
    mask = x_mask[:, :, :-2:2][:, :, :-4:3]
    return out, pe[None], mask


def init_params(key, idim, odim):
    ks = jax.random.split(key, 6)
    F2 = ((idim - 1) // 2 - 2) // 3

    def w(k, shape, fan_in):
        return jax.random.normal(k, shape, jnp.float32) / math.sqrt(float(fan_in))

    return {
        "conv1_w": w(ks[0], (odim, 1, 3, 3), 9),
        "conv1_b": w(ks[1], (odim,), 9),
        "conv2_w": w(ks[2], (odim, odim, 5, 5), odim * 25),
        "conv2_b": w(ks[3], (odim,), odim * 25),
        "lin_w": w(ks[4], (odim, odim * F2), odim * F2),   # torch Linear: (out, in)
        "lin_b": w(ks[5], (odim,), odim * F2),
    }


if __name__ == "__main__":
    B, T, idim, odim = 2, 64, 32, 16
    key = jax.random.PRNGKey(0)
    kx, kp = jax.random.split(key)
    x = jax.random.normal(kx, (B, T, idim), jnp.float32)
    x_mask = jnp.ones((B, 1, T), dtype=bool)
    params = init_params(kp, idim, odim)

    fwd = jax.jit(conv2d_subsampling6, static_argnums=(3,))
    out, pos_emb, mask = fwd(x, x_mask, params, 0)
    out, pos_emb, mask = jax.block_until_ready((out, pos_emb, mask))

    ref_out, ref_pe, ref_mask = reference_forward(x, x_mask, params, 0)

    T2 = ((T - 1) // 2 - 2) // 3
    assert out.shape == (B, T2, odim), out.shape
    assert pos_emb.shape == (1, T2, odim), pos_emb.shape
    assert mask.shape == (B, 1, T2), mask.shape
    assert bool(jnp.all(jnp.isfinite(out)))
    assert bool(jnp.array_equal(mask, ref_mask))

    rel = float(jnp.max(jnp.abs(out - ref_out))) / (float(jnp.max(jnp.abs(ref_out))) + 1e-6)
    assert rel < 0.03, f"normalized max error vs f32 reference = {rel}"
    print("KERNEL_OK")
</pallas_src>

<mosaic_0001>
module attributes {stable_mosaic.version = 11 : i64} {
  func.func @_subsampling6_kernel(%arg0: i32, %arg1: i32, %arg2: memref<1x1x9x5x24x9xbf16, #tpu.memory_space<vmem>>, %arg3: memref<9x128xbf16, #tpu.memory_space<vmem>>, %arg4: memref<1x128xf32, #tpu.memory_space<vmem>>, %arg5: memref<25x128x128xbf16, #tpu.memory_space<vmem>>, %arg6: memref<1x128xf32, #tpu.memory_space<vmem>>, %arg7: memref<4x128x128xbf16, #tpu.memory_space<vmem>>, %arg8: memref<1x128xf32, #tpu.memory_space<vmem>>, %arg9: memref<16x128xf32, #tpu.memory_space<vmem>>, %arg10: memref<1x16x128xf32, #tpu.memory_space<vmem>>, %arg11: memref<9x5x24x128xbf16, #tpu.memory_space<vmem>>) attributes {dimension_semantics = [#tpu.dimension_semantics<parallel>, #tpu.dimension_semantics<parallel>], iteration_bounds = array<i64: 2, 1>, scalar_prefetch = 0 : i64, scratch_operands = 1 : i64, tpu.core_type = #tpu.core_type<tc>, window_params = [{transform_indices = @transform_0, window_bounds = array<i64: 1, 1, 9, 5, 24, 9>}, {pipeline_mode = #tpu.pipeline_mode<synchronous>, transform_indices = @transform_1, window_bounds = array<i64: 9, 128>}, {pipeline_mode = #tpu.pipeline_mode<synchronous>, transform_indices = @transform_2, window_bounds = array<i64: 1, 128>}, {pipeline_mode = #tpu.pipeline_mode<synchronous>, transform_indices = @transform_3, window_bounds = array<i64: 25, 128, 128>}, {pipeline_mode = #tpu.pipeline_mode<synchronous>, transform_indices = @transform_4, window_bounds = array<i64: 1, 128>}, {pipeline_mode = #tpu.pipeline_mode<synchronous>, transform_indices = @transform_5, window_bounds = array<i64: 4, 128, 128>}, {pipeline_mode = #tpu.pipeline_mode<synchronous>, transform_indices = @transform_6, window_bounds = array<i64: 1, 128>}, {transform_indices = @transform_7, window_bounds = array<i64: 16, 128>}, {transform_indices = @transform_8, window_bounds = array<i64: 1, 16, 128>}]} {
    %c0 = arith.constant 0 : index
    %c0_0 = arith.constant 0 : index
    %0 = vector.load %arg4[%c0, %c0_0] : memref<1x128xf32, #tpu.memory_space<vmem>>, vector<1x128xf32>
    %c0_1 = arith.constant 0 : index
    %c0_2 = arith.constant 0 : index
    %1 = vector.load %arg3[%c0_1, %c0_2] : memref<9x128xbf16, #tpu.memory_space<vmem>>, vector<9x128xbf16>
    %c0_3 = arith.constant 0 : index
    %c0_4 = arith.constant 0 : index
    %c0_5 = arith.constant 0 : index
    %c0_6 = arith.constant 0 : index
    %c0_7 = arith.constant 0 : index
    %c0_8 = arith.constant 0 : index
    %2 = vector.load %arg2[%c0_3, %c0_4, %c0_5, %c0_6, %c0_7, %c0_8] : memref<1x1x9x5x24x9xbf16, #tpu.memory_space<vmem>>, vector<1x1x1x5x24x9xbf16>
    %3 = vector.shape_cast %2 : vector<1x1x1x5x24x9xbf16> to vector<5x24x9xbf16>
    %4 = vector.shape_cast %3 : vector<5x24x9xbf16> to vector<120x9xbf16>
    %cst = arith.constant dense<0.000000e+00> : vector<120x128xf32>
    %5 = tpu.matmul %4, %1, %cst {dimension_numbers = #tpu.dot_dimension_numbers<[1], [0], [0], [1], [0, 0, 1, 1], [], []>} : vector<120x9xbf16>, vector<9x128xbf16>, vector<120x128xf32> -> vector<120x128xf32>
    %6 = vector.broadcast %0 : vector<1x128xf32> to vector<120x128xf32>
    %7 = arith.addf %5, %6 : vector<120x128xf32>
    %cst_9 = arith.constant 0.000000e+00 : f32
    %8 = vector.broadcast %cst_9 : f32 to vector<120x128xf32>
    %9 = arith.maximumf %7, %8 : vector<120x128xf32>
    %10 = arith.truncf %9 : vector<120x128xf32> to vector<120x128xbf16>
    %11 = vector.shape_cast %10 : vector<120x128xbf16> to vector<5x24x128xbf16>
    %c0_10 = arith.constant 0 : index
    %c0_11 = arith.constant 0 : index
    %c0_12 = arith.constant 0 : index
    %c0_13 = arith.constant 0 : index
    %12 = vector.load %arg11[%c0_10, %c0_11, %c0_12, %c0_13] : memref<9x5x24x128xbf16, #tpu.memory_space<vmem>>, vector<1x5x24x128xbf16>
    %13 = vector.shape_cast %12 : vector<1x5x24x128xbf16> to vector<5x24x128xbf16>
    %14 = vector.shape_cast %11 : vector<5x24x128xbf16> to vector<1x5x24x128xbf16>
    tpu.vector_store %arg11[%c0_10, %c0_11, %c0_12, %c0_13], %14 {strides = array<i32>} : memref<9x5x24x128xbf16, #tpu.memory_space<vmem>>, vector<1x5x24x128xbf16>,
    %c0_14 = arith.constant 0 : index
    %c0_15 = arith.constant 0 : index
    %c1 = arith.constant 1 : index
    %c0_16 = arith.constant 0 : index
    %c0_17 = arith.constant 0 : index
    %c0_18 = arith.constant 0 : index
    %15 = vector.load %arg2[%c0_14, %c0_15, %c1, %c0_16, %c0_17, %c0_18] : memref<1x1x9x5x24x9xbf16, #tpu.memory_space<vmem>>, vector<1x1x1x5x24x9xbf16>
    %16 = vector.shape_cast %15 : vector<1x1x1x5x24x9xbf16> to vector<5x24x9xbf16>
    %17 = vector.shape_cast %16 : vector<5x24x9xbf16> to vector<120x9xbf16>
    %cst_19 = arith.constant dense<0.000000e+00> : vector<120x128xf32>
    %18 = tpu.matmul %17, %1, %cst_19 {dimension_numbers = #tpu.dot_dimension_numbers<[1], [0], [0], [1], [0, 0, 1, 1], [], []>} : vector<120x9xbf16>, vector<9x128xbf16>, vector<120x128xf32> -> vector<120x128xf32>
    %19 = vector.broadcast %0 : vector<1x128xf32> to vector<120x128xf32>
    %20 = arith.addf %18, %19 : vector<120x128xf32>
    %cst_20 = arith.constant 0.000000e+00 : f32
    %21 = vector.broadcast %cst_20 : f32 to vector<120x128xf32>
    %22 = arith.maximumf %20, %21 : vector<120x128xf32>
    %23 = arith.truncf %22 : vector<120x128xf32> to vector<120x128xbf16>
    %24 = vector.shape_cast %23 : vector<120x128xbf16> to vector<5x24x128xbf16>
    %c1_21 = arith.constant 1 : index
    %c0_22 = arith.constant 0 : index
    %c0_23 = arith.constant 0 : index
    %c0_24 = arith.constant 0 : index
    %25 = vector.load %arg11[%c1_21, %c0_22, %c0_23, %c0_24] : memref<9x5x24x128xbf16, #tpu.memory_space<vmem>>, vector<1x5x24x128xbf16>
    %26 = vector.shape_cast %25 : vector<1x5x24x128xbf16> to vector<5x24x128xbf16>
    %27 = vector.shape_cast %24 : vector<5x24x128xbf16> to vector<1x5x24x128xbf16>
    tpu.vector_store %arg11[%c1_21, %c0_22, %c0_23, %c0_24], %27 {strides = array<i32>} : memref<9x5x24x128xbf16, #tpu.memory_space<vmem>>, vector<1x5x24x128xbf16>,
    %c0_25 = arith.constant 0 : index
    %c0_26 = arith.constant 0 : index
    %c2 = arith.constant 2 : index
    %c0_27 = arith.constant 0 : index
    %c0_28 = arith.constant 0 : index
    %c0_29 = arith.constant 0 : index
    %28 = vector.load %arg2[%c0_25, %c0_26, %c2, %c0_27, %c0_28, %c0_29] : memref<1x1x9x5x24x9xbf16, #tpu.memory_space<vmem>>, vector<1x1x1x5x24x9xbf16>
    %29 = vector.shape_cast %28 : vector<1x1x1x5x24x9xbf16> to vector<5x24x9xbf16>
    %30 = vector.shape_cast %29 : vector<5x24x9xbf16> to vector<120x9xbf16>
    %cst_30 = arith.constant dense<0.000000e+00> : vector<120x128xf32>
    %31 = tpu.matmul %30, %1, %cst_30 {dimension_numbers = #tpu.dot_dimension_numbers<[1], [0], [0], [1], [0, 0, 1, 1], [], []>} : vector<120x9xbf16>, vector<9x128xbf16>, vector<120x128xf32> -> vector<120x128xf32>
    %32 = vector.broadcast %0 : vector<1x128xf32> to vector<120x128xf32>
    %33 = arith.addf %31, %32 : vector<120x128xf32>
    %cst_31 = arith.constant 0.000000e+00 : f32
    %34 = vector.broadcast %cst_31 : f32 to vector<120x128xf32>
    %35 = arith.maximumf %33, %34 : vector<120x128xf32>
    %36 = arith.truncf %35 : vector<120x128xf32> to vector<120x128xbf16>
    %37 = vector.shape_cast %36 : vector<120x128xbf16> to vector<5x24x128xbf16>
    %c2_32 = arith.constant 2 : index
    %c0_33 = arith.constant 0 : index
    %c0_34 = arith.constant 0 : index
    %c0_35 = arith.constant 0 : index
    %38 = vector.load %arg11[%c2_32, %c0_33, %c0_34, %c0_35] : memref<9x5x24x128xbf16, #tpu.memory_space<vmem>>, vector<1x5x24x128xbf16>
    %39 = vector.shape_cast %38 : vector<1x5x24x128xbf16> to vector<5x24x128xbf16>
    %40 = vector.shape_cast %37 : vector<5x24x128xbf16> to vector<1x5x24x128xbf16>
    tpu.vector_store %arg11[%c2_32, %c0_33, %c0_34, %c0_35], %40 {strides = array<i32>} : memref<9x5x24x128xbf16, #tpu.memory_space<vmem>>, vector<1x5x24x128xbf16>,
    %c0_36 = arith.constant 0 : index
    %c0_37 = arith.constant 0 : index
    %c3 = arith.constant 3 : index
    %c0_38 = arith.constant 0 : index
    %c0_39 = arith.constant 0 : index
    %c0_40 = arith.constant 0 : index
    %41 = vector.load %arg2[%c0_36, %c0_37, %c3, %c0_38, %c0_39, %c0_40] : memref<1x1x9x5x24x9xbf16, #tpu.memory_space<vmem>>, vector<1x1x1x5x24x9xbf16>
    %42 = vector.shape_cast %41 : vector<1x1x1x5x24x9xbf16> to vector<5x24x9xbf16>
    %43 = vector.shape_cast %42 : vector<5x24x9xbf16> to vector<120x9xbf16>
    %cst_41 = arith.constant dense<0.000000e+00> : vector<120x128xf32>
    %44 = tpu.matmul %43, %1, %cst_41 {dimension_numbers = #tpu.dot_dimension_numbers<[1], [0], [0], [1], [0, 0, 1, 1], [], []>} : vector<120x9xbf16>, vector<9x128xbf16>, vector<120x128xf32> -> vector<120x128xf32>
    %45 = vector.broadcast %0 : vector<1x128xf32> to vector<120x128xf32>
    %46 = arith.addf %44, %45 : vector<120x128xf32>
    %cst_42 = arith.constant 0.000000e+00 : f32
    %47 = vector.broadcast %cst_42 : f32 to vector<120x128xf32>
    %48 = arith.maximumf %46, %47 : vector<120x128xf32>
    %49 = arith.truncf %48 : vector<120x128xf32> to vector<120x128xbf16>
    %50 = vector.shape_cast %49 : vector<120x128xbf16> to vector<5x24x128xbf16>
    %c3_43 = arith.constant 3 : index
    %c0_44 = arith.constant 0 : index
    %c0_45 = arith.constant 0 : index
    %c0_46 = arith.constant 0 : index
    %51 = vector.load %arg11[%c3_43, %c0_44, %c0_45, %c0_46] : memref<9x5x24x128xbf16, #tpu.memory_space<vmem>>, vector<1x5x24x128xbf16>
    %52 = vector.shape_cast %51 : vector<1x5x24x128xbf16> to vector<5x24x128xbf16>
    %53 = vector.shape_cast %50 : vector<5x24x128xbf16> to vector<1x5x24x128xbf16>
    tpu.vector_store %arg11[%c3_43, %c0_44, %c0_45, %c0_46], %53 {strides = array<i32>} : memref<9x5x24x128xbf16, #tpu.memory_space<vmem>>, vector<1x5x24x128xbf16>,
    %c0_47 = arith.constant 0 : index
    %c0_48 = arith.constant 0 : index
    %c4 = arith.constant 4 : index
    %c0_49 = arith.constant 0 : index
    %c0_50 = arith.constant 0 : index
    %c0_51 = arith.constant 0 : index
    %54 = vector.load %arg2[%c0_47, %c0_48, %c4, %c0_49, %c0_50, %c0_51] : memref<1x1x9x5x24x9xbf16, #tpu.memory_space<vmem>>, vector<1x1x1x5x24x9xbf16>
    %55 = vector.shape_cast %54 : vector<1x1x1x5x24x9xbf16> to vector<5x24x9xbf16>
    %56 = vector.shape_cast %55 : vector<5x24x9xbf16> to vector<120x9xbf16>
    %cst_52 = arith.constant dense<0.000000e+00> : vector<120x128xf32>
    %57 = tpu.matmul %56, %1, %cst_52 {dimension_numbers = #tpu.dot_dimension_numbers<[1], [0], [0], [1], [0, 0, 1, 1], [], []>} : vector<120x9xbf16>, vector<9x128xbf16>, vector<120x128xf32> -> vector<120x128xf32>
    %58 = vector.broadcast %0 : vector<1x128xf32> to vector<120x128xf32>
    %59 = arith.addf %57, %58 : vector<120x128xf32>
    %cst_53 = arith.constant 0.000000e+00 : f32
    %60 = vector.broadcast %cst_53 : f32 to vector<120x128xf32>
    %61 = arith.maximumf %59, %60 : vector<120x128xf32>
    %62 = arith.truncf %61 : vector<120x128xf32> to vector<120x128xbf16>
    %63 = vector.shape_cast %62 : vector<120x128xbf16> to vector<5x24x128xbf16>
    %c4_54 = arith.constant 4 : index
    %c0_55 = arith.constant 0 : index
    %c0_56 = arith.constant 0 : index
    %c0_57 = arith.constant 0 : index
    %64 = vector.load %arg11[%c4_54, %c0_55, %c0_56, %c0_57] : memref<9x5x24x128xbf16, #tpu.memory_space<vmem>>, vector<1x5x24x128xbf16>
    %65 = vector.shape_cast %64 : vector<1x5x24x128xbf16> to vector<5x24x128xbf16>
    %66 = vector.shape_cast %63 : vector<5x24x128xbf16> to vector<1x5x24x128xbf16>
    tpu.vector_store %arg11[%c4_54, %c0_55, %c0_56, %c0_57], %66 {strides = array<i32>} : memref<9x5x24x128xbf16, #tpu.memory_space<vmem>>, vector<1x5x24x128xbf16>,
    %c0_58 = arith.constant 0 : index
    %c0_59 = arith.constant 0 : index
    %c5 = arith.constant 5 : index
    %c0_60 = arith.constant 0 : index
    %c0_61 = arith.constant 0 : index
    %c0_62 = arith.constant 0 : index
    %67 = vector.load %arg2[%c0_58, %c0_59, %c5, %c0_60, %c0_61, %c0_62] : memref<1x1x9x5x24x9xbf16, #tpu.memory_space<vmem>>, vector<1x1x1x5x24x9xbf16>
    %68 = vector.shape_cast %67 : vector<1x1x1x5x24x9xbf16> to vector<5x24x9xbf16>
    %69 = vector.shape_cast %68 : vector<5x24x9xbf16> to vector<120x9xbf16>
    %cst_63 = arith.constant dense<0.000000e+00> : vector<120x128xf32>
    %70 = tpu.matmul %69, %1, %cst_63 {dimension_numbers = #tpu.dot_dimension_numbers<[1], [0], [0], [1], [0, 0, 1, 1], [], []>} : vector<120x9xbf16>, vector<9x128xbf16>, vector<120x128xf32> -> vector<120x128xf32>
    %71 = vector.broadcast %0 : vector<1x128xf32> to vector<120x128xf32>
    %72 = arith.addf %70, %71 : vector<120x128xf32>
    %cst_64 = arith.constant 0.000000e+00 : f32
    %73 = vector.broadcast %cst_64 : f32 to vector<120x128xf32>
    %74 = arith.maximumf %72, %73 : vector<120x128xf32>
    %75 = arith.truncf %74 : vector<120x128xf32> to vector<120x128xbf16>
    %76 = vector.shape_cast %75 : vector<120x128xbf16> to vector<5x24x128xbf16>
    %c5_65 = arith.constant 5 : index
    %c0_66 = arith.constant 0 : index
    %c0_67 = arith.constant 0 : index
    %c0_68 = arith.constant 0 : index
    %77 = vector.load %arg11[%c5_65, %c0_66, %c0_67, %c0_68] : memref<9x5x24x128xbf16, #tpu.memory_space<vmem>>, vector<1x5x24x128xbf16>
    %78 = vector.shape_cast %77 : vector<1x5x24x128xbf16> to vector<5x24x128xbf16>
    %79 = vector.shape_cast %76 : vector<5x24x128xbf16> to vector<1x5x24x128xbf16>
    tpu.vector_store %arg11[%c5_65, %c0_66, %c0_67, %c0_68], %79 {strides = array<i32>} : memref<9x5x24x128xbf16, #tpu.memory_space<vmem>>, vector<1x5x24x128xbf16>,
    %c0_69 = arith.constant 0 : index
    %c0_70 = arith.constant 0 : index
    %c6 = arith.constant 6 : index
    %c0_71 = arith.constant 0 : index
    %c0_72 = arith.constant 0 : index
    %c0_73 = arith.constant 0 : index
    %80 = vector.load %arg2[%c0_69, %c0_70, %c6, %c0_71, %c0_72, %c0_73] : memref<1x1x9x5x24x9xbf16, #tpu.memory_space<vmem>>, vector<1x1x1x5x24x9xbf16>
    %81 = vector.shape_cast %80 : vector<1x1x1x5x24x9xbf16> to vector<5x24x9xbf16>
    %82 = vector.shape_cast %81 : vector<5x24x9xbf16> to vector<120x9xbf16>
    %cst_74 = arith.constant dense<0.000000e+00> : vector<120x128xf32>
    %83 = tpu.matmul %82, %1, %cst_74 {dimension_numbers = #tpu.dot_dimension_numbers<[1], [0], [0], [1], [0, 0, 1, 1], [], []>} : vector<120x9xbf16>, vector<9x128xbf16>, vector<120x128xf32> -> vector<120x128xf32>
    %84 = vector.broadcast %0 : vector<1x128xf32> to vector<120x128xf32>
    %85 = arith.addf %83, %84 : vector<120x128xf32>
    %cst_75 = arith.constant 0.000000e+00 : f32
    %86 = vector.broadcast %cst_75 : f32 to vector<120x128xf32>
    %87 = arith.maximumf %85, %86 : vector<120x128xf32>
    %88 = arith.truncf %87 : vector<120x128xf32> to vector<120x128xbf16>
    %89 = vector.shape_cast %88 : vector<120x128xbf16> to vector<5x24x128xbf16>
    %c6_76 = arith.constant 6 : index
    %c0_77 = arith.constant 0 : index
    %c0_78 = arith.constant 0 : index
    %c0_79 = arith.constant 0 : index
    %90 = vector.load %arg11[%c6_76, %c0_77, %c0_78, %c0_79] : memref<9x5x24x128xbf16, #tpu.memory_space<vmem>>, vector<1x5x24x128xbf16>
    %91 = vector.shape_cast %90 : vector<1x5x24x128xbf16> to vector<5x24x128xbf16>
    %92 = vector.shape_cast %89 : vector<5x24x128xbf16> to vector<1x5x24x128xbf16>
    tpu.vector_store %arg11[%c6_76, %c0_77, %c0_78, %c0_79], %92 {strides = array<i32>} : memref<9x5x24x128xbf16, #tpu.memory_space<vmem>>, vector<1x5x24x128xbf16>,
    %c0_80 = arith.constant 0 : index
    %c0_81 = arith.constant 0 : index
    %c7 = arith.constant 7 : index
    %c0_82 = arith.constant 0 : index
    %c0_83 = arith.constant 0 : index
    %c0_84 = arith.constant 0 : index
    %93 = vector.load %arg2[%c0_80, %c0_81, %c7, %c0_82, %c0_83, %c0_84] : memref<1x1x9x5x24x9xbf16, #tpu.memory_space<vmem>>, vector<1x1x1x5x24x9xbf16>
    %94 = vector.shape_cast %93 : vector<1x1x1x5x24x9xbf16> to vector<5x24x9xbf16>
    %95 = vector.shape_cast %94 : vector<5x24x9xbf16> to vector<120x9xbf16>
    %cst_85 = arith.constant dense<0.000000e+00> : vector<120x128xf32>
    %96 = tpu.matmul %95, %1, %cst_85 {dimension_numbers = #tpu.dot_dimension_numbers<[1], [0], [0], [1], [0, 0, 1, 1], [], []>} : vector<120x9xbf16>, vector<9x128xbf16>, vector<120x128xf32> -> vector<120x128xf32>
    %97 = vector.broadcast %0 : vector<1x128xf32> to vector<120x128xf32>
    %98 = arith.addf %96, %97 : vector<120x128xf32>
    %cst_86 = arith.constant 0.000000e+00 : f32
    %99 = vector.broadcast %cst_86 : f32 to vector<120x128xf32>
    %100 = arith.maximumf %98, %99 : vector<120x128xf32>
    %101 = arith.truncf %100 : vector<120x128xf32> to vector<120x128xbf16>
    %102 = vector.shape_cast %101 : vector<120x128xbf16> to vector<5x24x128xbf16>
    %c7_87 = arith.constant 7 : index
    %c0_88 = arith.constant 0 : index
    %c0_89 = arith.constant 0 : index
    %c0_90 = arith.constant 0 : index
    %103 = vector.load %arg11[%c7_87, %c0_88, %c0_89, %c0_90] : memref<9x5x24x128xbf16, #tpu.memory_space<vmem>>, vector<1x5x24x128xbf16>
    %104 = vector.shape_cast %103 : vector<1x5x24x128xbf16> to vector<5x24x128xbf16>
    %105 = vector.shape_cast %102 : vector<5x24x128xbf16> to vector<1x5x24x128xbf16>
    tpu.vector_store %arg11[%c7_87, %c0_88, %c0_89, %c0_90], %105 {strides = array<i32>} : memref<9x5x24x128xbf16, #tpu.memory_space<vmem>>, vector<1x5x24x128xbf16>,
    %c0_91 = arith.constant 0 : index
    %c0_92 = arith.constant 0 : index
    %c8 = arith.constant 8 : index
    %c0_93 = arith.constant 0 : index
    %c0_94 = arith.constant 0 : index
    %c0_95 = arith.constant 0 : index
    %106 = vector.load %arg2[%c0_91, %c0_92, %c8, %c0_93, %c0_94, %c0_95] : memref<1x1x9x5x24x9xbf16, #tpu.memory_space<vmem>>, vector<1x1x1x5x24x9xbf16>
    %107 = vector.shape_cast %106 : vector<1x1x1x5x24x9xbf16> to vector<5x24x9xbf16>
    %108 = vector.shape_cast %107 : vector<5x24x9xbf16> to vector<120x9xbf16>
    %cst_96 = arith.constant dense<0.000000e+00> : vector<120x128xf32>
    %109 = tpu.matmul %108, %1, %cst_96 {dimension_numbers = #tpu.dot_dimension_numbers<[1], [0], [0], [1], [0, 0, 1, 1], [], []>} : vector<120x9xbf16>, vector<9x128xbf16>, vector<120x128xf32> -> vector<120x128xf32>
    %110 = vector.broadcast %0 : vector<1x128xf32> to vector<120x128xf32>
    %111 = arith.addf %109, %110 : vector<120x128xf32>
    %cst_97 = arith.constant 0.000000e+00 : f32
    %112 = vector.broadcast %cst_97 : f32 to vector<120x128xf32>
    %113 = arith.maximumf %111, %112 : vector<120x128xf32>
    %114 = arith.truncf %113 : vector<120x128xf32> to vector<120x128xbf16>
    %115 = vector.shape_cast %114 : vector<120x128xbf16> to vector<5x24x128xbf16>
    %c8_98 = arith.constant 8 : index
    %c0_99 = arith.constant 0 : index
    %c0_100 = arith.constant 0 : index
    %c0_101 = arith.constant 0 : index
    %116 = vector.load %arg11[%c8_98, %c0_99, %c0_100, %c0_101] : memref<9x5x24x128xbf16, #tpu.memory_space<vmem>>, vector<1x5x24x128xbf16>
    %117 = vector.shape_cast %116 : vector<1x5x24x128xbf16> to vector<5x24x128xbf16>
    %118 = vector.shape_cast %115 : vector<5x24x128xbf16> to vector<1x5x24x128xbf16>
    tpu.vector_store %arg11[%c8_98, %c0_99, %c0_100, %c0_101], %118 {strides = array<i32>} : memref<9x5x24x128xbf16, #tpu.memory_space<vmem>>, vector<1x5x24x128xbf16>,
    %cst_102 = arith.constant 0.000000e+00 : f32
    %119 = vector.broadcast %cst_102 : f32 to vector<64x128xf32>
    %c0_103 = arith.constant 0 : index
    %c0_104 = arith.constant 0 : index
    %c0_105 = arith.constant 0 : index
    %c0_106 = arith.constant 0 : index
    %120 = vector.load %arg11[%c0_103, %c0_104, %c0_105, %c0_106] : memref<9x5x24x128xbf16, #tpu.memory_space<vmem>>, vector<1x4x16x128xbf16>
    %121 = vector.shape_cast %120 : vector<1x4x16x128xbf16> to vector<4x16x128xbf16>
    %122 = vector.shape_cast %121 : vector<4x16x128xbf16> to vector<64x128xbf16>
    %c0_107 = arith.constant 0 : index
    %c0_108 = arith.constant 0 : index
    %c0_109 = arith.constant 0 : index
    %123 = vector.load %arg5[%c0_107, %c0_108, %c0_109] : memref<25x128x128xbf16, #tpu.memory_space<vmem>>, vector<1x128x128xbf16>
    %124 = vector.shape_cast %123 : vector<1x128x128xbf16> to vector<128x128xbf16>
    %cst_110 = arith.constant dense<0.000000e+00> : vector<64x128xf32>
    %125 = tpu.matmul %122, %124, %cst_110 {dimension_numbers = #tpu.dot_dimension_numbers<[1], [0], [0], [1], [0, 0, 1, 1], [], []>} : vector<64x128xbf16>, vector<128x128xbf16>, vector<64x128xf32> -> vector<64x128xf32>
    %126 = arith.addf %119, %125 : vector<64x128xf32>
    %c1_111 = arith.constant 1 : index
    %c0_112 = arith.constant 0 : index
    %c0_113 = arith.constant 0 : index
    %c0_114 = arith.constant 0 : index
    %127 = vector.load %arg11[%c1_111, %c0_112, %c0_113, %c0_114] : memref<9x5x24x128xbf16, #tpu.memory_space<vmem>>, vector<1x4x16x128xbf16>
    %128 = vector.shape_cast %127 : vector<1x4x16x128xbf16> to vector<4x16x128xbf16>
    %129 = vector.shape_cast %128 : vector<4x16x128xbf16> to vector<64x128xbf16>
    %c1_115 = arith.constant 1 : index
    %c0_116 = arith.constant 0 : index
    %c0_117 = arith.constant 0 : index
    %130 = vector.load %arg5[%c1_115, %c0_116, %c0_117] : memref<25x128x128xbf16, #tpu.memory_space<vmem>>, vector<1x128x128xbf16>
    %131 = vector.shape_cast %130 : vector<1x128x128xbf16> to vector<128x128xbf16>
    %cst_118 = arith.constant dense<0.000000e+00> : vector<64x128xf32>
    %132 = tpu.matmul %129, %131, %cst_118 {dimension_numbers = #tpu.dot_dimension_numbers<[1], [0], [0], [1], [0, 0, 1, 1], [], []>} : vector<64x128xbf16>, vector<128x128xbf16>, vector<64x128xf32> -> vector<64x128xf32>
    %133 = arith.addf %126, %132 : vector<64x128xf32>
    %c2_119 = arith.constant 2 : index
    %c0_120 = arith.constant 0 : index
    %c0_121 = arith.constant 0 : index
    %c0_122 = arith.constant 0 : index
    %134 = vector.load %arg11[%c2_119, %c0_120, %c0_121, %c0_122] : memref<9x5x24x128xbf16, #tpu.memory_space<vmem>>, vector<1x4x16x128xbf16>
    %135 = vector.shape_cast %134 : vector<1x4x16x128xbf16> to vector<4x16x128xbf16>
    %136 = vector.shape_cast %135 : vector<4x16x128xbf16> to vector<64x128xbf16>
    %c2_123 = arith.constant 2 : index
    %c0_124 = arith.constant 0 : index
    %c0_125 = arith.constant 0 : index
    %137 = vector.load %arg5[%c2_123, %c0_124, %c0_125] : memref<25x128x128xbf16, #tpu.memory_space<vmem>>, vector<1x128x128xbf16>
    %138 = vector.shape_cast %137 : vector<1x128x128xbf16> to vector<128x128xbf16>
    %cst_126 = arith.constant dense<0.000000e+00> : vector<64x128xf32>
    %139 = tpu.matmul %136, %138, %cst_126 {dimension_numbers = #tpu.dot_dimension_numbers<[1], [0], [0], [1], [0, 0, 1, 1], [], []>} : vector<64x128xbf16>, vector<128x128xbf16>, vector<64x128xf32> -> vector<64x128xf32>
    %140 = arith.addf %133, %139 : vector<64x128xf32>
    %c0_127 = arith.constant 0 : index
    %c1_128 = arith.constant 1 : index
    %c0_129 = arith.constant 0 : index
    %c0_130 = arith.constant 0 : index
    %141 = vector.load %arg11[%c0_127, %c1_128, %c0_129, %c0_130] : memref<9x5x24x128xbf16, #tpu.memory_space<vmem>>, vector<1x4x16x128xbf16>
    %142 = vector.shape_cast %141 : vector<1x4x16x128xbf16> to vector<4x16x128xbf16>
    %143 = vector.shape_cast %142 : vector<4x16x128xbf16> to vector<64x128xbf16>
    %c3_131 = arith.constant 3 : index
    %c0_132 = arith.constant 0 : index
    %c0_133 = arith.constant 0 : index
    %144 = vector.load %arg5[%c3_131, %c0_132, %c0_133] : memref<25x128x128xbf16, #tpu.memory_space<vmem>>, vector<1x128x128xbf16>
    %145 = vector.shape_cast %144 : vector<1x128x128xbf16> to vector<128x128xbf16>
    %cst_134 = arith.constant dense<0.000000e+00> : vector<64x128xf32>
    %146 = tpu.matmul %143, %145, %cst_134 {dimension_numbers = #tpu.dot_dimension_numbers<[1], [0], [0], [1], [0, 0, 1, 1], [], []>} : vector<64x128xbf16>, vector<128x128xbf16>, vector<64x128xf32> -> vector<64x128xf32>
    %147 = arith.addf %140, %146 : vector<64x128xf32>
    %c1_135 = arith.constant 1 : index
    %c1_136 = arith.constant 1 : index
    %c0_137 = arith.constant 0 : index
    %c0_138 = arith.constant 0 : index
    %148 = vector.load %arg11[%c1_135, %c1_136, %c0_137, %c0_138] : memref<9x5x24x128xbf16, #tpu.memory_space<vmem>>, vector<1x4x16x128xbf16>
    %149 = vector.shape_cast %148 : vector<1x4x16x128xbf16> to vector<4x16x128xbf16>
    %150 = vector.shape_cast %149 : vector<4x16x128xbf16> to vector<64x128xbf16>
    %c4_139 = arith.constant 4 : index
    %c0_140 = arith.constant 0 : index
    %c0_141 = arith.constant 0 : index
    %151 = vector.load %arg5[%c4_139, %c0_140, %c0_141] : memref<25x128x128xbf16, #tpu.memory_space<vmem>>, vector<1x128x128xbf16>
    %152 = vector.shape_cast %151 : vector<1x128x128xbf16> to vector<128x128xbf16>
    %cst_142 = arith.constant dense<0.000000e+00> : vector<64x128xf32>
    %153 = tpu.matmul %150, %152, %cst_142 {dimension_numbers = #tpu.dot_dimension_numbers<[1], [0], [0], [1], [0, 0, 1, 1], [], []>} : vector<64x128xbf16>, vector<128x128xbf16>, vector<64x128xf32> -> vector<64x128xf32>
    %154 = arith.addf %147, %153 : vector<64x128xf32>
    %c3_143 = arith.constant 3 : index
    %c0_144 = arith.constant 0 : index
    %c0_145 = arith.constant 0 : index
    %c0_146 = arith.constant 0 : index
    %155 = vector.load %arg11[%c3_143, %c0_144, %c0_145, %c0_146] : memref<9x5x24x128xbf16, #tpu.memory_space<vmem>>, vector<1x4x16x128xbf16>
    %156 = vector.shape_cast %155 : vector<1x4x16x128xbf16> to vector<4x16x128xbf16>
    %157 = vector.shape_cast %156 : vector<4x16x128xbf16> to vector<64x128xbf16>
    %c5_147 = arith.constant 5 : index
    %c0_148 = arith.constant 0 : index
    %c0_149 = arith.constant 0 : index
    %158 = vector.load %arg5[%c5_147, %c0_148, %c0_149] : memref<25x128x128xbf16, #tpu.memory_space<vmem>>, vector<1x128x128xbf16>
    %159 = vector.shape_cast %158 : vector<1x128x128xbf16> to vector<128x128xbf16>
    %cst_150 = arith.constant dense<0.000000e+00> : vector<64x128xf32>
    %160 = tpu.matmul %157, %159, %cst_150 {dimension_numbers = #tpu.dot_dimension_numbers<[1], [0], [0], [1], [0, 0, 1, 1], [], []>} : vector<64x128xbf16>, vector<128x128xbf16>, vector<64x128xf32> -> vector<64x128xf32>
    %161 = arith.addf %154, %160 : vector<64x128xf32>
    %c4_151 = arith.constant 4 : index
    %c0_152 = arith.constant 0 : index
    %c0_153 = arith.constant 0 : index
    %c0_154 = arith.constant 0 : index
    %162 = vector.load %arg11[%c4_151, %c0_152, %c0_153, %c0_154] : memref<9x5x24x128xbf16, #tpu.memory_space<vmem>>, vector<1x4x16x128xbf16>
    %163 = vector.shape_cast %162 : vector<1x4x16x128xbf16> to vector<4x16x128xbf16>
    %164 = vector.shape_cast %163 : vector<4x16x128xbf16> to vector<64x128xbf16>
    %c6_155 = arith.constant 6 : index
    %c0_156 = arith.constant 0 : index
    %c0_157 = arith.constant 0 : index
    %165 = vector.load %arg5[%c6_155, %c0_156, %c0_157] : memref<25x128x128xbf16, #tpu.memory_space<vmem>>, vector<1x128x128xbf16>
    %166 = vector.shape_cast %165 : vector<1x128x128xbf16> to vector<128x128xbf16>
    %cst_158 = arith.constant dense<0.000000e+00> : vector<64x128xf32>
    %167 = tpu.matmul %164, %166, %cst_158 {dimension_numbers = #tpu.dot_dimension_numbers<[1], [0], [0], [1], [0, 0, 1, 1], [], []>} : vector<64x128xbf16>, vector<128x128xbf16>, vector<64x128xf32> -> vector<64x128xf32>
    %168 = arith.addf %161, %167 : vector<64x128xf32>
    %c5_159 = arith.constant 5 : index
    %c0_160 = arith.constant 0 : index
    %c0_161 = arith.constant 0 : index
    %c0_162 = arith.constant 0 : index
    %169 = vector.load %arg11[%c5_159, %c0_160, %c0_161, %c0_162] : memref<9x5x24x128xbf16, #tpu.memory_space<vmem>>, vector<1x4x16x128xbf16>
    %170 = vector.shape_cast %169 : vector<1x4x16x128xbf16> to vector<4x16x128xbf16>
    %171 = vector.shape_cast %170 : vector<4x16x128xbf16> to vector<64x128xbf16>
    %c7_163 = arith.constant 7 : index
    %c0_164 = arith.constant 0 : index
    %c0_165 = arith.constant 0 : index
    %172 = vector.load %arg5[%c7_163, %c0_164, %c0_165] : memref<25x128x128xbf16, #tpu.memory_space<vmem>>, vector<1x128x128xbf16>
    %173 = vector.shape_cast %172 : vector<1x128x128xbf16> to vector<128x128xbf16>
    %cst_166 = arith.constant dense<0.000000e+00> : vector<64x128xf32>
    %174 = tpu.matmul %171, %173, %cst_166 {dimension_numbers = #tpu.dot_dimension_numbers<[1], [0], [0], [1], [0, 0, 1, 1], [], []>} : vector<64x128xbf16>, vector<128x128xbf16>, vector<64x128xf32> -> vector<64x128xf32>
    %175 = arith.addf %168, %174 : vector<64x128xf32>
    %c3_167 = arith.constant 3 : index
    %c1_168 = arith.constant 1 : index
    %c0_169 = arith.constant 0 : index
    %c0_170 = arith.constant 0 : index
    %176 = vector.load %arg11[%c3_167, %c1_168, %c0_169, %c0_170] : memref<9x5x24x128xbf16, #tpu.memory_space<vmem>>, vector<1x4x16x128xbf16>
    %177 = vector.shape_cast %176 : vector<1x4x16x128xbf16> to vector<4x16x128xbf16>
    %178 = vector.shape_cast %177 : vector<4x16x128xbf16> to vector<64x128xbf16>
    %c8_171 = arith.constant 8 : index
    %c0_172 = arith.constant 0 : index
    %c0_173 = arith.constant 0 : index
    %179 = vector.load %arg5[%c8_171, %c0_172, %c0_173] : memref<25x128x128xbf16, #tpu.memory_space<vmem>>, vector<1x128x128xbf16>
    %180 = vector.shape_cast %179 : vector<1x128x128xbf16> to vector<128x128xbf16>
    %cst_174 = arith.constant dense<0.000000e+00> : vector<64x128xf32>
    %181 = tpu.matmul %178, %180, %cst_174 {dimension_numbers = #tpu.dot_dimension_numbers<[1], [0], [0], [1], [0, 0, 1, 1], [], []>} : vector<64x128xbf16>, vector<128x128xbf16>, vector<64x128xf32> -> vector<64x128xf32>
    %182 = arith.addf %175, %181 : vector<64x128xf32>
    %c4_175 = arith.constant 4 : index
    %c1_176 = arith.constant 1 : index
    %c0_177 = arith.constant 0 : index
    %c0_178 = arith.constant 0 : index
    %183 = vector.load %arg11[%c4_175, %c1_176, %c0_177, %c0_178] : memref<9x5x24x128xbf16, #tpu.memory_space<vmem>>, vector<1x4x16x128xbf16>
    %184 = vector.shape_cast %183 : vector<1x4x16x128xbf16> to vector<4x16x128xbf16>
    %185 = vector.shape_cast %184 : vector<4x16x128xbf16> to vector<64x128xbf16>
    %c9 = arith.constant 9 : index
    %c0_179 = arith.constant 0 : index
    %c0_180 = arith.constant 0 : index
    %186 = vector.load %arg5[%c9, %c0_179, %c0_180] : memref<25x128x128xbf16, #tpu.memory_space<vmem>>, vector<1x128x128xbf16>
    %187 = vector.shape_cast %186 : vector<1x128x128xbf16> to vector<128x128xbf16>
    %cst_181 = arith.constant dense<0.000000e+00> : vector<64x128xf32>
    %188 = tpu.matmul %185, %187, %cst_181 {dimension_numbers = #tpu.dot_dimension_numbers<[1], [0], [0], [1], [0, 0, 1, 1], [], []>} : vector<64x128xbf16>, vector<128x128xbf16>, vector<64x128xf32> -> vector<64x128xf32>
    %189 = arith.addf %182, %188 : vector<64x128xf32>
    %c6_182 = arith.constant 6 : index
    %c0_183 = arith.constant 0 : index
    %c0_184 = arith.constant 0 : index
    %c0_185 = arith.constant 0 : index
    %190 = vector.load %arg11[%c6_182, %c0_183, %c0_184, %c0_185] : memref<9x5x24x128xbf16, #tpu.memory_space<vmem>>, vector<1x4x16x128xbf16>
    %191 = vector.shape_cast %190 : vector<1x4x16x128xbf16> to vector<4x16x128xbf16>
    %192 = vector.shape_cast %191 : vector<4x16x128xbf16> to vector<64x128xbf16>
    %c10 = arith.constant 10 : index
    %c0_186 = arith.constant 0 : index
    %c0_187 = arith.constant 0 : index
    %193 = vector.load %arg5[%c10, %c0_186, %c0_187] : memref<25x128x128xbf16, #tpu.memory_space<vmem>>, vector<1x128x128xbf16>
    %194 = vector.shape_cast %193 : vector<1x128x128xbf16> to vector<128x128xbf16>
    %cst_188 = arith.constant dense<0.000000e+00> : vector<64x128xf32>
    %195 = tpu.matmul %192, %194, %cst_188 {dimension_numbers = #tpu.dot_dimension_numbers<[1], [0], [0], [1], [0, 0, 1, 1], [], []>} : vector<64x128xbf16>, vector<128x128xbf16>, vector<64x128xf32> -> vector<64x128xf32>
    %196 = arith.addf %189, %195 : vector<64x128xf32>
    %c7_189 = arith.constant 7 : index
    %c0_190 = arith.constant 0 : index
    %c0_191 = arith.constant 0 : index
    %c0_192 = arith.constant 0 : index
    %197 = vector.load %arg11[%c7_189, %c0_190, %c0_191, %c0_192] : memref<9x5x24x128xbf16, #tpu.memory_space<vmem>>, vector<1x4x16x128xbf16>
    %198 = vector.shape_cast %197 : vector<1x4x16x128xbf16> to vector<4x16x128xbf16>
    %199 = vector.shape_cast %198 : vector<4x16x128xbf16> to vector<64x128xbf16>
    %c11 = arith.constant 11 : index
    %c0_193 = arith.constant 0 : index
    %c0_194 = arith.constant 0 : index
    %200 = vector.load %arg5[%c11, %c0_193, %c0_194] : memref<25x128x128xbf16, #tpu.memory_space<vmem>>, vector<1x128x128xbf16>
    %201 = vector.shape_cast %200 : vector<1x128x128xbf16> to vector<128x128xbf16>
    %cst_195 = arith.constant dense<0.000000e+00> : vector<64x128xf32>
    %202 = tpu.matmul %199, %201, %cst_195 {dimension_numbers = #tpu.dot_dimension_numbers<[1], [0], [0], [1], [0, 0, 1, 1], [], []>} : vector<64x128xbf16>, vector<128x128xbf16>, vector<64x128xf32> -> vector<64x128xf32>
    %203 = arith.addf %196, %202 : vector<64x128xf32>
    %c8_196 = arith.constant 8 : index
    %c0_197 = arith.constant 0 : index
    %c0_198 = arith.constant 0 : index
    %c0_199 = arith.constant 0 : index
    %204 = vector.load %arg11[%c8_196, %c0_197, %c0_198, %c0_199] : memref<9x5x24x128xbf16, #tpu.memory_space<vmem>>, vector<1x4x16x128xbf16>
    %205 = vector.shape_cast %204 : vector<1x4x16x128xbf16> to vector<4x16x128xbf16>
    %206 = vector.shape_cast %205 : vector<4x16x128xbf16> to vector<64x128xbf16>
    %c12 = arith.constant 12 : index
    %c0_200 = arith.constant 0 : index
    %c0_201 = arith.constant 0 : index
    %207 = vector.load %arg5[%c12, %c0_200, %c0_201] : memref<25x128x128xbf16, #tpu.memory_space<vmem>>, vector<1x128x128xbf16>
    %208 = vector.shape_cast %207 : vector<1x128x128xbf16> to vector<128x128xbf16>
    %cst_202 = arith.constant dense<0.000000e+00> : vector<64x128xf32>
    %209 = tpu.matmul %206, %208, %cst_202 {dimension_numbers = #tpu.dot_dimension_numbers<[1], [0], [0], [1], [0, 0, 1, 1], [], []>} : vector<64x128xbf16>, vector<128x128xbf16>, vector<64x128xf32> -> vector<64x128xf32>
    %210 = arith.addf %203, %209 : vector<64x128xf32>
    %c6_203 = arith.constant 6 : index
    %c1_204 = arith.constant 1 : index
    %c0_205 = arith.constant 0 : index
    %c0_206 = arith.constant 0 : index
    %211 = vector.load %arg11[%c6_203, %c1_204, %c0_205, %c0_206] : memref<9x5x24x128xbf16, #tpu.memory_space<vmem>>, vector<1x4x16x128xbf16>
    %212 = vector.shape_cast %211 : vector<1x4x16x128xbf16> to vector<4x16x128xbf16>
    %213 = vector.shape_cast %212 : vector<4x16x128xbf16> to vector<64x128xbf16>
    %c13 = arith.constant 13 : index
    %c0_207 = arith.constant 0 : index
    %c0_208 = arith.constant 0 : index
    %214 = vector.load %arg5[%c13, %c0_207, %c0_208] : memref<25x128x128xbf16, #tpu.memory_space<vmem>>, vector<1x128x128xbf16>
    %215 = vector.shape_cast %214 : vector<1x128x128xbf16> to vector<128x128xbf16>
    %cst_209 = arith.constant dense<0.000000e+00> : vector<64x128xf32>
    %216 = tpu.matmul %213, %215, %cst_209 {dimension_numbers = #tpu.dot_dimension_numbers<[1], [0], [0], [1], [0, 0, 1, 1], [], []>} : vector<64x128xbf16>, vector<128x128xbf16>, vector<64x128xf32> -> vector<64x128xf32>
    %217 = arith.addf %210, %216 : vector<64x128xf32>
    %c7_210 = arith.constant 7 : index
    %c1_211 = arith.constant 1 : index
    %c0_212 = arith.constant 0 : index
    %c0_213 = arith.constant 0 : index
    %218 = vector.load %arg11[%c7_210, %c1_211, %c0_212, %c0_213] : memref<9x5x24x128xbf16, #tpu.memory_space<vmem>>, vector<1x4x16x128xbf16>
    %219 = vector.shape_cast %218 : vector<1x4x16x128xbf16> to vector<4x16x128xbf16>
    %220 = vector.shape_cast %219 : vector<4x16x128xbf16> to vector<64x128xbf16>
    %c14 = arith.constant 14 : index
    %c0_214 = arith.constant 0 : index
    %c0_215 = arith.constant 0 : index
    %221 = vector.load %arg5[%c14, %c0_214, %c0_215] : memref<25x128x128xbf16, #tpu.memory_space<vmem>>, vector<1x128x128xbf16>
    %222 = vector.shape_cast %221 : vector<1x128x128xbf16> to vector<128x128xbf16>
    %cst_216 = arith.constant dense<0.000000e+00> : vector<64x128xf32>
    %223 = tpu.matmul %220, %222, %cst_216 {dimension_numbers = #tpu.dot_dimension_numbers<[1], [0], [0], [1], [0, 0, 1, 1], [], []>} : vector<64x128xbf16>, vector<128x128xbf16>, vector<64x128xf32> -> vector<64x128xf32>
    %224 = arith.addf %217, %223 : vector<64x128xf32>
    %c0_217 = arith.constant 0 : index
    %c0_218 = arith.constant 0 : index
    %c1_219 = arith.constant 1 : index
    %c0_220 = arith.constant 0 : index
    %225 = vector.load %arg11[%c0_217, %c0_218, %c1_219, %c0_220] : memref<9x5x24x128xbf16, #tpu.memory_space<vmem>>, vector<1x4x16x128xbf16>
    %226 = vector.shape_cast %225 : vector<1x4x16x128xbf16> to vector<4x16x128xbf16>
    %227 = vector.shape_cast %226 : vector<4x16x128xbf16> to vector<64x128xbf16>
    %c15 = arith.constant 15 : index
    %c0_221 = arith.constant 0 : index
    %c0_222 = arith.constant 0 : index
    %228 = vector.load %arg5[%c15, %c0_221, %c0_222] : memref<25x128x128xbf16, #tpu.memory_space<vmem>>, vector<1x128x128xbf16>
    %229 = vector.shape_cast %228 : vector<1x128x128xbf16> to vector<128x128xbf16>
    %cst_223 = arith.constant dense<0.000000e+00> : vector<64x128xf32>
    %230 = tpu.matmul %227, %229, %cst_223 {dimension_numbers = #tpu.dot_dimension_numbers<[1], [0], [0], [1], [0, 0, 1, 1], [], []>} : vector<64x128xbf16>, vector<128x128xbf16>, vector<64x128xf32> -> vector<64x128xf32>
    %231 = arith.addf %224, %230 : vector<64x128xf32>
    %c1_224 = arith.constant 1 : index
    %c0_225 = arith.constant 0 : index
    %c1_226 = arith.constant 1 : index
    %c0_227 = arith.constant 0 : index
    %232 = vector.load %arg11[%c1_224, %c0_225, %c1_226, %c0_227] : memref<9x5x24x128xbf16, #tpu.memory_space<vmem>>, vector<1x4x16x128xbf16>
    %233 = vector.shape_cast %232 : vector<1x4x16x128xbf16> to vector<4x16x128xbf16>
    %234 = vector.shape_cast %233 : vector<4x16x128xbf16> to vector<64x128xbf16>
    %c16 = arith.constant 16 : index
    %c0_228 = arith.constant 0 : index
    %c0_229 = arith.constant 0 : index
    %235 = vector.load %arg5[%c16, %c0_228, %c0_229] : memref<25x128x128xbf16, #tpu.memory_space<vmem>>, vector<1x128x128xbf16>
    %236 = vector.shape_cast %235 : vector<1x128x128xbf16> to vector<128x128xbf16>
    %cst_230 = arith.constant dense<0.000000e+00> : vector<64x128xf32>
    %237 = tpu.matmul %234, %236, %cst_230 {dimension_numbers = #tpu.dot_dimension_numbers<[1], [0], [0], [1], [0, 0, 1, 1], [], []>} : vector<64x128xbf16>, vector<128x128xbf16>, vector<64x128xf32> -> vector<64x128xf32>
    %238 = arith.addf %231, %237 : vector<64x128xf32>
    %c2_231 = arith.constant 2 : index
    %c0_232 = arith.constant 0 : index
    %c1_233 = arith.constant 1 : index
    %c0_234 = arith.constant 0 : index
    %239 = vector.load %arg11[%c2_231, %c0_232, %c1_233, %c0_234] : memref<9x5x24x128xbf16, #tpu.memory_space<vmem>>, vector<1x4x16x128xbf16>
    %240 = vector.shape_cast %239 : vector<1x4x16x128xbf16> to vector<4x16x128xbf16>
    %241 = vector.shape_cast %240 : vector<4x16x128xbf16> to vector<64x128xbf16>
    %c17 = arith.constant 17 : index
    %c0_235 = arith.constant 0 : index
    %c0_236 = arith.constant 0 : index
    %242 = vector.load %arg5[%c17, %c0_235, %c0_236] : memref<25x128x128xbf16, #tpu.memory_space<vmem>>, vector<1x128x128xbf16>
    %243 = vector.shape_cast %242 : vector<1x128x128xbf16> to vector<128x128xbf16>
    %cst_237 = arith.constant dense<0.000000e+00> : vector<64x128xf32>
    %244 = tpu.matmul %241, %243, %cst_237 {dimension_numbers = #tpu.dot_dimension_numbers<[1], [0], [0], [1], [0, 0, 1, 1], [], []>} : vector<64x128xbf16>, vector<128x128xbf16>, vector<64x128xf32> -> vector<64x128xf32>
    %245 = arith.addf %238, %244 : vector<64x128xf32>
    %c0_238 = arith.constant 0 : index
    %c1_239 = arith.constant 1 : index
    %c1_240 = arith.constant 1 : index
    %c0_241 = arith.constant 0 : index
    %246 = vector.load %arg11[%c0_238, %c1_239, %c1_240, %c0_241] : memref<9x5x24x128xbf16, #tpu.memory_space<vmem>>, vector<1x4x16x128xbf16>
    %247 = vector.shape_cast %246 : vector<1x4x16x128xbf16> to vector<4x16x128xbf16>
    %248 = vector.shape_cast %247 : vector<4x16x128xbf16> to vector<64x128xbf16>
    %c18 = arith.constant 18 : index
    %c0_242 = arith.constant 0 : index
    %c0_243 = arith.constant 0 : index
    %249 = vector.load %arg5[%c18, %c0_242, %c0_243] : memref<25x128x128xbf16, #tpu.memory_space<vmem>>, vector<1x128x128xbf16>
    %250 = vector.shape_cast %249 : vector<1x128x128xbf16> to vector<128x128xbf16>
    %cst_244 = arith.constant dense<0.000000e+00> : vector<64x128xf32>
    %251 = tpu.matmul %248, %250, %cst_244 {dimension_numbers = #tpu.dot_dimension_numbers<[1], [0], [0], [1], [0, 0, 1, 1], [], []>} : vector<64x128xbf16>, vector<128x128xbf16>, vector<64x128xf32> -> vector<64x128xf32>
    %252 = arith.addf %245, %251 : vector<64x128xf32>
    %c1_245 = arith.constant 1 : index
    %c1_246 = arith.constant 1 : index
    %c1_247 = arith.constant 1 : index
    %c0_248 = arith.constant 0 : index
    %253 = vector.load %arg11[%c1_245, %c1_246, %c1_247, %c0_248] : memref<9x5x24x128xbf16, #tpu.memory_space<vmem>>, vector<1x4x16x128xbf16>
    %254 = vector.shape_cast %253 : vector<1x4x16x128xbf16> to vector<4x16x128xbf16>
    %255 = vector.shape_cast %254 : vector<4x16x128xbf16> to vector<64x128xbf16>
    %c19 = arith.constant 19 : index
    %c0_249 = arith.constant 0 : index
    %c0_250 = arith.constant 0 : index
    %256 = vector.load %arg5[%c19, %c0_249, %c0_250] : memref<25x128x128xbf16, #tpu.memory_space<vmem>>, vector<1x128x128xbf16>
    %257 = vector.shape_cast %256 : vector<1x128x128xbf16> to vector<128x128xbf16>
    %cst_251 = arith.constant dense<0.000000e+00> : vector<64x128xf32>
    %258 = tpu.matmul %255, %257, %cst_251 {dimension_numbers = #tpu.dot_dimension_numbers<[1], [0], [0], [1], [0, 0, 1, 1], [], []>} : vector<64x128xbf16>, vector<128x128xbf16>, vector<64x128xf32> -> vector<64x128xf32>
    %259 = arith.addf %252, %258 : vector<64x128xf32>
    %c3_252 = arith.constant 3 : index
    %c0_253 = arith.constant 0 : index
    %c1_254 = arith.constant 1 : index
    %c0_255 = arith.constant 0 : index
    %260 = vector.load %arg11[%c3_252, %c0_253, %c1_254, %c0_255] : memref<9x5x24x128xbf16, #tpu.memory_space<vmem>>, vector<1x4x16x128xbf16>
    %261 = vector.shape_cast %260 : vector<1x4x16x128xbf16> to vector<4x16x128xbf16>
    %262 = vector.shape_cast %261 : vector<4x16x128xbf16> to vector<64x128xbf16>
    %c20 = arith.constant 20 : index
    %c0_256 = arith.constant 0 : index
    %c0_257 = arith.constant 0 : index
    %263 = vector.load %arg5[%c20, %c0_256, %c0_257] : memref<25x128x128xbf16, #tpu.memory_space<vmem>>, vector<1x128x128xbf16>
    %264 = vector.shape_cast %263 : vector<1x128x128xbf16> to vector<128x128xbf16>
    %cst_258 = arith.constant dense<0.000000e+00> : vector<64x128xf32>
    %265 = tpu.matmul %262, %264, %cst_258 {dimension_numbers = #tpu.dot_dimension_numbers<[1], [0], [0], [1], [0, 0, 1, 1], [], []>} : vector<64x128xbf16>, vector<128x128xbf16>, vector<64x128xf32> -> vector<64x128xf32>
    %266 = arith.addf %259, %265 : vector<64x128xf32>
    %c4_259 = arith.constant 4 : index
    %c0_260 = arith.constant 0 : index
    %c1_261 = arith.constant 1 : index
    %c0_262 = arith.constant 0 : index
    %267 = vector.load %arg11[%c4_259, %c0_260, %c1_261, %c0_262] : memref<9x5x24x128xbf16, #tpu.memory_space<vmem>>, vector<1x4x16x128xbf16>
    %268 = vector.shape_cast %267 : vector<1x4x16x128xbf16> to vector<4x16x128xbf16>
    %269 = vector.shape_cast %268 : vector<4x16x128xbf16> to vector<64x128xbf16>
    %c21 = arith.constant 21 : index
    %c0_263 = arith.constant 0 : index
    %c0_264 = arith.constant 0 : index
    %270 = vector.load %arg5[%c21, %c0_263, %c0_264] : memref<25x128x128xbf16, #tpu.memory_space<vmem>>, vector<1x128x128xbf16>
    %271 = vector.shape_cast %270 : vector<1x128x128xbf16> to vector<128x128xbf16>
    %cst_265 = arith.constant dense<0.000000e+00> : vector<64x128xf32>
    %272 = tpu.matmul %269, %271, %cst_265 {dimension_numbers = #tpu.dot_dimension_numbers<[1], [0], [0], [1], [0, 0, 1, 1], [], []>} : vector<64x128xbf16>, vector<128x128xbf16>, vector<64x128xf32> -> vector<64x128xf32>
    %273 = arith.addf %266, %272 : vector<64x128xf32>
    %c5_266 = arith.constant 5 : index
    %c0_267 = arith.constant 0 : index
    %c1_268 = arith.constant 1 : index
    %c0_269 = arith.constant 0 : index
    %274 = vector.load %arg11[%c5_266, %c0_267, %c1_268, %c0_269] : memref<9x5x24x128xbf16, #tpu.memory_space<vmem>>, vector<1x4x16x128xbf16>
    %275 = vector.shape_cast %274 : vector<1x4x16x128xbf16> to vector<4x16x128xbf16>
    %276 = vector.shape_cast %275 : vector<4x16x128xbf16> to vector<64x128xbf16>
    %c22 = arith.constant 22 : index
    %c0_270 = arith.constant 0 : index
    %c0_271 = arith.constant 0 : index
    %277 = vector.load %arg5[%c22, %c0_270, %c0_271] : memref<25x128x128xbf16, #tpu.memory_space<vmem>>, vector<1x128x128xbf16>
    %278 = vector.shape_cast %277 : vector<1x128x128xbf16> to vector<128x128xbf16>
    %cst_272 = arith.constant dense<0.000000e+00> : vector<64x128xf32>
    %279 = tpu.matmul %276, %278, %cst_272 {dimension_numbers = #tpu.dot_dimension_numbers<[1], [0], [0], [1], [0, 0, 1, 1], [], []>} : vector<64x128xbf16>, vector<128x128xbf16>, vector<64x128xf32> -> vector<64x128xf32>
    %280 = arith.addf %273, %279 : vector<64x128xf32>
    %c3_273 = arith.constant 3 : index
    %c1_274 = arith.constant 1 : index
    %c1_275 = arith.constant 1 : index
    %c0_276 = arith.constant 0 : index
    %281 = vector.load %arg11[%c3_273, %c1_274, %c1_275, %c0_276] : memref<9x5x24x128xbf16, #tpu.memory_space<vmem>>, vector<1x4x16x128xbf16>
    %282 = vector.shape_cast %281 : vector<1x4x16x128xbf16> to vector<4x16x128xbf16>
    %283 = vector.shape_cast %282 : vector<4x16x128xbf16> to vector<64x128xbf16>
    %c23 = arith.constant 23 : index
    %c0_277 = arith.constant 0 : index
    %c0_278 = arith.constant 0 : index
    %284 = vector.load %arg5[%c23, %c0_277, %c0_278] : memref<25x128x128xbf16, #tpu.memory_space<vmem>>, vector<1x128x128xbf16>
    %285 = vector.shape_cast %284 : vector<1x128x128xbf16> to vector<128x128xbf16>
    %cst_279 = arith.constant dense<0.000000e+00> : vector<64x128xf32>
    %286 = tpu.matmul %283, %285, %cst_279 {dimension_numbers = #tpu.dot_dimension_numbers<[1], [0], [0], [1], [0, 0, 1, 1], [], []>} : vector<64x128xbf16>, vector<128x128xbf16>, vector<64x128xf32> -> vector<64x128xf32>
    %287 = arith.addf %280, %286 : vector<64x128xf32>
    %c4_280 = arith.constant 4 : index
    %c1_281 = arith.constant 1 : index
    %c1_282 = arith.constant 1 : index
    %c0_283 = arith.constant 0 : index
    %288 = vector.load %arg11[%c4_280, %c1_281, %c1_282, %c0_283] : memref<9x5x24x128xbf16, #tpu.memory_space<vmem>>, vector<1x4x16x128xbf16>
    %289 = vector.shape_cast %288 : vector<1x4x16x128xbf16> to vector<4x16x128xbf16>
    %290 = vector.shape_cast %289 : vector<4x16x128xbf16> to vector<64x128xbf16>
    %c24 = arith.constant 24 : index
    %c0_284 = arith.constant 0 : index
    %c0_285 = arith.constant 0 : index
    %291 = vector.load %arg5[%c24, %c0_284, %c0_285] : memref<25x128x128xbf16, #tpu.memory_space<vmem>>, vector<1x128x128xbf16>
    %292 = vector.shape_cast %291 : vector<1x128x128xbf16> to vector<128x128xbf16>
    %cst_286 = arith.constant dense<0.000000e+00> : vector<64x128xf32>
    %293 = tpu.matmul %290, %292, %cst_286 {dimension_numbers = #tpu.dot_dimension_numbers<[1], [0], [0], [1], [0, 0, 1, 1], [], []>} : vector<64x128xbf16>, vector<128x128xbf16>, vector<64x128xf32> -> vector<64x128xf32>
    %294 = arith.addf %287, %293 : vector<64x128xf32>
    %c0_287 = arith.constant 0 : index
    %c0_288 = arith.constant 0 : index
    %295 = vector.load %arg6[%c0_287, %c0_288] : memref<1x128xf32, #tpu.memory_space<vmem>>, vector<1x128xf32>
    %296 = vector.broadcast %295 : vector<1x128xf32> to vector<64x128xf32>
    %297 = arith.addf %294, %296 : vector<64x128xf32>
    %cst_289 = arith.constant 0.000000e+00 : f32
    %298 = vector.broadcast %cst_289 : f32 to vector<64x128xf32>
    %299 = arith.maximumf %297, %298 : vector<64x128xf32>
    %300 = arith.truncf %299 : vector<64x128xf32> to vector<64x128xbf16>
    %cst_290 = arith.constant 0.000000e+00 : f32
    %301 = vector.broadcast %cst_290 : f32 to vector<16x128xf32>
    %302 = vector.extract_strided_slice %300 {offsets = [0, 0], sizes = [16, 128], strides = [1, 1]} : vector<64x128xbf16> to vector<16x128xbf16>
    %c0_291 = arith.constant 0 : index
    %c0_292 = arith.constant 0 : index
    %c0_293 = arith.constant 0 : index
    %303 = vector.load %arg7[%c0_291, %c0_292, %c0_293] : memref<4x128x128xbf16, #tpu.memory_space<vmem>>, vector<1x128x128xbf16>
    %304 = vector.shape_cast %303 : vector<1x128x128xbf16> to vector<128x128xbf16>
    %cst_294 = arith.constant dense<0.000000e+00> : vector<16x128xf32>
    %305 = tpu.matmul %302, %304, %cst_294 {dimension_numbers = #tpu.dot_dimension_numbers<[1], [0], [0], [1], [0, 0, 1, 1], [], []>} : vector<16x128xbf16>, vector<128x128xbf16>, vector<16x128xf32> -> vector<16x128xf32>
    %306 = arith.addf %301, %305 : vector<16x128xf32>
    %307 = vector.extract_strided_slice %300 {offsets = [16, 0], sizes = [16, 128], strides = [1, 1]} : vector<64x128xbf16> to vector<16x128xbf16>
    %c1_295 = arith.constant 1 : index
    %c0_296 = arith.constant 0 : index
    %c0_297 = arith.constant 0 : index
    %308 = vector.load %arg7[%c1_295, %c0_296, %c0_297] : memref<4x128x128xbf16, #tpu.memory_space<vmem>>, vector<1x128x128xbf16>
    %309 = vector.shape_cast %308 : vector<1x128x128xbf16> to vector<128x128xbf16>
    %cst_298 = arith.constant dense<0.000000e+00> : vector<16x128xf32>
    %310 = tpu.matmul %307, %309, %cst_298 {dimension_numbers = #tpu.dot_dimension_numbers<[1], [0], [0], [1], [0, 0, 1, 1], [], []>} : vector<16x128xbf16>, vector<128x128xbf16>, vector<16x128xf32> -> vector<16x128xf32>
    %311 = arith.addf %306, %310 : vector<16x128xf32>
    %312 = vector.extract_strided_slice %300 {offsets = [32, 0], sizes = [16, 128], strides = [1, 1]} : vector<64x128xbf16> to vector<16x128xbf16>
    %c2_299 = arith.constant 2 : index
    %c0_300 = arith.constant 0 : index
    %c0_301 = arith.constant 0 : index
    %313 = vector.load %arg7[%c2_299, %c0_300, %c0_301] : memref<4x128x128xbf16, #tpu.memory_space<vmem>>, vector<1x128x128xbf16>
    %314 = vector.shape_cast %313 : vector<1x128x128xbf16> to vector<128x128xbf16>
    %cst_302 = arith.constant dense<0.000000e+00> : vector<16x128xf32>
    %315 = tpu.matmul %312, %314, %cst_302 {dimension_numbers = #tpu.dot_dimension_numbers<[1], [0], [0], [1], [0, 0, 1, 1], [], []>} : vector<16x128xbf16>, vector<128x128xbf16>, vector<16x128xf32> -> vector<16x128xf32>
    %316 = arith.addf %311, %315 : vector<16x128xf32>
    %317 = vector.extract_strided_slice %300 {offsets = [48, 0], sizes = [16, 128], strides = [1, 1]} : vector<64x128xbf16> to vector<16x128xbf16>
    %c3_303 = arith.constant 3 : index
    %c0_304 = arith.constant 0 : index
    %c0_305 = arith.constant 0 : index
    %318 = vector.load %arg7[%c3_303, %c0_304, %c0_305] : memref<4x128x128xbf16, #tpu.memory_space<vmem>>, vector<1x128x128xbf16>
    %319 = vector.shape_cast %318 : vector<1x128x128xbf16> to vector<128x128xbf16>
    %cst_306 = arith.constant dense<0.000000e+00> : vector<16x128xf32>
    %320 = tpu.matmul %317, %319, %cst_306 {dimension_numbers = #tpu.dot_dimension_numbers<[1], [0], [0], [1], [0, 0, 1, 1], [], []>} : vector<16x128xbf16>, vector<128x128xbf16>, vector<16x128xf32> -> vector<16x128xf32>
    %321 = arith.addf %316, %320 : vector<16x128xf32>
    %c0_307 = arith.constant 0 : index
    %c0_308 = arith.constant 0 : index
    %322 = vector.load %arg8[%c0_307, %c0_308] : memref<1x128xf32, #tpu.memory_space<vmem>>, vector<1x128xf32>
    %323 = vector.broadcast %322 : vector<1x128xf32> to vector<16x128xf32>
    %324 = arith.addf %321, %323 : vector<16x128xf32>
    %cst_309 = arith.constant 4.000000e+00 : f32
    %325 = vector.broadcast %cst_309 : f32 to vector<16x128xf32>
    %326 = arith.mulf %324, %325 : vector<16x128xf32>
    %c0_310 = arith.constant 0 : index
    %c0_311 = arith.constant 0 : index
    %327 = vector.load %arg9[%c0_310, %c0_311] : memref<16x128xf32, #tpu.memory_space<vmem>>, vector<16x128xf32>
    %328 = arith.addf %326, %327 : vector<16x128xf32>
    %c0_312 = arith.constant 0 : index
    %c0_313 = arith.constant 0 : index
    %c0_314 = arith.constant 0 : index
    %329 = vector.load %arg10[%c0_312, %c0_313, %c0_314] : memref<1x16x128xf32, #tpu.memory_space<vmem>>, vector<1x16x128xf32>
    %330 = vector.shape_cast %329 : vector<1x16x128xf32> to vector<16x128xf32>
    %331 = vector.shape_cast %328 : vector<16x128xf32> to vector<1x16x128xf32>
    tpu.vector_store %arg10[%c0_312, %c0_313, %c0_314], %331 {strides = array<i32>} : memref<1x16x128xf32, #tpu.memory_space<vmem>>, vector<1x16x128xf32>,
    return
  }
  func.func @transform_0(%arg0: i32, %arg1: i32) -> (i32, i32, i32, i32, i32, i32) {
    %c0_i32 = arith.constant 0 : i32
    %c0_i32_0 = arith.constant 0 : i32
    %c0_i32_1 = arith.constant 0 : i32
    %c0_i32_2 = arith.constant 0 : i32
    %c0_i32_3 = arith.constant 0 : i32
    return %arg0, %arg1, %c0_i32, %c0_i32_0, %c0_i32_1, %c0_i32_2 : i32, i32, i32, i32, i32, i32
  }
  func.func @transform_1(%arg0: i32, %arg1: i32) -> (i32, i32) {
    %c0_i32 = arith.constant 0 : i32
    %c0_i32_0 = arith.constant 0 : i32
    %c0_i32_1 = arith.constant 0 : i32
    return %c0_i32, %c0_i32_0 : i32, i32
  }
  func.func @transform_2(%arg0: i32, %arg1: i32) -> (i32, i32) {
    %c0_i32 = arith.constant 0 : i32
    %c0_i32_0 = arith.constant 0 : i32
    %c0_i32_1 = arith.constant 0 : i32
    return %c0_i32, %c0_i32_0 : i32, i32
  }
  func.func @transform_3(%arg0: i32, %arg1: i32) -> (i32, i32, i32) {
    %c0_i32 = arith.constant 0 : i32
    %c0_i32_0 = arith.constant 0 : i32
    %c0_i32_1 = arith.constant 0 : i32
    %c0_i32_2 = arith.constant 0 : i32
    return %c0_i32, %c0_i32_0, %c0_i32_1 : i32, i32, i32
  }
  func.func @transform_4(%arg0: i32, %arg1: i32) -> (i32, i32) {
    %c0_i32 = arith.constant 0 : i32
    %c0_i32_0 = arith.constant 0 : i32
    %c0_i32_1 = arith.constant 0 : i32
    return %c0_i32, %c0_i32_0 : i32, i32
  }
  func.func @transform_5(%arg0: i32, %arg1: i32) -> (i32, i32, i32) {
    %c0_i32 = arith.constant 0 : i32
    %c0_i32_0 = arith.constant 0 : i32
    %c0_i32_1 = arith.constant 0 : i32
    %c0_i32_2 = arith.constant 0 : i32
    return %c0_i32, %c0_i32_0, %c0_i32_1 : i32, i32, i32
  }
  func.func @transform_6(%arg0: i32, %arg1: i32) -> (i32, i32) {
    %c0_i32 = arith.constant 0 : i32
    %c0_i32_0 = arith.constant 0 : i32
    %c0_i32_1 = arith.constant 0 : i32
    return %c0_i32, %c0_i32_0 : i32, i32
  }
  func.func @transform_7(%arg0: i32, %arg1: i32) -> (i32, i32) {
    %c0_i32 = arith.constant 0 : i32
    %c0_i32_0 = arith.constant 0 : i32
    return %arg1, %c0_i32 : i32, i32
  }
  func.func @transform_8(%arg0: i32, %arg1: i32) -> (i32, i32, i32) {
    %c0_i32 = arith.constant 0 : i32
    %c0_i32_0 = arith.constant 0 : i32
    return %arg0, %arg1, %c0_i32 : i32, i32, i32
  }
}

</mosaic_0001>

<bundles_post_ra>
// kernel: conv2d_subsampling6.1
= control target key start
LH: loop header
LB: loop body
LE: loop exit
PB: predicated region body
PF: predicated region fallthrough
CT: control target
= control target key end

     0   :  { %s11930_s27 = smov 0   ;;  %s11932_s28 = smov 0   ;;  %s14060_s0 = inlined_call_operand.vmem [shape: bf16[2,1,9,5,24,9], index: 0, kind: input, shape index: {}]   ;;  %s14061_s1 = inlined_call_operand.vmem [shape: bf16[9,128], index: 1, kind: input, shape index: {}]   ;;  %s14062_s2 = inlined_call_operand.vmem [shape: f32[1,128], index: 2, kind: input, shape index: {}]   ;;  %s14063_s3 = inlined_call_operand.vmem [shape: bf16[25,128,128], index: 3, kind: input, shape index: {}]   ;;  %s14064_s4 = inlined_call_operand.vmem [shape: f32[1,128], index: 4, kind: input, shape index: {}]   ;;  %s14065_s5 = inlined_call_operand.vmem [shape: bf16[4,128,128], index: 5, kind: input, shape index: {}]   ;;  %s14066_s6 = inlined_call_operand.vmem [shape: f32[1,128], index: 6, kind: input, shape index: {}]   ;;  %s14067_s7 = inlined_call_operand.vmem [shape: f32[16,128], index: 7, kind: input, shape index: {}]   ;;  %s14068_s8 = inlined_call_operand.vmem [shape: f32[2,16,128], index: 8, kind: output, shape index: {}]  }
   0x1   :  { %s11934_s29 = smov 0  }
   0x2 LB: > { %s30_s30 = sadd.s32 1, %s11876_s28  ;;  %p8523_p0 = scmp.ge.s32.totalorder %s11880_s29, 1  ;;  %s11880_s29 = sphi %s11934_s29, %s18_s29   ;;  %s11876_s28 = sphi %s11932_s28, %s14083_s28   ;;  %s11872_s27 = sphi %s11930_s27, %s14082_s27  }
   0x3   : > { %p32_p1 = scmp.ge.s32.totalorder %s30_s30, 2  ;;  %p293_p2 = scmp.lt.s32.totalorder %s11880_s29, 3 }
   0x5   : > { %s14085_s30 = smov (%p32_p1, %s30_s30), 0  ;;  %p294_p3 = pnand %p8523_p0, %p293_p2 }
   0x7   : > { %297 = sbr.rel (%p294_p3) target bundleno = 1080 (0x438), region = 52 }
   0xc   : > { %v11492_v0 = vld [vmem:[%s14061_s1] sm:$0x1f]   ;;  %vm458_vm0 = vcmask 1043456   ;;  %vm459_vm1 = vcmask 1044480   ;;  %p340_p4 = scmp.lt.s32.totalorder %s11872_s27, 1  ;;  %v11882_v1 = vmov 65535  }
   0xd   : > { %v460_v2 = vsel %vm458_vm0, 4294967295, %v11882_v1  ;;  %vm433_vm2 = vcmask 72704   ;;  %v11559_v43 = vld [vmem:[%s14063_s3 + $0x78] sm:$0xff]   ;;  %v11561_v61 = vld [vmem:[%s14063_s3 + $0x70] sm:$0xff]   ;;  %vm5331_vm3 = vsmask.f32 3328 }
   0xe   : > { %v461_v3 = vsel %vm459_vm1, %v460_v2, 0  ;;  %s14087_s27 = smov (!%p340_p4, %s11872_s27), 1  ;;  %v11560_v60 = vld [vmem:[%s14063_s3 + $0x38] sm:$0xff]   ;;  %v11563_v2 = vld [vmem:[%s14063_s3 + $0x68] sm:$0xff]   ;;  %vm5332_vm4 = vsmask.f32 7440 }
   0xf   : > { %v11953_v4 = vand.u32 %v11492_v0, %v461_v3  ;;  %s11464_s11 = smul.u32 540, %s14087_s27  ;;  %v11565_v3 = vld [vmem:[%s14063_s3 + $0x60] sm:$0xff]   ;;  %vm12627_vm5 = vmor %vm5331_vm3, %vm5332_vm4  ;;  %vm11884_vm6 = vmmov 0   ;;  %s9696_s20 = sshll.u32 %s14087_s27, 4 }
  0x10   : > { %s363_s25 = scalar_lea.vmem %s14068_s8, %s9696_s20 }
  0x11   : > { %10622 = vmatprep.subr.bf16.mxu0 %v11953_v4  ;;  %10640 = vmatprep.subr.bf16.mxu1 %v11953_v4  ;;  %s11963_s14 = scalar_lea.vmem %s14060_s0, %s11464_s11 }
  0x12   : > { %10623 = vmatpush3.bf16.msra.mxu0 %v11953_v4  ;;  %10641 = vmatpush3.bf16.msra.mxu1 %v11953_v4  ;;  %v11493_v5 = vld [vmem:[%s11963_s14] sm:$0xff]   ;;  %v11495_v7 = vld [vmem:[%s11963_s14 + $0x8] sm:$0xff]   ;;  %v11497_v9 = vld [vmem:[%s11963_s14 + $0x10] sm:$0xff]  }
  0x13   : > { %10658 = vmatprep.subr.bf16.mxu0 %v11953_v4  ;;  %10676 = vmatprep.subr.bf16.mxu1 %v11953_v4  ;;  %v11494_v6 = vld [vmem:[%s11963_s14 + $0x3c] sm:$0xff]   ;;  %v11496_v8 = vld [vmem:[%s11963_s14 + $0x44] sm:$0xff]   ;;  %v11498_v10 = vld [vmem:[%s11963_s14 + $0x4c] sm:$0xff]  }
  0x14   : > { %10624 = vmatprep.mubr.msk.bf16.mxu0 %vm433_vm2, %v11493_v5  ;;  %10642 = vmatprep.mubr.msk.bf16.mxu1 %vm433_vm2, %v11494_v6  ;;  %v11499_v11 = vld [vmem:[%s11963_s14 + $0x18] sm:$0xff]   ;;  %v11501_v13 = vld [vmem:[%s11963_s14 + $0x20] sm:$0xff]   ;;  %v11503_v15 = vld [vmem:[%s11963_s14 + $0x28] sm:$0xff]  }
  0x15   : > { %10625 = vmatmul.mubr.msk.bf16.vlgmr.msra.gmra.mxu0 %vm433_vm2, %v11495_v7  ;;  %10643 = vmatmul.mubr.msk.bf16.vlgmr.msra.gmra.mxu1 %vm433_vm2, %v11496_v8  ;;  %v11500_v12 = vld [vmem:[%s11963_s14 + $0x54] sm:$0xff]   ;;  %v11502_v14 = vld [vmem:[%s11963_s14 + $0x5c] sm:$0xff]   ;;  %v11504_v16 = vld [vmem:[%s11963_s14 + $0x64] sm:$0xff]  }
  0x16   : > { %10659 = vmatpush3.bf16.msra.mxu0 %v11953_v4  ;;  %10628 = vmatprep.mubr.msk.bf16.mxu0 %vm433_vm2, %v11497_v9  ;;  %v11505_v17 = vld [vmem:[%s11963_s14 + $0x30] sm:$0xff]   ;;  %v11506_v19 = vld [vmem:[%s11963_s14 + $0x38] ss:$0 sps:$4 sm:$0xff]   ;;  %v11510_v23 = vld [vmem:[%s11963_s14 + $0x80] sm:$0xff]  }
  0x17   : > { %10677 = vmatpush3.bf16.msra.mxu1 %v11953_v4  ;;  %10646 = vmatprep.mubr.msk.bf16.mxu1 %vm433_vm2, %v11498_v10  ;;  %v11507_v18 = vld [vmem:[%s11963_s14 + $0x6c] sm:$0xff]   ;;  %v11508_v20 = vld [vmem:[%s11963_s14 + $0x74] ss:$0 sps:$4 sm:$0xff]   ;;  %v11509_v21 = vld [vmem:[%s11963_s14 + $0x78] sm:$0xff]  }
  0x18   : > { %10694 = vmatprep.subr.bf16.mxu0 %v11953_v4  ;;  %10712 = vmatprep.subr.bf16.mxu1 %v11953_v4  ;;  %v11515_v22 = vld [vmem:[%s11963_s14 + $0xb4] sm:$0xff]   ;;  %v11511_v24 = vld [vmem:[%s11963_s14 + $0x88] sm:$0xff]   ;;  %v11516_v25 = vld [vmem:[%s11963_s14 + $0xbc] sm:$0xff]  }
  0x19   : > { %v11517_v26 = vld [vmem:[%s11963_s14 + $0xc4] sm:$0xff]   ;;  %v11512_v27 = vld [vmem:[%s11963_s14 + $0x90] sm:$0xff]   ;;  %v11513_v28 = vld [vmem:[%s11963_s14 + $0x98] sm:$0xff]  }
  0x1a   : > { %v11518_v29 = vld [vmem:[%s11963_s14 + $0xcc] sm:$0xff]   ;;  %v11521_v30 = vld [vmem:[%s11963_s14 + $0xd4] sm:$0xff]   ;;  %v11514_v31 = vld [vmem:[%s11963_s14 + $0xa0] sm:$0xff]  }
  0x1b   : > { %v11519_v32 = vld [vmem:[%s11963_s14 + $0xa8] sm:$0xff]   ;;  %v11522_v33 = vld [vmem:[%s11963_s14 + $0xdc] sm:$0xff]   ;;  %v11520_v35 = vld [vmem:[%s11963_s14 + $0xb0] ss:$0 sps:$4 sm:$0xff]  }
  0x1c   : > { %v11525_v34 = vld [vmem:[%s11963_s14 + $0xe4] sm:$0xff]   ;;  %v11523_v36 = vld [vmem:[%s11963_s14 + $0xf0] sm:$0xff]   ;;  %v11526_v37 = vld [vmem:[%s11963_s14 + $0xec] ss:$0 sps:$4 sm:$0xff]  }
  0x1d   : > { %10629 = vmatmul.mubr.msk.bf16.gmra.mxu0 %vm433_vm2, %v11499_v11  ;;  %10647 = vmatmul.mubr.msk.bf16.gmra.mxu1 %vm433_vm2, %v11500_v12  ;;  %v11529_v38 = vld [vmem:[%s11963_s14 + $0x12c] sm:$0xff]   ;;  %v11524_v39 = vld [vmem:[%s11963_s14 + $0xf8] sm:$0xff]   ;;  %v11527_v40 = vld [vmem:[%s11963_s14 + $0x100] sm:$0xff]  }
  0x1e   : > { %10632 = vmatprep.mubr.msk.bf16.mxu0 %vm433_vm2, %v11501_v13  ;;  %10650 = vmatprep.mubr.msk.bf16.mxu1 %vm433_vm2, %v11502_v14  ;;  %v11530_v41 = vld [vmem:[%s11963_s14 + $0x134] sm:$0xff]   ;;  %v11533_v42 = vld [vmem:[%s11963_s14 + $0x13c] sm:$0xff]   ;;  %v11528_v44 = vld [vmem:[%s11963_s14 + $0x108] sm:$0xff]  }
  0x1f   : > { %v11531_v45 = vld [vmem:[%s11963_s14 + $0x110] sm:$0xff]   ;;  %v11534_v46 = vld [vmem:[%s11963_s14 + $0x144] sm:$0xff]   ;;  %v11532_v48 = vld [vmem:[%s11963_s14 + $0x118] sm:$0xff]  }
  0x20   : > { %v11535_v47 = vld [vmem:[%s11963_s14 + $0x14c] sm:$0xff]   ;;  %v11536_v49 = vld [vmem:[%s11963_s14 + $0x154] sm:$0xff]   ;;  %v11537_v50 = vld [vmem:[%s11963_s14 + $0x120] sm:$0xff]  }
  0x21   : > { %v11541_v51 = vld [vmem:[%s11963_s14 + $0x15c] sm:$0xff]   ;;  %v11538_v52 = vld [vmem:[%s11963_s14 + $0x128] ss:$0 sps:$4 sm:$0xff]   ;;  %v11542_v54 = vld [vmem:[%s11963_s14 + $0x164] ss:$0 sps:$4 sm:$0xff]  }
  0x22   : > { %v11539_v53 = vld [vmem:[%s11963_s14 + $0x168] sm:$0xff]   ;;  %v11540_v56 = vld [vmem:[%s11963_s14 + $0x170] sm:$0xff]   ;;  %v11543_v57 = vld [vmem:[%s11963_s14 + $0x178] sm:$0xff]  }
  0x23   : > { %v11545_v55 = vld [vmem:[%s11963_s14 + $0x1a4] sm:$0xff]   ;;  %v11546_v58 = vld [vmem:[%s11963_s14 + $0x1ac] sm:$0xff]   ;;  %v11549_v59 = vld [vmem:[%s11963_s14 + $0x1b4] sm:$0xff]  }
  0x24   : > { %v11544_v62 = vld [vmem:[%s11963_s14 + $0x180] sm:$0xff]   ;;  %v11547_v63 = vld [vmem:[%s11963_s14 + $0x188] sm:$0xff]   ;;  %v11551_v5 = vld [vmem:[%s11963_s14 + $0x198] sm:$0xff]  }
  0x25   : > { %10633 = vmatmul.mubr.msk.bf16.gmra.mxu0 %vm433_vm2, %v11503_v15  ;;  %10651 = vmatmul.mubr.msk.bf16.gmra.mxu1 %vm433_vm2, %v11504_v16  ;;  %v11550_v0 = vld [vmem:[%s11963_s14 + $0x1bc] sm:$0xff]   ;;  %v11553_v1 = vld [vmem:[%s11963_s14 + $0x1c4] sm:$0xff]   ;;  %v11554_v6 = vld [vmem:[%s11963_s14 + $0x1cc] sm:$0xff]  }
  0x26   : > { %10636 = vmatprep.mubr.msk.bf16.mxu0 %vm433_vm2, %v11505_v17  ;;  %10654 = vmatprep.mubr.msk.bf16.mxu1 %vm433_vm2, %v11507_v18  ;;  %v11566_v7 = vld [vmem:[%s11963_s14 + $0x1d4] sm:$0xff]   ;;  %v11552_v10 = vld [vmem:[%s11963_s14 + $0x1a0] ss:$0 sps:$4 sm:$0xff]   ;;  %v11567_v12 = vld [vmem:[%s11963_s14 + $0x1dc] ss:$0 sps:$4 sm:$0xff]  }
  0x27   : > { %v11569_v8 = vld [vmem:[%s14063_s3 + $0x58] sm:$0xff]   ;;  %v11573_v9 = vld [vmem:[%s14063_s3 + $0x50] sm:$0xff]   ;;  %v11555_v11 = vld [vmem:[%s11963_s14 + $0x1e0] sm:$0xff]  }
  0x28   : > { %v11575_v13 = vld [vmem:[%s14063_s3 + $0x48] sm:$0xff]   ;;  %v11579_v14 = vld [vmem:[%s14063_s3 + $0x40] sm:$0xff]   ;;  %v11557_v16 = vld [vmem:[%s11963_s14 + $0x1f0] sm:$0xff]  }
  0x29   : > { %v11556_v15 = vld [vmem:[%s11963_s14 + $0x1e8] sm:$0xff]   ;;  %v11562_v17 = vld [vmem:[%s14063_s3 + $0x30] sm:$0xff]   ;;  %v12144_v18 = vld [vmem:[%s14063_s3 + $0xb8] sm:$0xff]  }
  0x2d   : > { %10637 = vmatmul.mubr.msk.bf16.gmra.mxu0 %vm433_vm2, %v11506_v19  ;;  %10655 = vmatmul.mubr.msk.bf16.gmra.mxu1 %vm433_vm2, %v11508_v20  ;;  %v11564_v19 = vld [vmem:[%s14063_s3 + $0x28] sm:$0xff]   ;;  %v11558_v20 = vld [vmem:[%s11963_s14 + $0x1f8] sm:$0xff]  }
  0x2e   : > { %10660 = vmatprep.mubr.msk.bf16.mxu0 %vm433_vm2, %v11509_v21  ;;  %10678 = vmatprep.mubr.msk.bf16.mxu1 %vm433_vm2, %v11515_v22  ;;  %v11568_v21 = vld [vmem:[%s14063_s3 + $0x20] sm:$0xff]  }
  0x2f   : > { %v11570_v22 = vld [vmem:[%s11963_s14 + $0x200] sm:$0xff]  }
  0x35   : > { %10661 = vmatmul.mubr.msk.bf16.vlgmr.msra.gmra.mxu0 %vm433_vm2, %v11510_v23  ;;  %10679 = vmatmul.mubr.msk.bf16.vlgmr.msra.gmra.mxu1 %vm433_vm2, %v11516_v25  ;;  %v11572_v23 = vld [vmem:[%s14063_s3 + $0x18] sm:$0xff]   ;;  %v11574_v25 = vld [vmem:[%s14063_s3 + $0x10] sm:$0xff]  }
  0x36   : > { %10664 = vmatprep.mubr.msk.bf16.mxu0 %vm433_vm2, %v11511_v24  ;;  %10695 = vmatpush3.bf16.msra.mxu0 %v11953_v4  ;;  %v11571_v24 = vld [vmem:[%s11963_s14 + $0x208] sm:$0xff]  }
  0x37   : > { %10682 = vmatprep.mubr.msk.bf16.mxu1 %vm433_vm2, %v11517_v26  ;;  %10713 = vmatpush3.bf16.msra.mxu1 %v11953_v4  ;;  %v11576_v26 = vld [vmem:[%s11963_s14 + $0x210] sm:$0xff]  }
  0x38   : > { %10730 = vmatprep.subr.bf16.mxu0 %v11953_v4  ;;  %10748 = vmatprep.subr.bf16.mxu1 %v11953_v4 }
  0x3d   : > { %10665 = vmatmul.mubr.msk.bf16.gmra.mxu0 %vm433_vm2, %v11512_v27  ;;  %10683 = vmatmul.mubr.msk.bf16.gmra.mxu1 %vm433_vm2, %v11518_v29  ;;  %v11578_v27 = vld [vmem:[%s14063_s3 + $0x8] sm:$0xff]   ;;  %v11582_v29 = vld [vmem:[%s14063_s3] sm:$0xff]  }
  0x3e   : > { %10668 = vmatprep.mubr.msk.bf16.mxu0 %vm433_vm2, %v11513_v28  ;;  %10686 = vmatprep.mubr.msk.bf16.mxu1 %vm433_vm2, %v11521_v30  ;;  %v11577_v28 = vld [vmem:[%s11963_s14 + $0x218] ss:$0 sps:$4 sm:$0xff]  }
  0x3f   : > { %v12180_v30 = vld [vmem:[%s14063_s3 + $0xf8] sm:$0xff]  }
  0x45   : > { %10669 = vmatmul.mubr.msk.bf16.gmra.mxu0 %vm433_vm2, %v11514_v31  ;;  %10687 = vmatmul.mubr.msk.bf16.gmra.mxu1 %vm433_vm2, %v11522_v33  ;;  %v12186_v31 = vld [vmem:[%s14062_s2] ss:$0 sm:$0xff] }
  0x46   : > { %10672 = vmatprep.mubr.msk.bf16.mxu0 %vm433_vm2, %v11519_v32  ;;  %10690 = vmatprep.mubr.msk.bf16.mxu1 %vm433_vm2, %v11525_v34 }
  0x4d   : > { %10673 = vmatmul.mubr.msk.bf16.gmra.mxu0 %vm433_vm2, %v11520_v35  ;;  %10691 = vmatmul.mubr.msk.bf16.gmra.mxu1 %vm433_vm2, %v11526_v37 }
  0x4e   : > { %10696 = vmatprep.mubr.msk.bf16.mxu0 %vm433_vm2, %v11523_v36  ;;  %10714 = vmatprep.mubr.msk.bf16.mxu1 %vm433_vm2, %v11529_v38 }
  0x55   : > { %10697 = vmatmul.mubr.msk.bf16.vlgmr.msra.gmra.mxu0 %vm433_vm2, %v11524_v39  ;;  %10715 = vmatmul.mubr.msk.bf16.vlgmr.msra.gmra.mxu1 %vm433_vm2, %v11530_v41 }
  0x56   : > { %10700 = vmatprep.mubr.msk.bf16.mxu0 %vm433_vm2, %v11527_v40  ;;  %10718 = vmatprep.mubr.msk.bf16.mxu1 %vm433_vm2, %v11533_v42 }
  0x57   : > { %10731 = vmatpush3.bf16.msra.mxu0 %v11953_v4  ;;  %10749 = vmatpush3.bf16.msra.mxu1 %v11953_v4 }
  0x58   : > { %10766 = vmatprep.subr.bf16.mxu0 %v11953_v4  ;;  %10784 = vmatprep.subr.bf16.mxu1 %v11559_v43 }
  0x5d   : > { %10701 = vmatmul.mubr.msk.bf16.gmra.mxu0 %vm433_vm2, %v11528_v44  ;;  %10719 = vmatmul.mubr.msk.bf16.gmra.mxu1 %vm433_vm2, %v11534_v46 }
  0x5e   : > { %10704 = vmatprep.mubr.msk.bf16.mxu0 %vm433_vm2, %v11531_v45  ;;  %10722 = vmatprep.mubr.msk.bf16.mxu1 %vm433_vm2, %v11535_v47 }
  0x65   : > { %10705 = vmatmul.mubr.msk.bf16.gmra.mxu0 %vm433_vm2, %v11532_v48  ;;  %10723 = vmatmul.mubr.msk.bf16.gmra.mxu1 %vm433_vm2, %v11536_v49 }
  0x66   : > { %10708 = vmatprep.mubr.msk.bf16.mxu0 %vm433_vm2, %v11537_v50  ;;  %10726 = vmatprep.mubr.msk.bf16.mxu1 %vm433_vm2, %v11541_v51 }
  0x6d   : > { %10709 = vmatmul.mubr.msk.bf16.gmra.mxu0 %vm433_vm2, %v11538_v52  ;;  %10727 = vmatmul.mubr.msk.bf16.gmra.mxu1 %vm433_vm2, %v11542_v54 }
  0x6e   : > { %10732 = vmatprep.mubr.msk.bf16.mxu0 %vm433_vm2, %v11539_v53  ;;  %10750 = vmatprep.mubr.msk.bf16.mxu1 %vm433_vm2, %v11545_v55 }
  0x75   : > { %10733 = vmatmul.mubr.msk.bf16.vlgmr.msra.gmra.mxu0 %vm433_vm2, %v11540_v56  ;;  %10751 = vmatmul.mubr.msk.bf16.vlgmr.msra.gmra.mxu1 %vm433_vm2, %v11546_v58 }
  0x76   : > { %10736 = vmatprep.mubr.msk.bf16.mxu0 %vm433_vm2, %v11543_v57  ;;  %10767 = vmatpush3.bf16.msra.mxu0 %v11953_v4  ;;  %v11548_v4 = vld [vmem:[%s11963_s14 + $0x190] sm:$0xff]  }
  0x77   : > { %10754 = vmatprep.mubr.msk.bf16.mxu1 %vm433_vm2, %v11549_v59  ;;  %10785 = vmatpush3.bf16.msra.mxu1 %v11559_v43 }
  0x78   : > { %10808 = vmatprep.subr.bf16.mxu0 %v11560_v60  ;;  %10786 = vmatprep.subr.bf16.mxu1 %v11561_v61 }
  0x7b   : > { %10787 = vmatpush3.bf16.msra.mxu1 %v11561_v61 }
  0x7c   : > { %10788 = vmatprep.subr.bf16.mxu1 %v11563_v2 }
  0x7d   : > { %10737 = vmatmul.mubr.msk.bf16.gmra.mxu0 %vm433_vm2, %v11544_v62  ;;  %10755 = vmatmul.mubr.msk.bf16.gmra.mxu1 %vm433_vm2, %v11550_v0 }
  0x7e   : > { %10740 = vmatprep.mubr.msk.bf16.mxu0 %vm433_vm2, %v11547_v63  ;;  %10758 = vmatprep.mubr.msk.bf16.mxu1 %vm433_vm2, %v11553_v1 }
  0x7f   : > { %10789 = vmatpush3.bf16.msra.mxu1 %v11563_v2 }
  0x80   : > { %10790 = vmatprep.subr.bf16.mxu1 %v11565_v3 }
  0x83   : > { %10791 = vmatpush3.bf16.msra.mxu1 %v11565_v3 }
  0x84   : > { %10792 = vmatprep.subr.bf16.mxu1 %v11569_v8 }
  0x85   : > { %10741 = vmatmul.mubr.msk.bf16.gmra.mxu0 %vm433_vm2, %v11548_v4  ;;  %10759 = vmatmul.mubr.msk.bf16.gmra.mxu1 %vm433_vm2, %v11554_v6 }
  0x86   : > { %10744 = vmatprep.mubr.msk.bf16.mxu0 %vm433_vm2, %v11551_v5  ;;  %10762 = vmatprep.mubr.msk.bf16.mxu1 %vm433_vm2, %v11566_v7 }
  0x87   : > { %10793 = vmatpush3.bf16.msra.mxu1 %v11569_v8 }
  0x88   : > { %10794 = vmatprep.subr.bf16.mxu1 %v11573_v9 }
  0x8b   : > { %10795 = vmatpush3.bf16.msra.mxu1 %v11573_v9 }
  0x8c   : > { %10796 = vmatprep.subr.bf16.mxu1 %v11575_v13 }
  0x8d   : > { %10745 = vmatmul.mubr.msk.bf16.gmra.mxu0 %vm433_vm2, %v11552_v10  ;;  %10763 = vmatmul.mubr.msk.bf16.gmra.mxu1 %vm433_vm2, %v11567_v12 }
  0x8e   : > { %10768 = vmatprep.mubr.msk.bf16.mxu0 %vm433_vm2, %v11555_v11 }
  0x8f   : > { %10797 = vmatpush3.bf16.msra.mxu1 %v11575_v13 }
  0x90   : > { %10798 = vmatprep.subr.bf16.mxu1 %v11579_v14 }
  0x93   : > { %10799 = vmatpush3.bf16.msra.mxu1 %v11579_v14 }
  0x94   : > { %10832 = vmatprep.subr.bf16.mxu1 %v12144_v18 }
  0x95   : > { %10769 = vmatmul.mubr.msk.bf16.vlgmr.msra.gmra.mxu0 %vm433_vm2, %v11556_v15 }
  0x96   : > { %10772 = vmatprep.mubr.msk.bf16.mxu0 %vm433_vm2, %v11557_v16  ;;  %10809 = vmatpush3.bf16.msra.mxu0 %v11560_v60 }
  0x97   : > { %10810 = vmatprep.subr.bf16.mxu0 %v11562_v17 }
  0x9a   : > { %10811 = vmatpush3.bf16.msra.mxu0 %v11562_v17 }
  0x9b   : > { %10812 = vmatprep.subr.bf16.mxu0 %v11564_v19 }
  0x9d   : > { %10773 = vmatmul.mubr.msk.bf16.gmra.mxu0 %vm433_vm2, %v11558_v20 }
  0x9e   : > { %10813 = vmatpush3.bf16.msra.mxu0 %v11564_v19  ;;  %10776 = vmatprep.mubr.msk.bf16.mxu0 %vm433_vm2, %v11570_v22 }
  0x9f   : > { %10814 = vmatprep.subr.bf16.mxu0 %v11568_v21 }
  0xa2   : > { %10815 = vmatpush3.bf16.msra.mxu0 %v11568_v21 }
  0xa3   : > { %10816 = vmatprep.subr.bf16.mxu0 %v11572_v23 }
  0xa5   : > { %10777 = vmatmul.mubr.msk.bf16.gmra.mxu0 %vm433_vm2, %v11571_v24 }
  0xa6   : > { %10817 = vmatpush3.bf16.msra.mxu0 %v11572_v23  ;;  %10780 = vmatprep.mubr.msk.bf16.mxu0 %vm433_vm2, %v11576_v26 }
  0xa7   : > { %10818 = vmatprep.subr.bf16.mxu0 %v11574_v25 }
  0xaa   : > { %10819 = vmatpush3.bf16.msra.mxu0 %v11574_v25 }
  0xab   : > { %10820 = vmatprep.subr.bf16.mxu0 %v11578_v27 }
  0xad   : > { %10781 = vmatmul.mubr.msk.bf16.gmra.mxu0 %vm433_vm2, %v11577_v28 }
  0xae   : > { %10821 = vmatpush3.bf16.msra.mxu0 %v11578_v27 }
  0xaf   : > { %10822 = vmatprep.subr.bf16.mxu0 %v11582_v29 }
  0xb2   : > { %10823 = vmatpush3.bf16.msra.mxu0 %v11582_v29 }
  0xb3   : > { %10856 = vmatprep.subr.bf16.mxu0 %v12180_v30 }
  0xd5   : > { %v10626_v32 = vpop.f32.mrf.mxu0  ;;  %v10644_v33 = vpop.f32.mrf.mxu1 }
  0xd6   : > { %v508_v35 = vadd.f32 %v10626_v32, %v12186_v31  ;;  %v773_v42 = vadd.f32 %v10644_v33, %v12186_v31 }
  0xd7   : > { %v499_v34 = vpop.f32.mrf.mxu0  ;;  %v764_v36 = vpop.f32.mrf.mxu1 }
  0xd8   : > { %v765_v37 = vadd.f32 %v12186_v31, %v764_v36  ;;  %v500_v39 = vadd.f32 %v12186_v31, %v499_v34  ;;  %v563_v45 = vmax.f32 %v508_v35, 0.0  ;;  %v828_v56 = vmax.f32 %v773_v42, 0.0 }
  0xd9   : > { %v10627_v38 = vpop.f32.mrf.mxu0  ;;  %v10645_v41 = vpop.f32.mrf.mxu1 }
  0xda   : > { %v511_v40 = vadd.f32 %v10627_v38, %v12186_v31  ;;  %v826_v43 = vmax.f32 %v765_v37, 0.0  ;;  %v561_v52 = vmax.f32 %v500_v39, 0.0  ;;  %v776_v57 = vadd.f32 %v10645_v41, %v12186_v31 }
  0xdb   : > { %v502_v44 = vpop.f32.mrf.mxu0  ;;  %v767_v48 = vpop.f32.mrf.mxu1 }
  0xdc   : > { %v564_v46 = vmax.f32 %v511_v40, 0.0  ;;  %v503_v47 = vadd.f32 %v12186_v31, %v502_v44  ;;  %v9712_v49 = vpack.c.bf16 %v826_v43, %v826_v43  ;;  %v768_v50 = vadd.f32 %v12186_v31, %v767_v48 }
  0xdd   : > { %v10630_v51 = vpop.f32.mrf.mxu0  ;;  %v10648_v55 = vpop.f32.mrf.mxu1  ;;  %v829_v5 = vmax.f32 %v776_v57, 0.0 }
  0xde   : > { %v9840_v53 = vpack.c.bf16 %v564_v46, %v563_v45  ;;  %v562_v54 = vmax.f32 %v503_v47, 0.0  ;;  %903 = vst [vmem:[#allocation2 + $0x3c] sm:$0xf] %v9712_v49  ;;  %v827_v58 = vmax.f32 %v768_v50, 0.0  ;;  %v524_v61 = vadd.f32 %v10630_v51, %v12186_v31 }
  0xdf   : > { %v515_v59 = vpop.f32.mrf.mxu0  ;;  %v780_v62 = vpop.f32.mrf.mxu1  ;;  %v789_v6 = vadd.f32 %v10648_v55, %v12186_v31 }
  0xe0   : > { %10147 = vst [vmem:[#allocation2 + $0x8] sm:$0xff] %v9840_v53   ;;  %v9835_v60 = vpack.c.bf16 %v562_v54, %v561_v52  ;;  %v9870_v63 = vpack.c.bf16 %v828_v56, %v827_v58  ;;  %v781_v0 = vadd.f32 %v12186_v31, %v780_v62  ;;  %v516_v2 = vadd.f32 %v12186_v31, %v515_v59  ;;  %v11588_v52 = vld [vmem:[%s14063_s3 + $0xb0] sm:$0xff]  }
  0xe1   : > { %v10631_v1 = vpop.f32.mrf.mxu0  ;;  %v10649_v4 = vpop.f32.mrf.mxu1  ;;  %v567_v9 = vmax.f32 %v524_v61, 0.0  ;;  %v832_v21 = vmax.f32 %v789_v6, 0.0 }
  0xe2   : > { %9836 = vst [vmem:[#allocation2] sm:$0xff] %v9835_v60   ;;  %v527_v3 = vadd.f32 %v10631_v1, %v12186_v31  ;;  %10153 = vst [vmem:[#allocation2 + $0x40] sm:$0xff] %v9870_v63   ;;  %v830_v7 = vmax.f32 %v781_v0, 0.0  ;;  %v565_v16 = vmax.f32 %v516_v2, 0.0  ;;  %v792_v22 = vadd.f32 %v10649_v4, %v12186_v31  ;;  %v11589_v60 = vld [vmem:[%s14063_s3 + $0xf0] sm:$0xff]   ;;  %v11591_v1 = vld [vmem:[%s14063_s3 + $0xa8] sm:$0xff]  }
  0xe3   : > { %v518_v8 = vpop.f32.mrf.mxu0  ;;  %v783_v12 = vpop.f32.mrf.mxu1 }
  0xe4   : > { %v568_v10 = vmax.f32 %v527_v3, 0.0  ;;  %v519_v11 = vadd.f32 %v12186_v31, %v518_v8  ;;  %v9875_v13 = vpack.c.bf16 %v830_v7, %v829_v5  ;;  %v784_v14 = vadd.f32 %v12186_v31, %v783_v12 }
  0xe5   : > { %v10634_v15 = vpop.f32.mrf.mxu0  ;;  %v10652_v20 = vpop.f32.mrf.mxu1  ;;  %v833_v39 = vmax.f32 %v792_v22, 0.0 }
  0xe6   : > { %v9850_v17 = vpack.c.bf16 %v568_v10, %v567_v9  ;;  %v566_v19 = vmax.f32 %v519_v11, 0.0  ;;  %10154 = vst [vmem:[#allocation2 + $0x48] sm:$0xff] %v9875_v13   ;;  %v831_v23 = vmax.f32 %v784_v14, 0.0  ;;  %v540_v26 = vadd.f32 %v10634_v15, %v12186_v31 }
  0xe7   : > { %v531_v24 = vpop.f32.mrf.mxu0  ;;  %v796_v27 = vpop.f32.mrf.mxu1  ;;  %v805_v29 = vadd.f32 %v10652_v20, %v12186_v31  ;;  %v11592_v20 = vld [vmem:[%s14063_s3 + $0xe8] sm:$0xff]  }
  0xe8   : > { %10149 = vst [vmem:[#allocation2 + $0x18] sm:$0xff] %v9850_v17   ;;  %v9845_v25 = vpack.c.bf16 %v566_v19, %v565_v16  ;;  %v9880_v28 = vpack.c.bf16 %v832_v21, %v831_v23  ;;  %v532_v32 = vadd.f32 %v12186_v31, %v531_v24  ;;  %v797_v33 = vadd.f32 %v12186_v31, %v796_v27  ;;  %v11596_v21 = vld [vmem:[%s14063_s3 + $0xa0] sm:$0xff]  }
  0xe9   : > { %v10635_v34 = vpop.f32.mrf.mxu0  ;;  %v11581_v35 = vld [vmem:[#allocation2] sm:$0xff]   ;;  %v10653_v37 = vpop.f32.mrf.mxu1  ;;  %v571_v42 = vmax.f32 %v540_v26, 0.0  ;;  %v836_v47 = vmax.f32 %v805_v29, 0.0 }
  0xea   : > { %10148 = vst [vmem:[#allocation2 + $0x10] sm:$0xff] %v9845_v25   ;;  %v543_v36 = vadd.f32 %v10635_v34, %v12186_v31  ;;  %v11580_v38 = vld [vmem:[#allocation2 + $0x3c] sm:$0xff]   ;;  %10155 = vst [vmem:[#allocation2 + $0x50] sm:$0xff] %v9880_v28   ;;  %v834_v40 = vmax.f32 %v797_v33, 0.0  ;;  %10824 = vmatprep.mubr.bf16.mxu0 %v11581_v35  ;;  %v808_v44 = vadd.f32 %v10653_v37, %v12186_v31  ;;  %v569_v48 = vmax.f32 %v532_v32, 0.0 }
  0xeb   : > { %v534_v41 = vpop.f32.mrf.mxu0  ;;  %v799_v46 = vpop.f32.mrf.mxu1  ;;  %10800 = vmatprep.mubr.bf16.mxu1 %v11580_v38  ;;  %v11597_v28 = vld [vmem:[%s14063_s3 + $0xe0] sm:$0xff]   ;;  %v11598_v35 = vld [vmem:[%s14063_s3 + $0x98] sm:$0xff]  }
  0xec   : > { %v572_v43 = vmax.f32 %v543_v36, 0.0  ;;  %v535_v45 = vadd.f32 %v12186_v31, %v534_v41  ;;  %v9885_v49 = vpack.c.bf16 %v834_v40, %v833_v39  ;;  %v800_v50 = vadd.f32 %v12186_v31, %v799_v46 }
  0xed   : > { %v10638_v51 = vpop.f32.mrf.mxu0  ;;  %v10656_v56 = vpop.f32.mrf.mxu1  ;;  %v11583_v57 = vld [vmem:[#allocation2 + $0x48] sm:$0xff]   ;;  %v837_v61 = vmax.f32 %v808_v44, 0.0 }
  0xee   : > { %v9860_v53 = vpack.c.bf16 %v572_v43, %v571_v42  ;;  %v570_v54 = vmax.f32 %v535_v45, 0.0  ;;  %v556_v55 = vadd.f32 %v10638_v51, %v12186_v31  ;;  %10156 = vst [vmem:[#allocation2 + $0x58] sm:$0xff] %v9885_v49   ;;  %v835_v58 = vmax.f32 %v800_v50, 0.0  ;;  %10801 = vmatmul.mubr.bf16.vlgmr.msra.gmra.mxu1 %v11583_v57  ;;  %v11599_v50 = vld [vmem:[%s14063_s3 + $0xd8] sm:$0xff]  }
  0xef   : > { %v547_v59 = vpop.f32.mrf.mxu0  ;;  %v812_v0 = vpop.f32.mrf.mxu1  ;;  %v821_v4 = vadd.f32 %v10656_v56, %v12186_v31  ;;  %10833 = vmatpush3.bf16.msra.mxu1 %v12144_v18  ;;  %v11587_v10 = vld [vmem:[#allocation2 + $0x18] sm:$0xff]  }
  0xf0   : > { %10151 = vst [vmem:[#allocation2 + $0x28] sm:$0xff] %v9860_v53   ;;  %v9855_v62 = vpack.c.bf16 %v570_v54, %v569_v48  ;;  %v575_v63 = vmax.f32 %v556_v55, 0.0  ;;  %v9890_v2 = vpack.c.bf16 %v836_v47, %v835_v58  ;;  %v548_v3 = vadd.f32 %v12186_v31, %v547_v59  ;;  %10834 = vmatprep.subr.bf16.mxu1 %v11588_v52 }
  0xf1   : > { %v10639_v5 = vpop.f32.mrf.mxu0  ;;  %v813_v6 = vadd.f32 %v12186_v31, %v812_v0  ;;  %v11586_v7 = vld [vmem:[#allocation2 + $0xc] sm:$0xff]   ;;  %v10657_v9 = vpop.f32.mrf.mxu1  ;;  %v840_v16 = vmax.f32 %v821_v4, 0.0 }
  0xf2   : > { %10150 = vst [vmem:[#allocation2 + $0x20] sm:$0xff] %v9855_v62   ;;  %v9711_v8 = vpack.c.bf16 %v575_v63, %v575_v63  ;;  %10157 = vst [vmem:[#allocation2 + $0x60] sm:$0xff] %v9890_v2   ;;  %10825 = vmatmul.mubr.bf16.vlgmr.msra.gmra.mxu0 %v11586_v7  ;;  %v573_v15 = vmax.f32 %v548_v3, 0.0  ;;  %v11595_v43 = vld [vmem:[#allocation2 + $0xc] sm:$0xff]  }
  0xf3   : > { %v838_v11 = vmax.f32 %v813_v6, 0.0  ;;  %v550_v12 = vpop.f32.mrf.mxu0  ;;  %10857 = vmatpush3.bf16.msra.mxu0 %v12180_v30  ;;  %v815_v14 = vpop.f32.mrf.mxu1  ;;  %10828 = vmatprep.mubr.bf16.mxu0 %v11587_v10  ;;  %v11601_v2 = vld [vmem:[%s14063_s3 + $0xd0] sm:$0xff]  }
  0xf4   : > { %651 = vst [vmem:[#allocation2 + $0x38] sm:$0xf] %v9711_v8  ;;  %v551_v13 = vadd.f32 %v12186_v31, %v550_v12  ;;  %v816_v18 = vadd.f32 %v12186_v31, %v815_v14  ;;  %10858 = vmatprep.subr.bf16.mxu0 %v11589_v60  ;;  %10835 = vmatpush3.bf16.msra.mxu1 %v11588_v52 }
  0xf5   : > { %v9895_v17 = vpack.c.bf16 %v838_v11, %v837_v61  ;;  %v10662_v19 = vpop.f32.mrf.mxu0  ;;  %v11590_v30 = vld [vmem:[#allocation2 + $0x54] sm:$0xff]   ;;  %10836 = vmatprep.subr.bf16.mxu1 %v11591_v1  ;;  %v10680_v23 = vpop.f32.mrf.mxu1  ;;  %v11602_v11 = vld [vmem:[%s14063_s3 + $0x88] sm:$0xff]  }
  0xf6   : > { %v574_v22 = vmax.f32 %v551_v13, 0.0  ;;  %v839_v24 = vmax.f32 %v816_v18, 0.0  ;;  %v1039_v27 = vadd.f32 %v10662_v19, %v12186_v31  ;;  %10804 = vmatprep.mubr.bf16.mxu1 %v11590_v30  ;;  %v1305_v36 = vadd.f32 %v10680_v23, %v12186_v31  ;;  %v11603_v18 = vld [vmem:[%s14063_s3 + $0xc8] sm:$0xff]  }
  0xf7   : > { %10158 = vst [vmem:[#allocation2 + $0x68] sm:$0xff] %v9895_v17   ;;  %v1030_v25 = vpop.f32.mrf.mxu0  ;;  %10859 = vmatpush3.bf16.msra.mxu0 %v11589_v60  ;;  %v1296_v29 = vpop.f32.mrf.mxu1  ;;  %v11600_v60 = vld [vmem:[%s14063_s3 + $0x90] sm:$0xff]  }
  0xf8   : > { %v9865_v26 = vpack.c.bf16 %v574_v22, %v573_v15  ;;  %v9900_v32 = vpack.c.bf16 %v840_v16, %v839_v24  ;;  %10860 = vmatprep.subr.bf16.mxu0 %v11592_v20  ;;  %10837 = vmatpush3.bf16.msra.mxu1 %v11591_v1  ;;  %v1297_v37 = vadd.f32 %v12186_v31, %v1296_v29  ;;  %v1094_v45 = vmax.f32 %v1039_v27, 0.0 }
  0xf9   : > { %v10663_v33 = vpop.f32.mrf.mxu0  ;;  %v11594_v34 = vld [vmem:[#allocation2 + $0x24] sm:$0xff]   ;;  %v1031_v38 = vadd.f32 %v12186_v31, %v1030_v25  ;;  %10838 = vmatprep.subr.bf16.mxu1 %v11596_v21  ;;  %v10681_v41 = vpop.f32.mrf.mxu1  ;;  %v1360_v51 = vmax.f32 %v1305_v36, 0.0 }
  0xfa   : > { %10152 = vst [vmem:[#allocation2 + $0x30] sm:$0xff] %v9865_v26   ;;  %v1042_v39 = vadd.f32 %v10663_v33, %v12186_v31  ;;  %v11593_v40 = vld [vmem:[#allocation2 + $0x60] sm:$0xff]   ;;  %10159 = vst [vmem:[#allocation2 + $0x70] sm:$0xff] %v9900_v32   ;;  %10829 = vmatmul.mubr.bf16.gmra.mxu0 %v11594_v34  ;;  %v1358_v44 = vmax.f32 %v1297_v37, 0.0  ;;  %v1308_v53 = vadd.f32 %v10681_v41, %v12186_v31 }
  0xfb   : > { %v1033_v42 = vpop.f32.mrf.mxu0  ;;  %10805 = vmatmul.mubr.bf16.gmra.mxu1 %v11593_v40  ;;  %10861 = vmatpush3.bf16.msra.mxu0 %v11592_v20  ;;  %v1299_v48 = vpop.f32.mrf.mxu1  ;;  %v1092_v55 = vmax.f32 %v1031_v38, 0.0  ;;  %v11606_v34 = vld [vmem:[%s14063_s3 + $0xc0] sm:$0xff]  }
  0xfc   : > { %v1095_v46 = vmax.f32 %v1042_v39, 0.0  ;;  %v1034_v47 = vadd.f32 %v12186_v31, %v1033_v42  ;;  %10872 = vmatprep.mubr.bf16.mxu0 %v11595_v43  ;;  %10862 = vmatprep.subr.bf16.mxu0 %v11597_v28  ;;  %v9742_v52 = vpack.c.bf16 %v1358_v44, %v1358_v44  ;;  %v1300_v54 = vadd.f32 %v12186_v31, %v1299_v48 }
  0xfd   : > { %v10666_v49 = vpop.f32.mrf.mxu0  ;;  %10839 = vmatpush3.bf16.msra.mxu1 %v11596_v21  ;;  %v10684_v58 = vpop.f32.mrf.mxu1  ;;  %v1361_v3 = vmax.f32 %v1308_v53, 0.0 }
  0xfe   : > { %v9910_v56 = vpack.c.bf16 %v1095_v46, %v1094_v45  ;;  %v1093_v57 = vmax.f32 %v1034_v47, 0.0  ;;  %10840 = vmatprep.subr.bf16.mxu1 %v11598_v35  ;;  %1435 = vst [vmem:[#allocation2 + $0xb4] sm:$0xf] %v9742_v52  ;;  %v1359_v61 = vmax.f32 %v1300_v54, 0.0  ;;  %v1055_v63 = vadd.f32 %v10666_v49, %v12186_v31  ;;  %v11608_v46 = vld [vmem:[%s14063_s3 + $0x138] sm:$0xff]  }
  0xff   : > { %v1046_v59 = vpop.f32.mrf.mxu0  ;;  %10863 = vmatpush3.bf16.msra.mxu0 %v11597_v28  ;;  %v1312_v0 = vpop.f32.mrf.mxu1  ;;  %v1321_v5 = vadd.f32 %v10684_v58, %v12186_v31  ;;  %v11605_v28 = vld [vmem:[%s14063_s3 + $0x80] sm:$0xff]   ;;  %v11609_v52 = vld [vmem:[%s14063_s3 + $0x178] sm:$0xff]  }
 0x100   : > { %10160 = vst [vmem:[#allocation2 + $0x80] sm:$0xff] %v9910_v56   ;;  %v9905_v62 = vpack.c.bf16 %v1093_v57, %v1092_v55  ;;  %10864 = vmatprep.subr.bf16.mxu0 %v11599_v50  ;;  %v9940_v4 = vpack.c.bf16 %v1360_v51, %v1359_v61  ;;  %v1313_v6 = vadd.f32 %v12186_v31, %v1312_v0  ;;  %v1098_v13 = vmax.f32 %v1055_v63, 0.0  ;;  %v11613_v0 = vld [vmem:[%s14063_s3 + $0x130] sm:$0xff]  }
 0x101   : > { %v10667_v1 = vpop.f32.mrf.mxu0  ;;  %v1047_v7 = vadd.f32 %v12186_v31, %v1046_v59  ;;  %10841 = vmatpush3.bf16.msra.mxu1 %v11598_v35  ;;  %v10685_v9 = vpop.f32.mrf.mxu1  ;;  %v1364_v19 = vmax.f32 %v1321_v5, 0.0 }
 0x102   : > { %9906 = vst [vmem:[#allocation2 + $0x78] sm:$0xff] %v9905_v62   ;;  %v1058_v8 = vadd.f32 %v10667_v1, %v12186_v31  ;;  %10842 = vmatprep.subr.bf16.mxu1 %v11600_v60  ;;  %10166 = vst [vmem:[#allocation2 + $0xb8] sm:$0xff] %v9940_v4   ;;  %v1362_v12 = vmax.f32 %v1313_v6, 0.0  ;;  %v1324_v21 = vadd.f32 %v10685_v9, %v12186_v31  ;;  %v11614_v1 = vld [vmem:[%s14063_s3 + $0x170] sm:$0xff]  }
 0x103   : > { %v1049_v10 = vpop.f32.mrf.mxu0  ;;  %10865 = vmatpush3.bf16.msra.mxu0 %v11599_v50  ;;  %v1315_v16 = vpop.f32.mrf.mxu1  ;;  %v1096_v30 = vmax.f32 %v1047_v7, 0.0 }
 0x104   : > { %v1099_v14 = vmax.f32 %v1058_v8, 0.0  ;;  %v1050_v15 = vadd.f32 %v12186_v31, %v1049_v10  ;;  %10866 = vmatprep.subr.bf16.mxu0 %v11601_v2  ;;  %v9945_v20 = vpack.c.bf16 %v1362_v12, %v1361_v3  ;;  %v1316_v22 = vadd.f32 %v12186_v31, %v1315_v16  ;;  %v11607_v3 = vld [vmem:[#allocation2 + $0x18] sm:$0xff]   ;;  %v11611_v10 = vld [vmem:[#allocation2 + $0x24] sm:$0xff]  }
 0x105   : > { %v10670_v17 = vpop.f32.mrf.mxu0  ;;  %10843 = vmatpush3.bf16.msra.mxu1 %v11600_v60  ;;  %v10688_v26 = vpop.f32.mrf.mxu1  ;;  %v1365_v38 = vmax.f32 %v1324_v21, 0.0  ;;  %v11616_v16 = vld [vmem:[%s14063_s3 + $0x128] sm:$0xff]  }
 0x106   : > { %v9920_v23 = vpack.c.bf16 %v1099_v14, %v1098_v13  ;;  %v1097_v24 = vmax.f32 %v1050_v15, 0.0  ;;  %v1071_v25 = vadd.f32 %v10670_v17, %v12186_v31  ;;  %10844 = vmatprep.subr.bf16.mxu1 %v11602_v11  ;;  %10167 = vst [vmem:[#allocation2 + $0xc0] sm:$0xff] %v9945_v20   ;;  %v1363_v29 = vmax.f32 %v1316_v22, 0.0  ;;  %v11617_v21 = vld [vmem:[%s14063_s3 + $0x168] sm:$0xff]  }
 0x107   : > { %v1062_v27 = vpop.f32.mrf.mxu0  ;;  %10867 = vmatpush3.bf16.msra.mxu0 %v11601_v2  ;;  %v1328_v35 = vpop.f32.mrf.mxu1  ;;  %v1337_v40 = vadd.f32 %v10688_v26, %v12186_v31  ;;  %v11620_v26 = vld [vmem:[%s14063_s3 + $0x120] sm:$0xff]  }
 0x108   : > { %10162 = vst [vmem:[#allocation2 + $0x90] sm:$0xff] %v9920_v23   ;;  %v9915_v32 = vpack.c.bf16 %v1097_v24, %v1096_v30  ;;  %v1063_v33 = vadd.f32 %v12186_v31, %v1062_v27  ;;  %10868 = vmatprep.subr.bf16.mxu0 %v11603_v18  ;;  %v9950_v39 = vpack.c.bf16 %v1364_v19, %v1363_v29  ;;  %v1102_v42 = vmax.f32 %v1071_v25, 0.0  ;;  %v11619_v25 = vld [vmem:[#allocation2 + $0x48] sm:$0xff]   ;;  %v11621_v27 = vld [vmem:[%s14063_s3 + $0x160] sm:$0xff]  }
 0x109   : > { %v10671_v36 = vpop.f32.mrf.mxu0  ;;  %v11604_v37 = vld [vmem:[#allocation2 + $0x78] sm:$0xff]   ;;  %v1329_v41 = vadd.f32 %v12186_v31, %v1328_v35  ;;  %10845 = vmatpush3.bf16.msra.mxu1 %v11602_v11  ;;  %v10689_v44 = vpop.f32.mrf.mxu1  ;;  %v1368_v54 = vmax.f32 %v1337_v40, 0.0 }
 0x10a   : > { %10161 = vst [vmem:[#allocation2 + $0x88] sm:$0xff] %v9915_v32   ;;  %v1074_v43 = vadd.f32 %v10671_v36, %v12186_v31  ;;  %10848 = vmatprep.mubr.bf16.mxu1 %v11604_v37  ;;  %10846 = vmatprep.subr.bf16.mxu1 %v11605_v28  ;;  %10168 = vst [vmem:[#allocation2 + $0xc8] sm:$0xff] %v9950_v39   ;;  %v1100_v48 = vmax.f32 %v1063_v33, 0.0  ;;  %v1340_v56 = vadd.f32 %v10689_v44, %v12186_v31  ;;  %v11615_v32 = vld [vmem:[#allocation2 + $0x30] sm:$0xff]  }
 0x10b   : > { %v1065_v45 = vpop.f32.mrf.mxu0  ;;  %v1366_v47 = vmax.f32 %v1329_v41, 0.0  ;;  %10869 = vmatpush3.bf16.msra.mxu0 %v11603_v18  ;;  %v1331_v51 = vpop.f32.mrf.mxu1  ;;  %v11631_v40 = vld [vmem:[#allocation2 + $0xb4] sm:$0xff]  }
 0x10c   : > { %v1103_v49 = vmax.f32 %v1074_v43, 0.0  ;;  %v1066_v50 = vadd.f32 %v12186_v31, %v1065_v45  ;;  %10870 = vmatprep.subr.bf16.mxu0 %v11606_v34  ;;  %v1332_v57 = vadd.f32 %v12186_v31, %v1331_v51  ;;  %v1369_v6 = vmax.f32 %v1340_v56, 0.0 }
 0x10d   : > { %v10674_v53 = vpop.f32.mrf.mxu0  ;;  %v9955_v55 = vpack.c.bf16 %v1366_v47, %v1365_v38  ;;  %10847 = vmatpush3.bf16.msra.mxu1 %v11605_v28  ;;  %v10692_v60 = vpop.f32.mrf.mxu1 }
 0x10e   : > { %v9930_v58 = vpack.c.bf16 %v1103_v49, %v1102_v42  ;;  %v1101_v59 = vmax.f32 %v1066_v50, 0.0  ;;  %10880 = vmatprep.subr.bf16.mxu1 %v11608_v46  ;;  %v1367_v62 = vmax.f32 %v1332_v57, 0.0  ;;  %v1353_v8 = vadd.f32 %v10692_v60, %v12186_v31 }
 0x10f   : > { %v1078_v61 = vpop.f32.mrf.mxu0  ;;  %10169 = vst [vmem:[#allocation2 + $0xd0] sm:$0xff] %v9955_v55   ;;  %10871 = vmatpush3.bf16.msra.mxu0 %v11606_v34  ;;  %v1344_v2 = vpop.f32.mrf.mxu1  ;;  %v11612_v12 = vld [vmem:[#allocation2 + $0x90] sm:$0xff]  }
 0x110   : > { %10164 = vst [vmem:[#allocation2 + $0xa0] sm:$0xff] %v9930_v58   ;;  %v9925_v63 = vpack.c.bf16 %v1101_v59, %v1100_v48  ;;  %10904 = vmatprep.subr.bf16.mxu0 %v11609_v52  ;;  %v9960_v7 = vpack.c.bf16 %v1368_v54, %v1367_v62  ;;  %v1345_v9 = vadd.f32 %v12186_v31, %v1344_v2  ;;  %v1372_v18 = vmax.f32 %v1353_v8, 0.0  ;;  %v11622_v48 = vld [vmem:[%s14063_s3 + $0x118] sm:$0xff]  }
 0x111   : > { %v11610_v4 = vld [vmem:[#allocation2 + $0x84] sm:$0xff]   ;;  %v10675_v5 = vpop.f32.mrf.mxu0  ;;  %v10693_v11 = vpop.f32.mrf.mxu1  ;;  %v11623_v54 = vld [vmem:[%s14063_s3 + $0x158] sm:$0xff]  }
 0x112   : > { %10163 = vst [vmem:[#allocation2 + $0x98] sm:$0xff] %v9925_v63   ;;  %10873 = vmatmul.mubr.bf16.vlgmr.msra.gmra.mxu0 %v11607_v3  ;;  %10849 = vmatmul.mubr.bf16.vlgmr.msra.gmra.mxu1 %v11610_v4  ;;  %10170 = vst [vmem:[#allocation2 + $0xd8] sm:$0xff] %v9960_v7   ;;  %v1370_v14 = vmax.f32 %v1345_v9, 0.0 }
 0x113   : > { %v1081_v13 = vpop.f32.mrf.mxu0  ;;  %10876 = vmatprep.mubr.bf16.mxu0 %v11611_v10  ;;  %10881 = vmatpush3.bf16.msra.mxu1 %v11608_v46  ;;  %v1347_v15 = vpop.f32.mrf.mxu1 }
 0x114   : > { %10905 = vmatpush3.bf16.msra.mxu0 %v11609_v52  ;;  %10852 = vmatprep.mubr.bf16.mxu1 %v11612_v12  ;;  %v9965_v19 = vpack.c.bf16 %v1370_v14, %v1369_v6  ;;  %v1348_v20 = vadd.f32 %v12186_v31, %v1347_v15  ;;  %v11625_v6 = vld [vmem:[%s14063_s3 + $0x150] sm:$0xff]  }
 0x115   : > { %v10698_v17 = vpop.f32.mrf.mxu0  ;;  %10882 = vmatprep.subr.bf16.mxu1 %v11613_v0  ;;  %10906 = vmatprep.subr.bf16.mxu0 %v11614_v1  ;;  %v10716_v30 = vpop.f32.mrf.mxu1 }
 0x116   : > { %v1571_v22 = vadd.f32 %v10698_v17, %v12186_v31  ;;  %10171 = vst [vmem:[#allocation2 + $0xe0] sm:$0xff] %v9965_v19   ;;  %v1371_v24 = vmax.f32 %v1348_v20, 0.0  ;;  %v1837_v36 = vadd.f32 %v10716_v30, %v12186_v31 }
 0x117   : > { %v1562_v23 = vpop.f32.mrf.mxu0  ;;  %10883 = vmatpush3.bf16.msra.mxu1 %v11613_v0  ;;  %v1828_v29 = vpop.f32.mrf.mxu1  ;;  %v11624_v0 = vld [vmem:[%s14063_s3 + $0x110] sm:$0xff]  }
 0x118   : > { %v1563_v28 = vadd.f32 %v12186_v31, %v1562_v23  ;;  %10907 = vmatpush3.bf16.msra.mxu0 %v11614_v1  ;;  %10884 = vmatprep.subr.bf16.mxu1 %v11616_v16  ;;  %v9970_v35 = vpack.c.bf16 %v1372_v18, %v1371_v24  ;;  %v1829_v37 = vadd.f32 %v12186_v31, %v1828_v29  ;;  %v1626_v38 = vmax.f32 %v1571_v22, 0.0  ;;  %v11627_v22 = vld [vmem:[%s14063_s3 + $0x148] sm:$0xff]   ;;  %v12350_v24 = vld [vmem:[%s14062_s2] ss:$0 sm:$0xff] }
 0x119   : > { %v11618_v33 = vld [vmem:[#allocation2 + $0x9c] sm:$0xff]   ;;  %v10699_v34 = vpop.f32.mrf.mxu0  ;;  %10908 = vmatprep.subr.bf16.mxu0 %v11617_v21  ;;  %v10717_v41 = vpop.f32.mrf.mxu1  ;;  %v1892_v50 = vmax.f32 %v1837_v36, 0.0 }
 0x11a   : > { %v1574_v39 = vadd.f32 %v10699_v34, %v12186_v31  ;;  %10877 = vmatmul.mubr.bf16.gmra.mxu0 %v11615_v32  ;;  %10853 = vmatmul.mubr.bf16.gmra.mxu1 %v11618_v33  ;;  %10172 = vst [vmem:[#allocation2 + $0xe8] sm:$0xff] %v9970_v35   ;;  %v1890_v43 = vmax.f32 %v1829_v37, 0.0  ;;  %v1624_v44 = vmax.f32 %v1563_v28, 0.0  ;;  %v1840_v52 = vadd.f32 %v10717_v41, %v12186_v31  ;;  %v11628_v33 = vld [vmem:[%s14063_s3 + $0x100] sm:$0xff]  }
 0x11b   : > { %v1565_v42 = vpop.f32.mrf.mxu0  ;;  %10885 = vmatpush3.bf16.msra.mxu1 %v11616_v16  ;;  %10896 = vmatprep.mubr.bf16.mxu1 %v11619_v25  ;;  %v1831_v47 = vpop.f32.mrf.mxu1  ;;  %v11626_v16 = vld [vmem:[%s14063_s3 + $0x108] sm:$0xff]  }
 0x11c   : > { %v1627_v45 = vmax.f32 %v1574_v39, 0.0  ;;  %v1566_v46 = vadd.f32 %v12186_v31, %v1565_v42  ;;  %10909 = vmatpush3.bf16.msra.mxu0 %v11617_v21  ;;  %10886 = vmatprep.subr.bf16.mxu1 %v11620_v26  ;;  %v9772_v51 = vpack.c.bf16 %v1890_v43, %v1890_v43  ;;  %v1832_v53 = vadd.f32 %v12186_v31, %v1831_v47  ;;  %v11629_v39 = vld [vmem:[%s14063_s3 + $0x140] sm:$0xff]  }
 0x11d   : > { %v10702_v49 = vpop.f32.mrf.mxu0  ;;  %10910 = vmatprep.subr.bf16.mxu0 %v11621_v27  ;;  %10920 = vmatprep.mubr.bf16.mxu0 %v11631_v40  ;;  %v10720_v58 = vpop.f32.mrf.mxu1  ;;  %v1893_v2 = vmax.f32 %v1840_v52, 0.0 }
 0x11e   : > { %v9980_v55 = vpack.c.bf16 %v1627_v45, %v1626_v38  ;;  %v1625_v56 = vmax.f32 %v1566_v46, 0.0  ;;  %v1587_v57 = vadd.f32 %v10702_v49, %v12186_v31  ;;  %1967 = vst [vmem:[#allocation2 + $0x12c] sm:$0xf] %v9772_v51  ;;  %v1891_v60 = vmax.f32 %v1832_v53, 0.0  ;;  %v11632_v49 = vld [vmem:[%s14063_s3 + $0x1b8] sm:$0xff]  }
 0x11f   : > { %v1578_v59 = vpop.f32.mrf.mxu0  ;;  %10887 = vmatpush3.bf16.msra.mxu1 %v11620_v26  ;;  %v1844_v63 = vpop.f32.mrf.mxu1  ;;  %v1853_v4 = vadd.f32 %v10720_v58, %v12186_v31 }
 0x120   : > { %10173 = vst [vmem:[#allocation2 + $0xf8] sm:$0xff] %v9980_v55   ;;  %v9975_v61 = vpack.c.bf16 %v1625_v56, %v1624_v44  ;;  %v1579_v62 = vadd.f32 %v12186_v31, %v1578_v59  ;;  %10911 = vmatpush3.bf16.msra.mxu0 %v11621_v27  ;;  %10888 = vmatprep.subr.bf16.mxu1 %v11622_v48  ;;  %v1630_v7 = vmax.f32 %v1587_v57, 0.0  ;;  %v11633_v55 = vld [vmem:[%s14063_s3 + $0x1f8] sm:$0xff]  }
 0x121   : > { %v10703_v1 = vpop.f32.mrf.mxu0  ;;  %v10010_v3 = vpack.c.bf16 %v1892_v50, %v1891_v60  ;;  %v1845_v5 = vadd.f32 %v12186_v31, %v1844_v63  ;;  %10912 = vmatprep.subr.bf16.mxu0 %v11623_v54  ;;  %v10721_v9 = vpop.f32.mrf.mxu1  ;;  %v1896_v18 = vmax.f32 %v1853_v4, 0.0  ;;  %v11636_v63 = vld [vmem:[%s14063_s3 + $0x1b0] sm:$0xff]  }
 0x122   : > { %9976 = vst [vmem:[#allocation2 + $0xf0] sm:$0xff] %v9975_v61   ;;  %v1590_v8 = vadd.f32 %v10703_v1, %v12186_v31  ;;  %v1628_v12 = vmax.f32 %v1579_v62, 0.0  ;;  %v1856_v20 = vadd.f32 %v10721_v9, %v12186_v31  ;;  %v11635_v62 = vld [vmem:[#allocation2 + $0xc0] sm:$0xff]   ;;  %v11630_v4 = vld [vmem:[#allocation2 + $0x54] sm:$0xff]  }
 0x123   : > { %v1581_v10 = vpop.f32.mrf.mxu0  ;;  %10179 = vst [vmem:[#allocation2 + $0x130] sm:$0xff] %v10010_v3   ;;  %v1894_v11 = vmax.f32 %v1845_v5, 0.0  ;;  %10889 = vmatpush3.bf16.msra.mxu1 %v11622_v48  ;;  %v1847_v15 = vpop.f32.mrf.mxu1  ;;  %v11634_v9 = vld [vmem:[#allocation2 + $0x60] sm:$0xff]  }
 0x124   : > { %v1631_v13 = vmax.f32 %v1590_v8, 0.0  ;;  %v1582_v14 = vadd.f32 %v12186_v31, %v1581_v10  ;;  %10913 = vmatpush3.bf16.msra.mxu0 %v11623_v54  ;;  %10890 = vmatprep.subr.bf16.mxu1 %v11624_v0  ;;  %v1848_v21 = vadd.f32 %v12186_v31, %v1847_v15  ;;  %v1897_v35 = vmax.f32 %v1856_v20, 0.0  ;;  %v11637_v10 = vld [vmem:[%s14063_s3 + $0x1f0] sm:$0xff]  }
 0x125   : > { %v10706_v17 = vpop.f32.mrf.mxu0  ;;  %v10015_v19 = vpack.c.bf16 %v1894_v11, %v1893_v2  ;;  %10914 = vmatprep.subr.bf16.mxu0 %v11625_v6  ;;  %v10724_v26 = vpop.f32.mrf.mxu1 }
 0x126   : > { %v9990_v30 = vpack.c.bf16 %v1631_v13, %v1630_v7  ;;  %v1629_v23 = vmax.f32 %v1582_v14, 0.0  ;;  %v1603_v25 = vadd.f32 %v12350_v24, %v10706_v17  ;;  %v1895_v28 = vmax.f32 %v1848_v21, 0.0  ;;  %v11641_v13 = vld [vmem:[#allocation2 + $0xcc] sm:$0xff]  }
 0x127   : > { %v1594_v27 = vpop.f32.mrf.mxu0  ;;  %10180 = vst [vmem:[#allocation2 + $0x138] sm:$0xff] %v10015_v19   ;;  %10891 = vmatpush3.bf16.msra.mxu1 %v11624_v0  ;;  %v1860_v32 = vpop.f32.mrf.mxu1  ;;  %v1869_v37 = vadd.f32 %v12350_v24, %v10724_v26  ;;  %v11639_v21 = vld [vmem:[%s14063_s3 + $0x1a8] sm:$0xff]  }
 0x128   : > { %10175 = vst [vmem:[#allocation2 + $0x108] sm:$0xff] %v9990_v30   ;;  %v9985_v31 = vpack.c.bf16 %v1629_v23, %v1628_v12  ;;  %v1595_v29 = vadd.f32 %v12350_v24, %v1594_v27  ;;  %10915 = vmatpush3.bf16.msra.mxu0 %v11625_v6  ;;  %10892 = vmatprep.subr.bf16.mxu1 %v11626_v16  ;;  %v1634_v40 = vmax.f32 %v1603_v25, 0.0  ;;  %v11642_v27 = vld [vmem:[#allocation2 + $0xd8] sm:$0xff]  }
 0x129   : > { %v10707_v34 = vpop.f32.mrf.mxu0  ;;  %v10020_v36 = vpack.c.bf16 %v1896_v18, %v1895_v28  ;;  %v1861_v38 = vadd.f32 %v12350_v24, %v1860_v32  ;;  %10916 = vmatprep.subr.bf16.mxu0 %v11627_v22  ;;  %v10725_v42 = vpop.f32.mrf.mxu1  ;;  %v1900_v50 = vmax.f32 %v1869_v37, 0.0  ;;  %v11643_v28 = vld [vmem:[%s14063_s3 + $0x1a0] sm:$0xff]  }
 0x12a   : > { %10174 = vst [vmem:[#allocation2 + $0x100] sm:$0xff] %v9985_v31   ;;  %v1606_v41 = vadd.f32 %v12350_v24, %v10707_v34  ;;  %v1632_v45 = vmax.f32 %v1595_v29, 0.0  ;;  %v1872_v52 = vadd.f32 %v12350_v24, %v10725_v42  ;;  %v11647_v31 = vld [vmem:[#allocation2 + $0xf0] sm:$0xff]  }
 0x12b   : > { %v1597_v43 = vpop.f32.mrf.mxu0  ;;  %10181 = vst [vmem:[#allocation2 + $0x140] sm:$0xff] %v10020_v36   ;;  %v1898_v44 = vmax.f32 %v1861_v38, 0.0  ;;  %10893 = vmatpush3.bf16.msra.mxu1 %v11626_v16  ;;  %v1863_v48 = vpop.f32.mrf.mxu1  ;;  %v11638_v34 = vld [vmem:[#allocation2 + $0x6c] sm:$0xff]   ;;  %v11644_v38 = vld [vmem:[%s14063_s3 + $0x1e0] sm:$0xff]  }
 0x12c   : > { %v1635_v46 = vmax.f32 %v1606_v41, 0.0  ;;  %v1598_v47 = vadd.f32 %v12350_v24, %v1597_v43  ;;  %10917 = vmatpush3.bf16.msra.mxu0 %v11627_v22  ;;  %10894 = vmatprep.subr.bf16.mxu1 %v11628_v33  ;;  %v1864_v53 = vadd.f32 %v12350_v24, %v1863_v48  ;;  %v1901_v5 = vmax.f32 %v1872_v52, 0.0  ;;  %v11640_v22 = vld [vmem:[%s14063_s3 + $0x1e8] sm:$0xff]  }
 0x12d   : > { %v10025_v51 = vpack.c.bf16 %v1898_v44, %v1897_v35  ;;  %v10710_v54 = vpop.f32.mrf.mxu0  ;;  %10918 = vmatprep.subr.bf16.mxu0 %v11629_v39  ;;  %v10728_v59 = vpop.f32.mrf.mxu1  ;;  %v11654_v42 = vld [vmem:[#allocation2 + $0x12c] sm:$0xff]  }
 0x12e   : > { %v10000_v56 = vpack.c.bf16 %v1635_v46, %v1634_v40  ;;  %v1633_v57 = vmax.f32 %v1598_v47, 0.0  ;;  %v1619_v58 = vadd.f32 %v12350_v24, %v10710_v54  ;;  %v1899_v60 = vmax.f32 %v1864_v53, 0.0  ;;  %v11645_v54 = vld [vmem:[%s14063_s3 + $0x198] sm:$0xff]  }
 0x12f   : > { %10182 = vst [vmem:[#allocation2 + $0x148] sm:$0xff] %v10025_v51   ;;  %v1610_v61 = vpop.f32.mrf.mxu0  ;;  %10895 = vmatpush3.bf16.msra.mxu1 %v11628_v33  ;;  %v1876_v3 = vpop.f32.mrf.mxu1 }
 0x130   : > { %10177 = vst [vmem:[#allocation2 + $0x118] sm:$0xff] %v10000_v56   ;;  %v9995_v0 = vpack.c.bf16 %v1633_v57, %v1632_v45  ;;  %v1638_v1 = vmax.f32 %v1619_v58, 0.0  ;;  %v1611_v2 = vadd.f32 %v12350_v24, %v1610_v61  ;;  %10919 = vmatpush3.bf16.msra.mxu0 %v11629_v39  ;;  %10928 = vmatprep.subr.bf16.mxu1 %v11632_v49 }
 0x131   : > { %v10030_v6 = vpack.c.bf16 %v1900_v50, %v1899_v60  ;;  %v10711_v7 = vpop.f32.mrf.mxu0  ;;  %v1877_v8 = vadd.f32 %v12350_v24, %v1876_v3  ;;  %10952 = vmatprep.subr.bf16.mxu0 %v11633_v55  ;;  %v10729_v12 = vpop.f32.mrf.mxu1 }
 0x132   : > { %10176 = vst [vmem:[#allocation2 + $0x110] sm:$0xff] %v9995_v0   ;;  %v9771_v11 = vpack.c.bf16 %v1638_v1, %v1638_v1  ;;  %10897 = vmatmul.mubr.bf16.vlgmr.msra.gmra.mxu1 %v11630_v4  ;;  %v1636_v16 = vmax.f32 %v1611_v2, 0.0  ;;  %v11649_v7 = vld [vmem:[%s14063_s3 + $0x1d0] sm:$0xff]  }
 0x133   : > { %10183 = vst [vmem:[#allocation2 + $0x150] sm:$0xff] %v10030_v6   ;;  %v1613_v14 = vpop.f32.mrf.mxu0  ;;  %v1902_v15 = vmax.f32 %v1877_v8, 0.0  ;;  %10900 = vmatprep.mubr.bf16.mxu1 %v11634_v9  ;;  %10921 = vmatmul.mubr.bf16.vlgmr.msra.gmra.mxu0 %v11635_v62  ;;  %v1879_v18 = vpop.f32.mrf.mxu1  ;;  %v11648_v6 = vld [vmem:[%s14063_s3 + $0x190] sm:$0xff]  }
 0x134   : > { %1715 = vst [vmem:[#allocation2 + $0x128] sm:$0xf] %v9771_v11  ;;  %v1614_v17 = vadd.f32 %v12350_v24, %v1613_v14  ;;  %10929 = vmatpush3.bf16.msra.mxu1 %v11632_v49  ;;  %10953 = vmatpush3.bf16.msra.mxu0 %v11633_v55  ;;  %v11646_v55 = vld [vmem:[%s14063_s3 + $0x1d8] sm:$0xff]  }
 0x135   : > { %v10734_v19 = vpop.f32.mrf.mxu0  ;;  %v10035_v20 = vpack.c.bf16 %v1902_v15, %v1901_v5  ;;  %10930 = vmatprep.subr.bf16.mxu1 %v11636_v63  ;;  %10954 = vmatprep.subr.bf16.mxu0 %v11637_v10  ;;  %v10752_v25 = vpop.f32.mrf.mxu1 }
 0x136   : > { %v1637_v30 = vmax.f32 %v1614_v17, 0.0  ;;  %v2103_v23 = vadd.f32 %v12350_v24, %v10734_v19  ;;  %10924 = vmatprep.mubr.bf16.mxu0 %v11641_v13  ;;  %v2369_v36 = vadd.f32 %v12350_v24, %v10752_v25  ;;  %v11650_v17 = vld [vmem:[%s14063_s3 + $0x188] sm:$0xff]  }
 0x137   : > { %v2094_v26 = vpop.f32.mrf.mxu0  ;;  %10184 = vst [vmem:[#allocation2 + $0x158] sm:$0xff] %v10035_v20   ;;  %v2360_v33 = vpop.f32.mrf.mxu1 }
 0x138   : > { %v10005_v29 = vpack.c.bf16 %v1637_v30, %v1636_v16  ;;  %v2095_v32 = vadd.f32 %v12350_v24, %v2094_v26  ;;  %10931 = vmatpush3.bf16.msra.mxu1 %v11636_v63  ;;  %10955 = vmatpush3.bf16.msra.mxu0 %v11637_v10  ;;  %v2361_v37 = vadd.f32 %v12350_v24, %v2360_v33  ;;  %v2158_v39 = vmax.f32 %v2103_v23, 0.0  ;;  %v11651_v30 = vld [vmem:[%s14063_s3 + $0x1c8] sm:$0xff]  }
 0x139   : > { %v10735_v35 = vpop.f32.mrf.mxu0  ;;  %10932 = vmatprep.subr.bf16.mxu1 %v11639_v21  ;;  %10956 = vmatprep.subr.bf16.mxu0 %v11640_v22  ;;  %v10753_v41 = vpop.f32.mrf.mxu1  ;;  %v2424_v50 = vmax.f32 %v2369_v36, 0.0 }
 0x13a   : > { %10178 = vst [vmem:[#allocation2 + $0x120] sm:$0xff] %v10005_v29   ;;  %v2106_v40 = vadd.f32 %v12350_v24, %v10735_v35  ;;  %10901 = vmatmul.mubr.bf16.gmra.mxu1 %v11638_v34  ;;  %v2422_v44 = vmax.f32 %v2361_v37, 0.0  ;;  %v2156_v45 = vmax.f32 %v2095_v32, 0.0  ;;  %v2372_v52 = vadd.f32 %v12350_v24, %v10753_v41 }
 0x13b   : > { %v2097_v43 = vpop.f32.mrf.mxu0  ;;  %10925 = vmatmul.mubr.bf16.gmra.mxu0 %v11642_v27  ;;  %10944 = vmatprep.mubr.bf16.mxu1 %v11647_v31  ;;  %v2363_v48 = vpop.f32.mrf.mxu1 }
 0x13c   : > { %v2159_v46 = vmax.f32 %v2106_v40, 0.0  ;;  %v2098_v47 = vadd.f32 %v12350_v24, %v2097_v43  ;;  %10933 = vmatpush3.bf16.msra.mxu1 %v11639_v21  ;;  %10957 = vmatpush3.bf16.msra.mxu0 %v11640_v22  ;;  %v9802_v51 = vpack.c.bf16 %v2422_v44, %v2422_v44  ;;  %v2364_v53 = vadd.f32 %v12350_v24, %v2363_v48  ;;  %v11653_v40 = vld [vmem:[%s14063_s3 + $0x1c0] sm:$0xff]  }
 0x13d   : > { %v10738_v49 = vpop.f32.mrf.mxu0  ;;  %10934 = vmatprep.subr.bf16.mxu1 %v11643_v28  ;;  %10958 = vmatprep.subr.bf16.mxu0 %v11644_v38  ;;  %v10756_v59 = vpop.f32.mrf.mxu1  ;;  %v2425_v2 = vmax.f32 %v2372_v52, 0.0 }
 0x13e   : > { %v10050_v56 = vpack.c.bf16 %v2159_v46, %v2158_v39  ;;  %v2157_v57 = vmax.f32 %v2098_v47, 0.0  ;;  %v2119_v58 = vadd.f32 %v12350_v24, %v10738_v49  ;;  %10968 = vmatprep.mubr.bf16.mxu0 %v11654_v42  ;;  %2499 = vst [vmem:[#allocation2 + $0x1a4] sm:$0xf] %v9802_v51  ;;  %v2423_v61 = vmax.f32 %v2364_v53, 0.0  ;;  %v11652_v39 = vld [vmem:[%s14063_s3 + $0x180] sm:$0xff]  }
 0x13f   : > { %v2110_v60 = vpop.f32.mrf.mxu0  ;;  %v2376_v0 = vpop.f32.mrf.mxu1  ;;  %v2385_v4 = vadd.f32 %v12350_v24, %v10756_v59 }
 0x140   : > { %10186 = vst [vmem:[#allocation2 + $0x170] sm:$0xff] %v10050_v56   ;;  %v10045_v62 = vpack.c.bf16 %v2157_v57, %v2156_v45  ;;  %v2111_v63 = vadd.f32 %v12350_v24, %v2110_v60  ;;  %10935 = vmatpush3.bf16.msra.mxu1 %v11643_v28  ;;  %10959 = vmatpush3.bf16.msra.mxu0 %v11644_v38  ;;  %v2162_v8 = vmax.f32 %v2119_v58, 0.0  ;;  %v11658_v56 = vld [vmem:[%s14063_s3 + $0x278] sm:$0xff]  }
 0x141   : > { %v10739_v1 = vpop.f32.mrf.mxu0  ;;  %v10080_v3 = vpack.c.bf16 %v2424_v50, %v2423_v61  ;;  %v2377_v5 = vadd.f32 %v12350_v24, %v2376_v0  ;;  %10936 = vmatprep.subr.bf16.mxu1 %v11645_v54  ;;  %10960 = vmatprep.subr.bf16.mxu0 %v11646_v55  ;;  %v10757_v10 = vpop.f32.mrf.mxu1  ;;  %v2428_v19 = vmax.f32 %v2385_v4, 0.0  ;;  %v11657_v50 = vld [vmem:[%s14063_s3 + $0x238] sm:$0xff]  }
 0x142   : > { %10046 = vst [vmem:[#allocation2 + $0x168] sm:$0xff] %v10045_v62   ;;  %v2122_v9 = vadd.f32 %v12350_v24, %v10739_v1  ;;  %v2160_v13 = vmax.f32 %v2111_v63, 0.0  ;;  %v2388_v21 = vadd.f32 %v12350_v24, %v10757_v10  ;;  %v11656_v62 = vld [vmem:[#allocation2 + $0x138] sm:$0xff]   ;;  %v11660_v63 = vld [vmem:[%s14063_s3 + $0x230] sm:$0xff]  }
 0x143   : > { %v2113_v11 = vpop.f32.mrf.mxu0  ;;  %10192 = vst [vmem:[#allocation2 + $0x1a8] sm:$0xff] %v10080_v3   ;;  %v2426_v12 = vmax.f32 %v2377_v5, 0.0  ;;  %v2379_v16 = vpop.f32.mrf.mxu1  ;;  %v11661_v3 = vld [vmem:[%s14063_s3 + $0x270] sm:$0xff]  }
 0x144   : > { %v2163_v14 = vmax.f32 %v2122_v9, 0.0  ;;  %v2114_v15 = vadd.f32 %v12350_v24, %v2113_v11  ;;  %10937 = vmatpush3.bf16.msra.mxu1 %v11645_v54  ;;  %10961 = vmatpush3.bf16.msra.mxu0 %v11646_v55  ;;  %v2380_v22 = vadd.f32 %v12350_v24, %v2379_v16  ;;  %v2429_v35 = vmax.f32 %v2388_v21, 0.0  ;;  %v11655_v9 = vld [vmem:[#allocation2 + $0xfc] sm:$0xff]   ;;  %v11659_v11 = vld [vmem:[#allocation2 + $0x108] sm:$0xff]  }
 0x145   : > { %v10742_v18 = vpop.f32.mrf.mxu0  ;;  %v10085_v20 = vpack.c.bf16 %v2426_v12, %v2425_v2  ;;  %10938 = vmatprep.subr.bf16.mxu1 %v11648_v6  ;;  %10962 = vmatprep.subr.bf16.mxu0 %v11649_v7  ;;  %v10760_v27 = vpop.f32.mrf.mxu1  ;;  %v11662_v12 = vld [vmem:[#allocation2 + $0x144] sm:$0xff]  }
 0x146   : > { %v10060_v23 = vpack.c.bf16 %v2163_v14, %v2162_v8  ;;  %v2161_v25 = vmax.f32 %v2114_v15, 0.0  ;;  %v2135_v26 = vadd.f32 %v12350_v24, %v10742_v18  ;;  %v2427_v31 = vmax.f32 %v2380_v22, 0.0  ;;  %v11665_v22 = vld [vmem:[%s14063_s3 + $0x228] sm:$0xff]  }
 0x147   : > { %v2126_v28 = vpop.f32.mrf.mxu0  ;;  %10193 = vst [vmem:[#allocation2 + $0x1b0] sm:$0xff] %v10085_v20   ;;  %v2392_v33 = vpop.f32.mrf.mxu1  ;;  %v2401_v37 = vadd.f32 %v12350_v24, %v10760_v27 }
 0x148   : > { %10188 = vst [vmem:[#allocation2 + $0x180] sm:$0xff] %v10060_v23   ;;  %v10055_v29 = vpack.c.bf16 %v2161_v25, %v2160_v13  ;;  %v2127_v32 = vadd.f32 %v12350_v24, %v2126_v28  ;;  %10939 = vmatpush3.bf16.msra.mxu1 %v11648_v6  ;;  %10963 = vmatpush3.bf16.msra.mxu0 %v11649_v7  ;;  %v2166_v41 = vmax.f32 %v2135_v26, 0.0  ;;  %v11666_v25 = vld [vmem:[%s14063_s3 + $0x268] sm:$0xff]   ;;  %v11663_v28 = vld [vmem:[#allocation2 + $0x114] sm:$0xff]  }
 0x149   : > { %v10743_v34 = vpop.f32.mrf.mxu0  ;;  %v10090_v36 = vpack.c.bf16 %v2428_v19, %v2427_v31  ;;  %v2393_v38 = vadd.f32 %v12350_v24, %v2392_v33  ;;  %10940 = vmatprep.subr.bf16.mxu1 %v11650_v17  ;;  %10964 = vmatprep.subr.bf16.mxu0 %v11651_v30  ;;  %v10761_v43 = vpop.f32.mrf.mxu1  ;;  %v2432_v52 = vmax.f32 %v2401_v37, 0.0  ;;  %v11664_v31 = vld [vmem:[#allocation2 + $0x150] sm:$0xff]   ;;  %v11669_v33 = vld [vmem:[%s14063_s3 + $0x220] sm:$0xff]  }
 0x14a   : > { %10187 = vst [vmem:[#allocation2 + $0x178] sm:$0xff] %v10055_v29   ;;  %v2138_v42 = vadd.f32 %v12350_v24, %v10743_v34  ;;  %v2164_v46 = vmax.f32 %v2127_v32, 0.0  ;;  %v2404_v54 = vadd.f32 %v12350_v24, %v10761_v43 }
 0x14b   : > { %v2129_v44 = vpop.f32.mrf.mxu0  ;;  %10194 = vst [vmem:[#allocation2 + $0x1b8] sm:$0xff] %v10090_v36   ;;  %v2430_v45 = vmax.f32 %v2393_v38, 0.0  ;;  %v2395_v49 = vpop.f32.mrf.mxu1  ;;  %v11670_v36 = vld [vmem:[%s14063_s3 + $0x260] sm:$0xff]  }
 0x14c   : > { %v2167_v47 = vmax.f32 %v2138_v42, 0.0  ;;  %v2130_v48 = vadd.f32 %v12350_v24, %v2129_v44  ;;  %10941 = vmatpush3.bf16.msra.mxu1 %v11650_v17  ;;  %10965 = vmatpush3.bf16.msra.mxu0 %v11651_v30  ;;  %v2396_v55 = vadd.f32 %v12350_v24, %v2395_v49  ;;  %v2433_v5 = vmax.f32 %v2404_v54, 0.0 }
 0x14d   : > { %v10746_v51 = vpop.f32.mrf.mxu0  ;;  %v10095_v53 = vpack.c.bf16 %v2430_v45, %v2429_v35  ;;  %10942 = vmatprep.subr.bf16.mxu1 %v11652_v39  ;;  %10966 = vmatprep.subr.bf16.mxu0 %v11653_v40  ;;  %v10764_v59 = vpop.f32.mrf.mxu1 }
 0x14e   : > { %v10070_v57 = vpack.c.bf16 %v2167_v47, %v2166_v41  ;;  %v2165_v58 = vmax.f32 %v2130_v48, 0.0  ;;  %v2431_v61 = vmax.f32 %v2396_v55, 0.0  ;;  %v2417_v7 = vadd.f32 %v12350_v24, %v10764_v59  ;;  %v11668_v41 = vld [vmem:[#allocation2 + $0xfc] sm:$0xff]   ;;  %v11673_v55 = vld [vmem:[%s14063_s3 + $0x210] sm:$0xff]  }
 0x14f   : > { %v2142_v60 = vpop.f32.mrf.mxu0  ;;  %10195 = vst [vmem:[#allocation2 + $0x1c0] sm:$0xff] %v10095_v53   ;;  %v2408_v2 = vpop.f32.mrf.mxu1 }
 0x150   : > { %10190 = vst [vmem:[#allocation2 + $0x190] sm:$0xff] %v10070_v57   ;;  %v10065_v0 = vpack.c.bf16 %v2165_v58, %v2164_v46  ;;  %v2143_v1 = vadd.f32 %v12350_v24, %v2142_v60  ;;  %10943 = vmatpush3.bf16.msra.mxu1 %v11652_v39  ;;  %10967 = vmatpush3.bf16.msra.mxu0 %v11653_v40  ;;  %v2436_v19 = vmax.f32 %v2417_v7, 0.0  ;;  %v11667_v39 = vld [vmem:[#allocation2 + $0xc0] sm:$0xff]   ;;  %v11671_v46 = vld [vmem:[%s14063_s3 + $0x218] sm:$0xff]   ;;  %v11674_v58 = vld [vmem:[%s14063_s3 + $0x250] sm:$0xff]  }
 0x151   : > { %v10747_v4 = vpop.f32.mrf.mxu0  ;;  %v10100_v6 = vpack.c.bf16 %v2432_v52, %v2431_v61  ;;  %v2409_v8 = vadd.f32 %v12350_v24, %v2408_v2  ;;  %10976 = vmatprep.subr.bf16.mxu1 %v11657_v50  ;;  %11000 = vmatprep.subr.bf16.mxu0 %v11658_v56  ;;  %v10765_v10 = vpop.f32.mrf.mxu1 }
 0x152   : > { %10189 = vst [vmem:[#allocation2 + $0x188] sm:$0xff] %v10065_v0   ;;  %v2168_v15 = vmax.f32 %v2143_v1, 0.0  ;;  %v11675_v0 = vld [vmem:[%s14063_s3 + $0x208] sm:$0xff]  }
 0x153   : > { %v2145_v13 = vpop.f32.mrf.mxu0  ;;  %10196 = vst [vmem:[#allocation2 + $0x1c8] sm:$0xff] %v10100_v6   ;;  %v2434_v14 = vmax.f32 %v2409_v8, 0.0  ;;  %10945 = vmatmul.mubr.bf16.vlgmr.msra.gmra.mxu1 %v11655_v9  ;;  %10969 = vmatmul.mubr.bf16.vlgmr.msra.gmra.mxu0 %v11656_v62  ;;  %v2411_v17 = vpop.f32.mrf.mxu1  ;;  %v11676_v4 = vld [vmem:[%s14063_s3 + $0x248] sm:$0xff]   ;;  %v11677_v9 = vld [vmem:[%s14063_s3 + $0x200] sm:$0xff]  }
 0x154   : > { %v2146_v16 = vadd.f32 %v12350_v24, %v2145_v13  ;;  %10948 = vmatprep.mubr.bf16.mxu1 %v11659_v11  ;;  %10977 = vmatpush3.bf16.msra.mxu1 %v11657_v50  ;;  %v2412_v21 = vadd.f32 %v12350_v24, %v2411_v17  ;;  %v11672_v50 = vld [vmem:[%s14063_s3 + $0x258] sm:$0xff]  }
 0x155   : > { %v10770_v18 = vpop.f32.mrf.mxu0  ;;  %v10105_v20 = vpack.c.bf16 %v2434_v14, %v2433_v5  ;;  %11001 = vmatpush3.bf16.msra.mxu0 %v11658_v56  ;;  %10978 = vmatprep.subr.bf16.mxu1 %v11660_v63 }
 0x156   : > { %v2169_v30 = vmax.f32 %v2146_v16, 0.0  ;;  %v2635_v23 = vadd.f32 %v12350_v24, %v10770_v18  ;;  %11002 = vmatprep.subr.bf16.mxu0 %v11661_v3  ;;  %10972 = vmatprep.mubr.bf16.mxu0 %v11662_v12  ;;  %v2435_v27 = vmax.f32 %v2412_v21, 0.0  ;;  %v11678_v12 = vld [vmem:[%s14063_s3 + $0x240] sm:$0xff]   ;;  %v11681_v18 = vld [vmem:[%s14063_s3 + $0x2b8] sm:$0xff]  }
 0x157   : > { %v2626_v26 = vpop.f32.mrf.mxu0  ;;  %10197 = vst [vmem:[#allocation2 + $0x1d0] sm:$0xff] %v10105_v20   ;;  %v11682_v21 = vld [vmem:[%s14063_s3 + $0x2f8] sm:$0xff]  }
 0x158   : > { %v10075_v29 = vpack.c.bf16 %v2169_v30, %v2168_v15  ;;  %v2627_v32 = vadd.f32 %v12350_v24, %v2626_v26  ;;  %10979 = vmatpush3.bf16.msra.mxu1 %v11660_v63  ;;  %v10110_v35 = vpack.c.bf16 %v2436_v19, %v2435_v27  ;;  %v2690_v37 = vmax.f32 %v2635_v23, 0.0  ;;  %v11679_v23 = vld [vmem:[#allocation2 + $0xcc] sm:$0xff]   ;;  %v11683_v26 = vld [vmem:[#allocation2 + $0xd8] sm:$0xff]  }
 0x159   : > { %v10771_v34 = vpop.f32.mrf.mxu0  ;;  %11003 = vmatpush3.bf16.msra.mxu0 %v11661_v3  ;;  %10980 = vmatprep.subr.bf16.mxu1 %v11665_v22  ;;  %v11685_v27 = vld [vmem:[%s14063_s3 + $0x2b0] sm:$0xff]  }
 0x15a   : > { %10191 = vst [vmem:[#allocation2 + $0x198] sm:$0xff] %v10075_v29   ;;  %v2638_v38 = vadd.f32 %v12350_v24, %v10771_v34  ;;  %11004 = vmatprep.subr.bf16.mxu0 %v11666_v25  ;;  %10198 = vst [vmem:[#allocation2 + $0x1d8] sm:$0xff] %v10110_v35   ;;  %v2688_v42 = vmax.f32 %v2627_v32, 0.0  ;;  %v11686_v29 = vld [vmem:[%s14063_s3 + $0x2f0] sm:$0xff]   ;;  %v11689_v32 = vld [vmem:[%s14063_s3 + $0x2a8] sm:$0xff]  }
 0x15b   : > { %v2629_v40 = vpop.f32.mrf.mxu0  ;;  %10949 = vmatmul.mubr.bf16.gmra.mxu1 %v11663_v28  ;;  %10973 = vmatmul.mubr.bf16.gmra.mxu0 %v11664_v31  ;;  %v11684_v31 = vld [vmem:[#allocation2 + $0x114] sm:$0xff]   ;;  %v11688_v34 = vld [vmem:[#allocation2 + $0x120] sm:$0xff]   ;;  %v11695_v35 = vld [vmem:[#allocation2 + $0x168] sm:$0xff]  }
 0x15c   : > { %v2691_v43 = vmax.f32 %v2638_v38, 0.0  ;;  %v2630_v44 = vadd.f32 %v12350_v24, %v2629_v40  ;;  %10981 = vmatpush3.bf16.msra.mxu1 %v11665_v22  ;;  %10992 = vmatprep.mubr.bf16.mxu1 %v11667_v39  ;;  %v11691_v38 = vld [vmem:[%s14063_s3 + $0x2a0] sm:$0xff]   ;;  %v11693_v40 = vld [vmem:[%s14063_s3 + $0x298] sm:$0xff]  }
 0x15d   : > { %v10774_v45 = vpop.f32.mrf.mxu0  ;;  %11005 = vmatpush3.bf16.msra.mxu0 %v11666_v25  ;;  %11016 = vmatprep.mubr.bf16.mxu0 %v11668_v41  ;;  %v11680_v25 = vld [vmem:[#allocation2 + $0x108] sm:$0xff]   ;;  %v11692_v39 = vld [vmem:[%s14063_s3 + $0x2e0] sm:$0xff]   ;;  %v11694_v41 = vld [vmem:[%s14063_s3 + $0x2d8] sm:$0xff]  }
 0x15e   : > { %v10120_v47 = vpack.c.bf16 %v2691_v43, %v2690_v37  ;;  %v2689_v48 = vmax.f32 %v2630_v44, 0.0  ;;  %v2651_v49 = vadd.f32 %v12350_v24, %v10774_v45  ;;  %10982 = vmatprep.subr.bf16.mxu1 %v11669_v33  ;;  %11006 = vmatprep.subr.bf16.mxu0 %v11670_v36  ;;  %v11702_v37 = vld [vmem:[#allocation2 + $0x1a4] sm:$0xff]   ;;  %v11697_v43 = vld [vmem:[%s14063_s3 + $0x2d0] sm:$0xff]  }
 0x15f   : > { %v2642_v51 = vpop.f32.mrf.mxu0  ;;  %v11698_v44 = vld [vmem:[%s14063_s3 + $0x288] sm:$0xff]  }
 0x160   : > { %10199 = vst [vmem:[#allocation2 + $0x1e8] sm:$0xff] %v10120_v47   ;;  %v10115_v52 = vpack.c.bf16 %v2689_v48, %v2688_v42  ;;  %v2643_v53 = vadd.f32 %v12350_v24, %v2642_v51  ;;  %10983 = vmatpush3.bf16.msra.mxu1 %v11669_v33  ;;  %v2694_v56 = vmax.f32 %v2651_v49, 0.0  ;;  %v11690_v33 = vld [vmem:[%s14063_s3 + $0x2e8] sm:$0xff]   ;;  %v11696_v42 = vld [vmem:[%s14063_s3 + $0x290] sm:$0xff]   ;;  %v11701_v47 = vld [vmem:[%s14063_s3 + $0x2c0] sm:$0xff]  }
 0x161   : > { %v10775_v54 = vpop.f32.mrf.mxu0  ;;  %11007 = vmatpush3.bf16.msra.mxu0 %v11670_v36  ;;  %10984 = vmatprep.subr.bf16.mxu1 %v11671_v46  ;;  %v11687_v36 = vld [vmem:[#allocation2 + $0xe4] sm:$0xff]   ;;  %v11705_v48 = vld [vmem:[%s14063_s3 + $0x338] sm:$0xff]  }
 0x162   : > { %10116 = vst [vmem:[#allocation2 + $0x1e0] sm:$0xff] %v10115_v52   ;;  %v2654_v57 = vadd.f32 %v12350_v24, %v10775_v54  ;;  %11008 = vmatprep.subr.bf16.mxu0 %v11672_v50  ;;  %v2692_v60 = vmax.f32 %v2643_v53, 0.0  ;;  %v11699_v45 = vld [vmem:[%s14063_s3 + $0x2c8] sm:$0xff]   ;;  %v11706_v49 = vld [vmem:[%s14063_s3 + $0x378] sm:$0xff]   ;;  %v11707_v52 = vld [vmem:[#allocation2 + $0x180] sm:$0xff]  }
 0x163   : > { %v2645_v59 = vpop.f32.mrf.mxu0  ;;  %v11703_v51 = vld [vmem:[#allocation2 + $0x174] sm:$0xff]  }
 0x164   : > { %v2695_v61 = vmax.f32 %v2654_v57, 0.0  ;;  %v2646_v62 = vadd.f32 %v12350_v24, %v2645_v59  ;;  %10985 = vmatpush3.bf16.msra.mxu1 %v11671_v46  ;;  %v11700_v46 = vld [vmem:[%s14063_s3 + $0x280] sm:$0xff]   ;;  %v11708_v53 = vld [vmem:[%s14063_s3 + $0x330] sm:$0xff]   ;;  %v11714_v57 = vld [vmem:[%s14063_s3 + $0x368] sm:$0xff]  }
 0x165   : > { %v10778_v63 = vpop.f32.mrf.mxu0  ;;  %11009 = vmatpush3.bf16.msra.mxu0 %v11672_v50  ;;  %10986 = vmatprep.subr.bf16.mxu1 %v11673_v55  ;;  %v11704_v50 = vld [vmem:[#allocation2 + $0x1b0] sm:$0xff]  }
 0x166   : > { %v10130_v1 = vpack.c.bf16 %v2695_v61, %v2694_v56  ;;  %v2693_v2 = vmax.f32 %v2646_v62, 0.0  ;;  %v2667_v3 = vadd.f32 %v12350_v24, %v10778_v63  ;;  %11010 = vmatprep.subr.bf16.mxu0 %v11674_v58  ;;  %v11709_v54 = vld [vmem:[%s14063_s3 + $0x370] sm:$0xff]   ;;  %v11713_v56 = vld [vmem:[%s14063_s3 + $0x328] sm:$0xff]   ;;  %v11716_v61 = vld [vmem:[%s14063_s3 + $0x320] sm:$0xff]  }
 0x167   : > { %v2658_v5 = vpop.f32.mrf.mxu0  ;;  %v11717_v62 = vld [vmem:[%s14063_s3 + $0x360] sm:$0xff]   ;;  %v11715_v63 = vld [vmem:[#allocation2 + $0x174] sm:$0xff]  }
 0x168   : > { %10201 = vst [vmem:[#allocation2 + $0x1f8] sm:$0xff] %v10130_v1   ;;  %v10125_v6 = vpack.c.bf16 %v2693_v2, %v2692_v60  ;;  %v2659_v7 = vadd.f32 %v12350_v24, %v2658_v5  ;;  %10987 = vmatpush3.bf16.msra.mxu1 %v11673_v55  ;;  %v2698_v10 = vmax.f32 %v2667_v3, 0.0  ;;  %v11710_v55 = vld [vmem:[#allocation2 + $0x1bc] sm:$0xff]   ;;  %v11711_v60 = vld [vmem:[#allocation2 + $0x18c] sm:$0xff]   ;;  %v5320_v3 = vld [vmem:[#allocation2 + $0x4] sm:$0xf] }
 0x169   : > { %v10779_v8 = vpop.f32.mrf.mxu0  ;;  %11011 = vmatpush3.bf16.msra.mxu0 %v11674_v58  ;;  %10988 = vmatprep.subr.bf16.mxu1 %v11675_v0  ;;  %v11712_v58 = vld [vmem:[#allocation2 + $0x1c8] sm:$0xff]   ;;  %v11720_v59 = vld [vmem:[#allocation2 + $0x1e0] sm:$0xff]   ;;  %v11718_v1 = vld [vmem:[%s14063_s3 + $0x318] sm:$0xff]  }
 0x16a   : > { %10200 = vst [vmem:[#allocation2 + $0x1f0] sm:$0xff] %v10125_v6   ;;  %v2670_v11 = vadd.f32 %v12350_v24, %v10779_v8  ;;  %11012 = vmatprep.subr.bf16.mxu0 %v11676_v4  ;;  %v2696_v14 = vmax.f32 %v2659_v7, 0.0  ;;  %v11719_v2 = vld [vmem:[%s14063_s3 + $0x358] sm:$0xff]   ;;  %v11721_v7 = vld [vmem:[%s14063_s3 + $0x310] sm:$0xff]  }
 0x16b   : > { %v2661_v13 = vpop.f32.mrf.mxu0  ;;  %v11722_v8 = vld [vmem:[%s14063_s3 + $0x350] sm:$0xff]  }
 0x16c   : > { %v2699_v15 = vmax.f32 %v2670_v11, 0.0  ;;  %v2662_v16 = vadd.f32 %v12350_v24, %v2661_v13  ;;  %10989 = vmatpush3.bf16.msra.mxu1 %v11675_v0  ;;  %v5319_v0 = vld [vmem:[#allocation2] sm:$0xf]  ;;  %v5323_v13 = vld [vmem:[#allocation2 + $0x10] sm:$0xf] }
 0x16d   : > { %v10782_v17 = vpop.f32.mrf.mxu0  ;;  %11013 = vmatpush3.bf16.msra.mxu0 %v11676_v4  ;;  %10990 = vmatprep.subr.bf16.mxu1 %v11677_v9  ;;  %v5322_v4 = vld [vmem:[#allocation2 + $0xc] sm:$0xf]  ;;  %v5335_v5 = vshrl.u32 %v5319_v0, 16  ;;  %v5338_v6 = vshll.u32 %v5319_v0, 16 }
 0x16e   : > { %v10140_v19 = vpack.c.bf16 %v2699_v15, %v2698_v10  ;;  %v2697_v20 = vmax.f32 %v2662_v16, 0.0  ;;  %11014 = vmatprep.subr.bf16.mxu0 %v11678_v12  ;;  %v5348_v10 = vshrl.u32 %v5320_v3, 16  ;;  %v5359_v11 = vshrl.u32 %v5322_v4, 16  ;;  %v5325_v17 = vld [vmem:[#allocation2 + $0x18] sm:$0xf] }
 0x16f   : > { %v2674_v22 = vpop.f32.mrf.mxu0  ;;  %v5337_v15 = vrot.slane %v5335_v5, 4  ;;  %v5340_v16 = vrot.slane %v5338_v6, 5  ;;  %v11733_v6 = vld [vmem:[%s14063_s3 + $0x3b0] sm:$0xff]  }
 0x170   : > { %10203 = vst [vmem:[#allocation2 + $0x208] sm:$0xff] %v10140_v19   ;;  %v10135_v30 = vpack.c.bf16 %v2697_v20, %v2696_v14  ;;  %10991 = vmatpush3.bf16.msra.mxu1 %v11677_v9  ;;  %v5344_v9 = vshll.u32 %v5320_v3, 16  ;;  %v5321_v14 = vld [vmem:[#allocation2 + $0x8] sm:$0x1]  ;;  %v5361_v22 = vrot.slane %v5359_v11, 4 }
 0x171   : > { %v10783_v24 = vpop.f32.mrf.mxu0  ;;  %11015 = vmatpush3.bf16.msra.mxu0 %v11678_v12  ;;  %11024 = vmatprep.subr.bf16.mxu1 %v11681_v18  ;;  %v5362_v12 = vshll.u32 %v5322_v4, 16  ;;  %v11724_v19 = vld [vmem:[%s14063_s3 + $0x348] sm:$0xff]   ;;  %v11728_v4 = vld [vmem:[#allocation2 + $0x180] sm:$0xff]  }
 0x172   : > { %10202 = vst [vmem:[#allocation2 + $0x200] sm:$0xff] %v10135_v30   ;;  %11048 = vmatprep.subr.bf16.mxu0 %v11682_v21  ;;  %v12597_v20 = vrot.slane %v5344_v9, 5  ;;  %v5368_v24 = vshll.u32 %v5323_v13, 16  ;;  %v11727_v11 = vld [vmem:[#allocation2 + $0x1ec] sm:$0xff]  }
 0x173   : > { %v2677_v28 = vpop.f32.mrf.mxu0  ;;  %10993 = vmatmul.mubr.bf16.vlgmr.msra.gmra.mxu1 %v11679_v23  ;;  %v5364_v30 = vrot.slane %v5362_v12, 5  ;;  %v5372_v23 = vshrl.u32 %v5323_v13, 16  ;;  %v11732_v13 = vld [vmem:[#allocation2 + $0x18c] sm:$0xff]  }
 0x174   : > { %11017 = vmatmul.mubr.bf16.vlgmr.msra.gmra.mxu0 %v11680_v25  ;;  %10996 = vmatprep.mubr.bf16.mxu1 %v11683_v26  ;;  %v5324_v25 = vld [vmem:[#allocation2 + $0x14] sm:$0x1]  ;;  %v5326_v26 = vld [vmem:[#allocation2 + $0x1c] sm:$0xf]  ;;  %v5386_v28 = vshll.u32 %v5325_v17, 16 }
 0x175   : > { %11020 = vmatprep.mubr.bf16.mxu0 %v11684_v31  ;;  %11025 = vmatpush3.bf16.msra.mxu1 %v11681_v18  ;;  %v11723_v18 = vld [vmem:[%s14063_s3 + $0x308] sm:$0xff]   ;;  %v5328_v31 = vld [vmem:[#allocation2 + $0x24] sm:$0xf] }
 0x176   : > { %11049 = vmatpush3.bf16.msra.mxu0 %v11682_v21  ;;  %11026 = vmatprep.subr.bf16.mxu1 %v11685_v27  ;;  %v5350_v21 = vrot.slane %v5348_v10, 4 }
 0x177   : > { %11050 = vmatprep.subr.bf16.mxu0 %v11686_v29 }
 0x179   : > { %11027 = vmatpush3.bf16.msra.mxu1 %v11685_v27  ;;  %v5383_v27 = vshrl.u32 %v5325_v17, 16 }
 0x17a   : > { %11051 = vmatpush3.bf16.msra.mxu0 %v11686_v29  ;;  %11028 = vmatprep.subr.bf16.mxu1 %v11689_v32  ;;  %v11725_v29 = vld [vmem:[%s14063_s3 + $0x300] sm:$0xff]  }
 0x17b   : > { %10997 = vmatmul.mubr.bf16.gmra.mxu1 %v11687_v36  ;;  %11052 = vmatprep.subr.bf16.mxu0 %v11690_v33  ;;  %v5329_v36 = vld [vmem:[#allocation2 + $0x28] sm:$0xf] }
 0x17c   : > { %11021 = vmatmul.mubr.bf16.gmra.mxu0 %v11688_v34  ;;  %11040 = vmatprep.mubr.bf16.mxu1 %v11695_v35  ;;  %v5351_v34 = vor.u32 %v5350_v21, %v12597_v20  ;;  %v5354_v35 = vshll.u32 %v5321_v14, 16 }
 0x17d   : > { %11029 = vmatpush3.bf16.msra.mxu1 %v11689_v32  ;;  %11064 = vmatprep.mubr.bf16.mxu0 %v11702_v37  ;;  %v11726_v32 = vld [vmem:[%s14063_s3 + $0x340] sm:$0xff]   ;;  %v5365_v37 = vor.u32 %v5364_v30, %v5361_v22  ;;  %v12657_v22 = vld [vmem:[#allocation2 + $0x7c] sm:$0xf] }
 0x17e   : > { %11053 = vmatpush3.bf16.msra.mxu0 %v11690_v33  ;;  %11030 = vmatprep.subr.bf16.mxu1 %v11691_v38  ;;  %v5341_v33 = vor.u32 %v5340_v16, %v5337_v15  ;;  %v12655_v16 = vld [vmem:[#allocation2 + $0x78] sm:$0xf] }
 0x17f   : > { %11054 = vmatprep.subr.bf16.mxu0 %v11692_v39 }
 0x181   : > { %11031 = vmatpush3.bf16.msra.mxu1 %v11691_v38  ;;  %v12606_v38 = vrot.slane %v5368_v24, 5 }
 0x182   : > { %11055 = vmatpush3.bf16.msra.mxu0 %v11692_v39  ;;  %11032 = vmatprep.subr.bf16.mxu1 %v11693_v40  ;;  %v5374_v39 = vrot.slane %v5372_v23, 4 }
 0x183   : > { %11056 = vmatprep.subr.bf16.mxu0 %v11694_v41 }
 0x185   : > { %11033 = vmatpush3.bf16.msra.mxu1 %v11693_v40  ;;  %v5378_v40 = vshll.u32 %v5324_v25, 16 }
 0x186   : > { %11057 = vmatpush3.bf16.msra.mxu0 %v11694_v41  ;;  %11034 = vmatprep.subr.bf16.mxu1 %v11696_v42  ;;  %v5392_v41 = vshll.u32 %v5326_v26, 16 }
 0x187   : > { %11058 = vmatprep.subr.bf16.mxu0 %v11697_v43 }
 0x189   : > { %11035 = vmatpush3.bf16.msra.mxu1 %v11696_v42  ;;  %v5396_v42 = vshrl.u32 %v5326_v26, 16 }
 0x18a   : > { %11059 = vmatpush3.bf16.msra.mxu0 %v11697_v43  ;;  %11036 = vmatprep.subr.bf16.mxu1 %v11698_v44  ;;  %v5407_v43 = vshrl.u32 %v5328_v31, 16 }
 0x18b   : > { %11060 = vmatprep.subr.bf16.mxu0 %v11699_v45  ;;  %v12635_v0 = vrot.slane %v5396_v42, 4 }
 0x18d   : > { %11037 = vmatpush3.bf16.msra.mxu1 %v11698_v44  ;;  %v5410_v44 = vshll.u32 %v5328_v31, 16 }
 0x18e   : > { %11061 = vmatpush3.bf16.msra.mxu0 %v11699_v45  ;;  %11038 = vmatprep.subr.bf16.mxu1 %v11700_v46  ;;  %v5385_v45 = vrot.slane %v5383_v27, 4 }
 0x18f   : > { %11062 = vmatprep.subr.bf16.mxu0 %v11701_v47  ;;  %v12641_v3 = vrot.slane %v5410_v44, 5 }
 0x191   : > { %11039 = vmatpush3.bf16.msra.mxu1 %v11700_v46  ;;  %v5388_v46 = vrot.slane %v5386_v28, 5 }
 0x192   : > { %11063 = vmatpush3.bf16.msra.mxu0 %v11701_v47  ;;  %11072 = vmatprep.subr.bf16.mxu1 %v11705_v48  ;;  %v5416_v47 = vshll.u32 %v5329_v36, 16 }
 0x193   : > { %11096 = vmatprep.subr.bf16.mxu0 %v11706_v49 }
 0x194   : > { %11041 = vmatmul.mubr.bf16.vlgmr.msra.gmra.mxu1 %v11703_v51  ;;  %v11730_v51 = vld [vmem:[%s14063_s3 + $0x3f8] sm:$0xff]   ;;  %v12649_v9 = vrot.slane %v5416_v47, 5  ;;  %v5862_v47 = vshll.u32 %v12655_v16, 16 }
 0x195   : > { %11065 = vmatmul.mubr.bf16.vlgmr.msra.gmra.mxu0 %v11704_v50  ;;  %11044 = vmatprep.mubr.bf16.mxu1 %v11707_v52  ;;  %v11729_v50 = vld [vmem:[%s14063_s3 + $0x3b8] sm:$0xff]   ;;  %v12614_v52 = vrot.slane %v5341_v33, 4 }
 0x196   : > { %11073 = vmatpush3.bf16.msra.mxu1 %v11705_v48  ;;  %11097 = vmatpush3.bf16.msra.mxu0 %v11706_v49  ;;  %v5420_v48 = vshrl.u32 %v5329_v36, 16 }
 0x197   : > { %11074 = vmatprep.subr.bf16.mxu1 %v11708_v53  ;;  %11098 = vmatprep.subr.bf16.mxu0 %v11709_v54  ;;  %v5347_v24 = vsel %vm12627_vm5, %v12614_v52, %v12597_v20 }
 0x198   : > { %11068 = vmatprep.mubr.bf16.mxu0 %v11710_v55  ;;  %v12618_v55 = vrot.slane %v5351_v34, 4  ;;  %v12651_v10 = vrot.slane %v5420_v48, 4  ;;  %v5868_v48 = vshll.u32 %v12657_v22, 16 }
 0x19a   : > { %11075 = vmatpush3.bf16.msra.mxu1 %v11708_v53  ;;  %11099 = vmatpush3.bf16.msra.mxu0 %v11709_v54  ;;  %v12616_v53 = vrot.slane %v5354_v35, 5  ;;  %v5584_v54 = vld [vmem:[#allocation2 + $0x3c] sm:$0xf] }
 0x19b   : > { %11076 = vmatprep.subr.bf16.mxu1 %v11713_v56  ;;  %11100 = vmatprep.subr.bf16.mxu0 %v11714_v57  ;;  %v5597_v14 = vshrl.u32 %v5584_v54, 16  ;;  %v5600_v15 = vshll.u32 %v5584_v54, 16  ;;  %v5872_v54 = vshrl.u32 %v12657_v22, 16 }
 0x19c   : > { %11045 = vmatmul.mubr.bf16.gmra.mxu1 %v11711_v60 }
 0x19d   : > { %11069 = vmatmul.mubr.bf16.gmra.mxu0 %v11712_v58  ;;  %11088 = vmatprep.mubr.bf16.mxu1 %v11720_v59  ;;  %v12623_v58 = vrot.slane %v5378_v40, 5  ;;  %v5585_v59 = vld [vmem:[#allocation2 + $0x40] sm:$0xf]  ;;  %v12677_v33 = vrot.slane %v5597_v14, 4  ;;  %v12679_v34 = vrot.slane %v5600_v15, 5  ;;  %v5357_v40 = vsel %vm12627_vm5, %v12618_v55, %v12616_v53 }
 0x19e   : > { %11077 = vmatpush3.bf16.msra.mxu1 %v11713_v56  ;;  %11101 = vmatpush3.bf16.msra.mxu0 %v11714_v57  ;;  %v12620_v56 = vrot.slane %v5365_v37, 4  ;;  %v5375_v57 = vor.u32 %v5374_v39, %v12606_v38  ;;  %v5606_v21 = vshll.u32 %v5585_v59, 16  ;;  %v5610_v25 = vshrl.u32 %v5585_v59, 16  ;;  %v11737_v37 = vld [vmem:[%s14063_s3 + $0x3a8] sm:$0xff]   ;;  %v12737_v14 = vld [vmem:[#allocation2 + $0x80] sm:$0x1] }
 0x19f   : > { %11112 = vmatprep.mubr.bf16.mxu0 %v11715_v63  ;;  %11078 = vmatprep.subr.bf16.mxu1 %v11716_v61  ;;  %v12633_v63 = vrot.slane %v5392_v41, 5  ;;  %v11738_v39 = vld [vmem:[%s14063_s3 + $0x3e8] sm:$0xff]   ;;  %v5423_v41 = vor.u32 %v12651_v10, %v12649_v9 }
 0x1a0   : > { %11102 = vmatprep.subr.bf16.mxu0 %v11717_v62  ;;  %v12665_v23 = vrot.slane %v5375_v57, 4  ;;  %v12693_v42 = vrot.slane %v5606_v21, 5  ;;  %v12714_v55 = vld [vmem:[#allocation2 + $0x4c] sm:$0xf]  ;;  %v11736_v57 = vld [vmem:[#allocation2 + $0x198] sm:$0xff]   ;;  %v5874_v21 = vrot.slane %v5872_v54, 4 }
 0x1a1   : > { %v5399_v28 = vor.u32 %v12635_v0, %v12633_v63  ;;  %v5850_v10 = vld [vmem:[#allocation2 + $0x88] sm:$0xf] }
 0x1a2   : > { %11079 = vmatpush3.bf16.msra.mxu1 %v11716_v61  ;;  %11103 = vmatpush3.bf16.msra.mxu0 %v11717_v62  ;;  %v12631_v62 = vld [vmem:[#allocation2 + $0x20] sm:$0x1] }
 0x1a3   : > { %11080 = vmatprep.subr.bf16.mxu1 %v11718_v1  ;;  %11104 = vmatprep.subr.bf16.mxu0 %v11719_v2  ;;  %v5402_v31 = vshll.u32 %v12631_v62, 16  ;;  %v12709_v52 = vrot.slane %v5399_v28, 4  ;;  %v11741_v62 = vld [vmem:[%s14063_s3 + $0x3e0] sm:$0xff]   ;;  %v5630_v28 = vshll.u32 %v12714_v55, 16 }
 0x1a5   : > { %v12711_v53 = vrot.slane %v5402_v31, 5  ;;  %v5634_v31 = vshrl.u32 %v12714_v55, 16 }
 0x1a6   : > { %11081 = vmatpush3.bf16.msra.mxu1 %v11718_v1  ;;  %11105 = vmatpush3.bf16.msra.mxu0 %v11719_v2  ;;  %v12637_v1 = vld [vmem:[#allocation2 + $0x2c] sm:$0x1]  ;;  %v12639_v2 = vrot.slane %v5407_v43, 4  ;;  %v5859_v43 = vshrl.u32 %v12655_v16, 16  ;;  %v5864_v16 = vrot.slane %v5862_v47, 5 }
 0x1a7   : > { %11082 = vmatprep.subr.bf16.mxu1 %v11721_v7  ;;  %11106 = vmatprep.subr.bf16.mxu0 %v11722_v8 }
 0x1a8   : > { %v5413_v20 = vor.u32 %v12641_v3, %v12639_v2  ;;  %v12723_v2 = vld [vmem:[#allocation2 + $0x44] sm:$0x1]  ;;  %v5861_v15 = vrot.slane %v5859_v43, 4  ;;  %v5896_v43 = vshrl.u32 %v5850_v10, 16 }
 0x1aa   : > { %11083 = vmatpush3.bf16.msra.mxu1 %v11721_v7  ;;  %11107 = vmatpush3.bf16.msra.mxu0 %v11722_v8  ;;  %v11734_v7 = vld [vmem:[%s14063_s3 + $0x3f0] sm:$0xff]   ;;  %v5389_v8 = vor.u32 %v5388_v46, %v5385_v45  ;;  %v11735_v45 = vld [vmem:[#allocation2 + $0x204] sm:$0xff]   ;;  %v12698_v46 = vrot.slane %v5610_v25, 4  ;;  %v12719_v0 = vrot.slane %v5413_v20, 4  ;;  %v11743_v20 = vld [vmem:[%s14063_s3 + $0x3d8] sm:$0xff]   ;;  %v5865_v47 = vor.u32 %v5864_v16, %v5861_v15 }
 0x1ab   : > { %11084 = vmatprep.subr.bf16.mxu1 %v11723_v18  ;;  %11108 = vmatprep.subr.bf16.mxu0 %v11724_v19 }
 0x1ac   : > { %v12667_v27 = vrot.slane %v5389_v8, 4  ;;  %v5603_v8 = vor.u32 %v12679_v34, %v12677_v33  ;;  %v5405_v34 = vsel %vm12627_vm5, %v12709_v52, %v12711_v53  ;;  %v12798_v16 = vrot.slane %v5865_v47, 4  ;;  %v11751_v52 = vld [vmem:[%s14063_s3 + $0x438] sm:$0xff]  }
 0x1ae   : > { %11085 = vmatpush3.bf16.msra.mxu1 %v11723_v18  ;;  %11109 = vmatpush3.bf16.msra.mxu0 %v11724_v19  ;;  %v10802_v49 = vpop.f32.mrf.mxu1  ;;  %v11731_v18 = vld [vmem:[#allocation2 + $0x1f8] sm:$0xff]   ;;  %v5395_v33 = vsel %vm12627_vm5, %v12667_v27, %v12633_v63 }
 0x1af   : > { %11086 = vmatprep.subr.bf16.mxu1 %v11725_v29  ;;  %11110 = vmatprep.subr.bf16.mxu0 %v11726_v32  ;;  %v11752_v63 = vld [vmem:[%s14063_s3 + $0x478] sm:$0xff]  }
 0x1b0   : > { %v2935_v60 = vpop.f32.mrf.mxu1 }
 0x1b2   : > { %11087 = vmatpush3.bf16.msra.mxu1 %v11725_v29  ;;  %11111 = vmatpush3.bf16.msra.mxu0 %v11726_v32  ;;  %v10826_v5 = vpop.f32.mrf.mxu0  ;;  %v10803_v17 = vpop.f32.mrf.mxu1  ;;  %v5426_v29 = vshll.u32 %v12637_v1, 16 }
 0x1b3   : > { %11120 = vmatprep.subr.bf16.mxu1 %v11729_v50  ;;  %11144 = vmatprep.subr.bf16.mxu0 %v11730_v51  ;;  %v12653_v12 = vadd.f32 %v10826_v5, %v10802_v49  ;;  %v12702_v49 = vld [vmem:[#allocation2 + $0x48] sm:$0xf] }
 0x1b4   : > { %v3072_v19 = vpop.f32.mrf.mxu0  ;;  %v2938_v35 = vpop.f32.mrf.mxu1  ;;  %v12721_v1 = vrot.slane %v5426_v29, 5  ;;  %v5621_v22 = vshrl.u32 %v12702_v49, 16  ;;  %v5849_v29 = vld [vmem:[#allocation2 + $0x84] sm:$0xf] }
 0x1b5   : > { %11089 = vmatmul.mubr.bf16.vlgmr.msra.gmra.mxu1 %v11727_v11  ;;  %11113 = vmatmul.mubr.bf16.vlgmr.msra.gmra.mxu0 %v11728_v4  ;;  %v12659_v30 = vadd.f32 %v3072_v19, %v2935_v60  ;;  %v9348_v60 = vcombine.low %v5347_v24, %v5357_v40  ;;  %v11739_v4 = vld [vmem:[#allocation2 + $0x1b0] sm:$0xff]   ;;  %v5371_v19 = vsel %vm12627_vm5, %v12620_v56, %v12606_v38 }
 0x1b6   : > { %11092 = vmatprep.mubr.bf16.mxu1 %v11731_v18  ;;  %11116 = vmatprep.mubr.bf16.mxu0 %v11732_v13  ;;  %v10827_v26 = vpop.f32.mrf.mxu0  ;;  %v5613_v13 = vor.u32 %v12698_v46, %v12693_v42  ;;  %v5623_v54 = vrot.slane %v5621_v22, 4 }
 0x1b7   : > { %11121 = vmatpush3.bf16.msra.mxu1 %v11729_v50  ;;  %11145 = vmatpush3.bf16.msra.mxu0 %v11730_v51  ;;  %v12673_v32 = vadd.f32 %v10827_v26, %v10803_v17  ;;  %v12707_v51 = vld [vmem:[%s14063_s3 + $0x3a0] sm:$0xff]   ;;  %v12739_v17 = vrot.slane %v5868_v48, 5  ;;  %v5624_v26 = vshll.u32 %v12702_v49, 16  ;;  %v5878_v49 = vshll.u32 %v12737_v14, 16  ;;  %v5853_v14 = vld [vmem:[#allocation2 + $0x94] sm:$0xf] }
 0x1b8   : > { %11122 = vmatprep.subr.bf16.mxu1 %v11733_v6  ;;  %11146 = vmatprep.subr.bf16.mxu0 %v11734_v7  ;;  %v3075_v36 = vpop.f32.mrf.mxu0  ;;  %v12773_v40 = vrot.slane %v5613_v13, 4  ;;  %v5920_v47 = vshrl.u32 %v5853_v14, 16 }
 0x1b9   : > { %v12696_v44 = vadd.f32 %v3075_v36, %v2938_v35  ;;  %v5616_v35 = vshll.u32 %v12723_v2, 16  ;;  %v5590_v36 = vld [vmem:[#allocation2 + $0x54] sm:$0xf]  ;;  %v5875_v48 = vor.u32 %v5874_v21, %v12739_v17  ;;  %v5626_v55 = vrot.slane %v5624_v26, 5 }
 0x1ba   : > { %v10830_v50 = vpop.f32.mrf.mxu0  ;;  %v11744_v2 = vld [vmem:[%s14063_s3 + $0x390] sm:$0xff]   ;;  %v5648_v13 = vshll.u32 %v5590_v36, 16 }
 0x1bb   : > { %11123 = vmatpush3.bf16.msra.mxu1 %v11733_v6  ;;  %11147 = vmatpush3.bf16.msra.mxu0 %v11734_v7  ;;  %v10806_v59 = vpop.f32.mrf.mxu1  ;;  %v5381_v6 = vsel %vm12627_vm5, %v12665_v23, %v12623_v58  ;;  %v12731_v7 = vrot.slane %v5423_v41, 4  ;;  %v11742_v23 = vld [vmem:[%s14063_s3 + $0x398] sm:$0xff]   ;;  %v5892_v41 = vshll.u32 %v5850_v10, 16  ;;  %v5898_v10 = vrot.slane %v5896_v43, 4 }
 0x1bc   : > { %11124 = vmatprep.subr.bf16.mxu1 %v11737_v37  ;;  %11148 = vmatprep.subr.bf16.mxu0 %v11738_v39  ;;  %v12725_v3 = vadd.f32 %v10830_v50, %v10806_v59  ;;  %v3088_v5 = vpop.f32.mrf.mxu0  ;;  %v12751_v25 = vcombine.low %v5371_v19, %v5381_v6  ;;  %v5589_v50 = vld [vmem:[#allocation2 + $0x50] sm:$0x1]  ;;  %v5636_v59 = vrot.slane %v5634_v31, 4  ;;  %v5886_v6 = vshll.u32 %v5849_v29, 16 }
 0x1bd   : > { %11093 = vmatmul.mubr.bf16.gmra.mxu1 %v11735_v45  ;;  %11117 = vmatmul.mubr.bf16.gmra.mxu0 %v11736_v57  ;;  %v2951_v11 = vpop.f32.mrf.mxu1  ;;  %v5591_v45 = vld [vmem:[#allocation2 + $0x58] sm:$0xf]  ;;  %v12780_v57 = vrot.slane %v5630_v28, 5  ;;  %v5618_v15 = vrot.slane %v5616_v35, 5  ;;  %v5876_v22 = vrot.slane %v5875_v48, 4  ;;  %v5627_v26 = vor.u32 %v5626_v55, %v5623_v54  ;;  %v11747_v28 = vld [vmem:[%s14063_s3 + $0x3c8] sm:$0xff]  }
 0x1be   : > { %11136 = vmatprep.mubr.bf16.mxu1 %v11739_v4  ;;  %11160 = vmatprep.mubr.bf16.mxu0 %v9348_v60  ;;  %v12741_v58 = vadd.f32 %v3088_v5, %v2951_v11  ;;  %v10831_v18 = vpop.f32.mrf.mxu0  ;;  %v5852_v60 = vld [vmem:[#allocation2 + $0x90] sm:$0xf]  ;;  %v5883_v5 = vshrl.u32 %v5849_v29, 16  ;;  %v5645_v11 = vshrl.u32 %v5590_v36, 16  ;;  %v5654_v19 = vshll.u32 %v5591_v45, 16 }
 0x1bf   : > { %11125 = vmatpush3.bf16.msra.mxu1 %v11737_v37  ;;  %11149 = vmatpush3.bf16.msra.mxu0 %v11738_v39  ;;  %v10807_v24 = vpop.f32.mrf.mxu1  ;;  %v12771_v39 = vrot.slane %v5603_v8, 4  ;;  %v11745_v4 = vld [vmem:[%s14063_s3 + $0x3d0] sm:$0xff]   ;;  %v12796_v8 = vrot.slane %v5892_v41, 5  ;;  %v5658_v21 = vshrl.u32 %v5591_v45, 16  ;;  %v5637_v31 = vor.u32 %v5636_v59, %v12780_v57  ;;  %v5592_v55 = vld [vmem:[#allocation2 + $0x5c] sm:$0x1] }
 0x1c0   : > { %11126 = vmatprep.subr.bf16.mxu1 %v12707_v51  ;;  %11150 = vmatprep.subr.bf16.mxu0 %v11741_v62  ;;  %v12757_v38 = vadd.f32 %v10831_v18, %v10807_v24  ;;  %v3091_v56 = vpop.f32.mrf.mxu0  ;;  %v5851_v18 = vld [vmem:[#allocation2 + $0x8c] sm:$0x1]  ;;  %v5880_v24 = vrot.slane %v5878_v49, 5  ;;  %v5885_v29 = vrot.slane %v5883_v5, 4  ;;  %v5647_v36 = vrot.slane %v5645_v11, 4  ;;  %v11748_v59 = vld [vmem:[%s14063_s3 + $0x380] sm:$0xff]  }
 0x1c1   : > { %v2954_v37 = vpop.f32.mrf.mxu1  ;;  %v5899_v35 = vor.u32 %v5898_v10, %v12796_v8  ;;  %v12808_v41 = vrot.slane %v5654_v19, 5  ;;  %v5660_v43 = vrot.slane %v5658_v21, 4  ;;  %v5916_v45 = vshll.u32 %v5853_v14, 16  ;;  %v5854_v11 = vld [vmem:[#allocation2 + $0x98] sm:$0x1] }
 0x1c2   : > { %v12775_v46 = vadd.f32 %v3091_v56, %v2954_v37  ;;  %v5907_v56 = vshrl.u32 %v5852_v60, 16  ;;  %v5650_v37 = vrot.slane %v5648_v13, 5  ;;  %v5609_v48 = vsel %vm12627_vm5, %v12771_v39, %v12693_v42 }
 0x1c3   : > { %11127 = vmatpush3.bf16.msra.mxu1 %v12707_v51  ;;  %11151 = vmatpush3.bf16.msra.mxu0 %v11741_v62  ;;  %v5419_v51 = vsel %vm12627_vm5, %v12719_v0, %v12649_v9  ;;  %v5429_v62 = vsel %vm12627_vm5, %v12731_v7, %v12721_v1  ;;  %v5640_v1 = vshll.u32 %v5589_v50, 16  ;;  %v11746_v7 = vld [vmem:[%s14063_s3 + $0x388] sm:$0xff]   ;;  %v5619_v49 = vsel %vm12627_vm5, %v12773_v40, %v5618_v15 }
 0x1c4   : > { %11128 = vmatprep.subr.bf16.mxu1 %v11742_v23  ;;  %11152 = vmatprep.subr.bf16.mxu0 %v11743_v20  ;;  %v5628_v50 = vrot.slane %v5627_v26, 4  ;;  %v5902_v54 = vshll.u32 %v5851_v18, 16  ;;  %v5909_v42 = vrot.slane %v5907_v56, 4  ;;  %v5871_v40 = vsel %vm12627_vm5, %v12798_v16, %v12739_v17  ;;  %v12873_v56 = vld [vmem:[#allocation2 + $0x9c] sm:$0xf] }
 0x1c5   : > { %v5881_v5 = vsel %vm12627_vm5, %v5876_v22, %v5880_v24  ;;  %v5900_v10 = vrot.slane %v5899_v35, 4  ;;  %v5651_v13 = vor.u32 %v5650_v37, %v5647_v36  ;;  %v5661_v14 = vor.u32 %v5660_v43, %v12808_v41  ;;  %v5593_v22 = vld [vmem:[#allocation2 + $0x60] sm:$0xf]  ;;  %v12866_v24 = vld [vmem:[#allocation2 + $0x64] sm:$0xf]  ;;  %v12879_v35 = vld [vmem:[%s14063_s3 + $0x430] sm:$0xff]  }
 0x1c6   : > { %v12830_v15 = vrot.slane %v5916_v45, 5  ;;  %v5922_v18 = vrot.slane %v5920_v47, 4  ;;  %v9350_v17 = vcombine.low %v5395_v33, %v5405_v34  ;;  %v12847_v16 = vcombine.low %v5419_v51, %v5429_v62  ;;  %v12886_v45 = vld [vmem:[#allocation2 + $0xa0] sm:$0xf] }
 0x1c7   : > { %11129 = vmatpush3.bf16.msra.mxu1 %v11742_v23  ;;  %11153 = vmatpush3.bf16.msra.mxu0 %v11743_v20  ;;  %v5910_v23 = vshll.u32 %v5852_v60, 16  ;;  %v5888_v20 = vrot.slane %v5886_v6, 5  ;;  %v11749_v60 = vld [vmem:[%s14063_s3 + $0x3c0] sm:$0xff]   ;;  %v12849_v19 = vcombine.low %v5609_v48, %v5619_v49  ;;  %v5904_v21 = vrot.slane %v5902_v54, 5 }
 0x1c8   : > { %11130 = vmatprep.subr.bf16.mxu1 %v11744_v2  ;;  %11154 = vmatprep.subr.bf16.mxu0 %v11745_v4  ;;  %v5633_v9 = vsel %vm12627_vm5, %v5628_v50, %v12780_v57  ;;  %v5664_v53 = vshll.u32 %v5592_v55, 16  ;;  %v12862_v33 = vcombine.low %v5871_v40, %v5881_v5  ;;  %v5926_v62 = vshll.u32 %v5854_v11, 16  ;;  %v12897_v55 = vld [vmem:[#allocation2 + $0x68] sm:$0x1] }
 0x1c9   : > { %v5912_v39 = vrot.slane %v5910_v23, 5  ;;  %v5889_v6 = vor.u32 %v5888_v20, %v5885_v29  ;;  %v5905_v51 = vsel %vm12627_vm5, %v5900_v10, %v5904_v21  ;;  %v12870_v57 = vrot.slane %v5661_v14, 4  ;;  %v11753_v20 = vld [vmem:[#allocation2 + $0x1c8] sm:$0xff]  }
 0x1ca   : > { %v5669_v29 = vshrl.u32 %v5593_v22, 16  ;;  %v5672_v43 = vshll.u32 %v5593_v22, 16  ;;  %v12893_v50 = vrot.slane %v5664_v53, 5  ;;  %v12929_v14 = vld [vmem:[%s14063_s3 + $0x428] sm:$0xff]   ;;  %v5934_v53 = vshll.u32 %v12873_v56, 16 }
 0x1cb   : > { %11131 = vmatpush3.bf16.msra.mxu1 %v11744_v2  ;;  %11155 = vmatpush3.bf16.msra.mxu0 %v11745_v4  ;;  %v5638_v2 = vrot.slane %v5637_v31, 4  ;;  %v5642_v4 = vrot.slane %v5640_v1, 5  ;;  %v5913_v0 = vor.u32 %v5912_v39, %v5909_v42  ;;  %v5890_v34 = vrot.slane %v5889_v6, 4  ;;  %v11750_v1 = vld [vmem:[#allocation2 + $0x1bc] sm:$0xff]   ;;  %v12906_v42 = vld [vmem:[#allocation2 + $0x10] sm:$0xf] }
 0x1cc   : > { %11132 = vmatprep.subr.bf16.mxu1 %v11746_v7  ;;  %11156 = vmatprep.subr.bf16.mxu0 %v11747_v28  ;;  %v5923_v31 = vor.u32 %v5922_v18, %v12830_v15  ;;  %v12908_v39 = vld [vmem:[#allocation2 + $0x48] sm:$0xf]  ;;  %v5667_v6 = vsel %vm12627_vm5, %v12870_v57, %v12893_v50  ;;  %v12921_v11 = vrot.slane %v5669_v29, 4  ;;  %v12938_v22 = vrot.slane %v5672_v43, 5  ;;  %v11760_v43 = vld [vmem:[%s14063_s3 + $0x460] sm:$0xff]  }
 0x1cd   : > { %v5643_v27 = vsel %vm12627_vm5, %v5638_v2, %v5642_v4  ;;  %v5895_v37 = vsel %vm12627_vm5, %v5890_v34, %v12796_v8  ;;  %v12895_v54 = vrot.slane %v5913_v0, 4  ;;  %v5678_v8 = vshll.u32 %v12866_v24, 16  ;;  %v12934_v18 = vld [vmem:[%s14063_s3 + $0x468] sm:$0xff]  }
 0x1ce   : > { %v12881_v36 = vcombine.low %v5633_v9, %v5643_v27  ;;  %v12891_v49 = vcombine.low %v5895_v37, %v5905_v51  ;;  %v12903_v2 = vrot.slane %v5926_v62, 5  ;;  %v5682_v4 = vshrl.u32 %v12866_v24, 16  ;;  %v12946_v51 = vld [vmem:[#allocation2 + $0xc] sm:$0xf]  ;;  %v11759_v37 = vld [vmem:[%s14063_s3 + $0x420] sm:$0xff]  }
 0x1cf   : > { %11133 = vmatpush3.bf16.msra.mxu1 %v11746_v7  ;;  %11157 = vmatpush3.bf16.msra.mxu0 %v11747_v28  ;;  %v12868_v28 = vrot.slane %v5651_v13, 4  ;;  %v12919_v10 = vrot.slane %v5923_v31, 4  ;;  %v12923_v13 = vld [vmem:[#allocation2 + $0x4c] sm:$0xf]  ;;  %v5931_v9 = vshrl.u32 %v12873_v56, 16  ;;  %v12941_v27 = vrot.slane %v5678_v8, 5 }
 0x1d0   : > { %11134 = vmatprep.subr.bf16.mxu1 %v11748_v59  ;;  %11158 = vmatprep.subr.bf16.mxu0 %v11749_v60  ;;  %v5940_v0 = vshll.u32 %v12886_v45, 16  ;;  %v5944_v34 = vshrl.u32 %v12886_v45, 16  ;;  %v6130_v31 = vshll.u32 %v12906_v42, 16  ;;  %v6134_v29 = vshrl.u32 %v12906_v42, 16 }
 0x1d1   : > { %v6383_v56 = vshrl.u32 %v12908_v39, 16 }
 0x1d2   : > { %v10874_v26 = vpop.f32.mrf.mxu0  ;;  %v10850_v7 = vpop.f32.mrf.mxu1  ;;  %v12978_v42 = vrot.slane %v5944_v34, 4 }
 0x1d3   : > { %11135 = vmatpush3.bf16.msra.mxu1 %v11748_v59  ;;  %11159 = vmatpush3.bf16.msra.mxu0 %v11749_v60  ;;  %v3267_v23 = vadd.f32 %v10850_v7, %v12653_v12  ;;  %v11755_v12 = vld [vmem:[%s14063_s3 + $0x470] sm:$0xff]  }
 0x1d4   : > { %11168 = vmatprep.subr.bf16.mxu1 %v11751_v52  ;;  %11192 = vmatprep.subr.bf16.mxu0 %v11752_v63  ;;  %v3405_v47 = vpop.f32.mrf.mxu0  ;;  %v3234_v48 = vpop.f32.mrf.mxu1 }
 0x1d5   : > { %v3265_v59 = vadd.f32 %v3234_v48, %v12659_v30  ;;  %v12901_v60 = vadd.f32 %v10874_v26, %v3267_v23  ;;  %v6386_v23 = vshll.u32 %v12908_v39, 16  ;;  %v6392_v48 = vshll.u32 %v12923_v13, 16 }
 0x1d6   : > { %11137 = vmatmul.mubr.bf16.vlgmr.msra.gmra.mxu1 %v11750_v1  ;;  %11161 = vmatmul.mubr.bf16.vlgmr.msra.gmra.mxu0 %v12751_v25  ;;  %v10875_v40 = vpop.f32.mrf.mxu0  ;;  %v10851_v5 = vpop.f32.mrf.mxu1  ;;  %v11756_v1 = vld [vmem:[#allocation2 + $0x1d4] sm:$0xff]   ;;  %v6396_v39 = vshrl.u32 %v12923_v13, 16 }
 0x1d7   : > { %11140 = vmatprep.mubr.bf16.mxu1 %v11753_v20  ;;  %11164 = vmatprep.mubr.bf16.mxu0 %v9350_v17  ;;  %v3268_v25 = vadd.f32 %v10851_v5, %v12673_v32  ;;  %v12936_v21 = vadd.f32 %v3405_v47, %v3265_v59  ;;  %v12959_v20 = vld [vmem:[#allocation2 + $0x18] sm:$0xf]  ;;  %v12970_v47 = vrot.slane %v5931_v9, 4  ;;  %v6124_v9 = vshll.u32 %v12946_v51, 16 }
 0x1d8   : > { %11169 = vmatpush3.bf16.msra.mxu1 %v11751_v52  ;;  %11193 = vmatpush3.bf16.msra.mxu0 %v11752_v63  ;;  %v3408_v17 = vpop.f32.mrf.mxu0  ;;  %v3237_v32 = vpop.f32.mrf.mxu1  ;;  %v12952_v52 = vrot.slane %v5682_v4, 4  ;;  %v5688_v63 = vshll.u32 %v12897_v55, 16  ;;  %v12976_v4 = vrot.slane %v5940_v0, 5  ;;  %v12997_v0 = vrot.slane %v6383_v56, 4 }
 0x1d9   : > { %11170 = vmatprep.subr.bf16.mxu1 %v12879_v35  ;;  %11194 = vmatprep.subr.bf16.mxu0 %v11755_v12  ;;  %v3266_v62 = vadd.f32 %v3237_v32, %v12696_v44  ;;  %v12950_v24 = vadd.f32 %v10875_v40, %v3268_v25  ;;  %v12981_v40 = vld [vmem:[#allocation2 + $0x1c] sm:$0xf]  ;;  %v6121_v25 = vshrl.u32 %v12946_v51, 16  ;;  %v12993_v32 = vrot.slane %v6130_v31, 5 }
 0x1da   : > { %v10878_v26 = vpop.f32.mrf.mxu0  ;;  %v10854_v7 = vpop.f32.mrf.mxu1  ;;  %v11762_v51 = vld [vmem:[%s14063_s3 + $0x458] sm:$0xff]   ;;  %v6398_v31 = vrot.slane %v6396_v39, 4 }
 0x1db   : > { %v3271_v44 = vadd.f32 %v10854_v7, %v12725_v3  ;;  %v12968_v45 = vadd.f32 %v3408_v17, %v3266_v62  ;;  %v12974_v3 = vrot.slane %v5934_v53, 5  ;;  %v12995_v53 = vrot.slane %v6134_v29, 4  ;;  %v6372_v62 = vld [vmem:[#allocation2 + $0x50] sm:$0x1] }
 0x1dc   : > { %11171 = vmatpush3.bf16.msra.mxu1 %v12879_v35  ;;  %11195 = vmatpush3.bf16.msra.mxu0 %v11755_v12  ;;  %v3421_v8 = vpop.f32.mrf.mxu0  ;;  %v3250_v59 = vpop.f32.mrf.mxu1  ;;  %v12988_v12 = vld [vmem:[#allocation2 + $0xa4] sm:$0x1]  ;;  %v6145_v7 = vshrl.u32 %v12959_v20, 16  ;;  %v6148_v29 = vshll.u32 %v12959_v20, 16 }
 0x1dd   : > { %11172 = vmatprep.subr.bf16.mxu1 %v12929_v14  ;;  %11196 = vmatprep.subr.bf16.mxu0 %v12934_v18  ;;  %v3269_v5 = vadd.f32 %v3250_v59, %v12741_v58  ;;  %v12986_v35 = vadd.f32 %v10878_v26, %v3271_v44  ;;  %v12999_v58 = vrot.slane %v6386_v23, 5  ;;  %v13010_v26 = vrot.slane %v6392_v48, 5 }
 0x1de   : > { %11141 = vmatmul.mubr.bf16.gmra.mxu1 %v11756_v1  ;;  %11165 = vmatmul.mubr.bf16.gmra.mxu0 %v12847_v16  ;;  %v10879_v13 = vpop.f32.mrf.mxu0  ;;  %v10855_v17 = vpop.f32.mrf.mxu1  ;;  %v11761_v16 = vld [vmem:[%s14063_s3 + $0x418] sm:$0xff]   ;;  %v5685_v48 = vor.u32 %v12952_v52, %v12941_v27  ;;  %v5950_v20 = vshll.u32 %v12988_v12, 16  ;;  %v6126_v59 = vrot.slane %v6124_v9, 5  ;;  %v6110_v52 = vld [vmem:[#allocation2 + $0x14] sm:$0x1]  ;;  %v6137_v55 = vor.u32 %v12995_v53, %v12993_v32 }
 0x1df   : > { %11184 = vmatprep.mubr.bf16.mxu1 %v12849_v19  ;;  %11208 = vmatprep.mubr.bf16.mxu0 %v12862_v33  ;;  %v3272_v34 = vadd.f32 %v10855_v17, %v12757_v38  ;;  %v13012_v1 = vadd.f32 %v3421_v8, %v3269_v5  ;;  %v5675_v33 = vor.u32 %v12938_v22, %v12921_v11  ;;  %v13033_v11 = vrot.slane %v5688_v63, 5 }
 0x1e0   : > { %11173 = vmatpush3.bf16.msra.mxu1 %v12929_v14  ;;  %11197 = vmatpush3.bf16.msra.mxu0 %v12934_v18  ;;  %v3253_v38 = vpop.f32.mrf.mxu1  ;;  %v6154_v14 = vshll.u32 %v12981_v40, 16  ;;  %v6158_v18 = vshrl.u32 %v12981_v40, 16  ;;  %v3424_v44 = vpop.f32.mrf.mxu0  ;;  %v5937_v22 = vor.u32 %v12974_v3, %v12970_v47  ;;  %v6123_v8 = vrot.slane %v6121_v25, 4  ;;  %v6373_v40 = vld [vmem:[#allocation2 + $0x54] sm:$0xf] }
 0x1e1   : > { %11174 = vmatprep.subr.bf16.mxu1 %v11759_v37  ;;  %11198 = vmatprep.subr.bf16.mxu0 %v11760_v43  ;;  %v3270_v56 = vadd.f32 %v3253_v38, %v12775_v46  ;;  %v13025_v23 = vadd.f32 %v10879_v13, %v3272_v34  ;;  %v5947_v46 = vor.u32 %v12978_v42, %v12976_v4  ;;  %v6402_v47 = vshll.u32 %v6372_v62, 16  ;;  %v6113_v3 = vld [vmem:[#allocation2 + $0x20] sm:$0x1]  ;;  %v11763_v42 = vld [vmem:[%s14063_s3 + $0x410] sm:$0xff]   ;;  %v6374_v38 = vld [vmem:[#allocation2 + $0x58] sm:$0xf] }
 0x1e2   : > { %v6389_v63 = vor.u32 %v12999_v58, %v12997_v0  ;;  %v6147_v5 = vrot.slane %v6145_v7, 4  ;;  %v6150_v12 = vrot.slane %v6148_v29, 5  ;;  %v13053_v25 = vrot.slane %v6154_v14, 5 }
 0x1e3   : > { %v13040_v39 = vadd.f32 %v3424_v44, %v3270_v56  ;;  %v6160_v9 = vrot.slane %v6158_v18, 4  ;;  %v5676_v13 = vrot.slane %v5675_v33, 4  ;;  %v5686_v17 = vrot.slane %v5685_v48, 4  ;;  %v11765_v33 = vld [vmem:[%s14063_s3 + $0x408] sm:$0xff]  }
 0x1e4   : > { %11175 = vmatpush3.bf16.msra.mxu1 %v11759_v37  ;;  %11199 = vmatpush3.bf16.msra.mxu0 %v11760_v43  ;;  %v11764_v37 = vld [vmem:[%s14063_s3 + $0x450] sm:$0xff]   ;;  %v6399_v43 = vor.u32 %v6398_v31, %v13010_v26  ;;  %v6407_v53 = vshrl.u32 %v6373_v40, 16  ;;  %v6410_v0 = vshll.u32 %v6373_v40, 16  ;;  %v5938_v58 = vrot.slane %v5937_v22, 4  ;;  %v11766_v31 = vld [vmem:[%s14063_s3 + $0x448] sm:$0xff]  }
 0x1e5   : > { %11176 = vmatprep.subr.bf16.mxu1 %v11761_v16  ;;  %11200 = vmatprep.subr.bf16.mxu0 %v11762_v51  ;;  %v5948_v34 = vrot.slane %v5947_v46, 4  ;;  %v5952_v62 = vrot.slane %v5950_v20, 5  ;;  %v6140_v7 = vshll.u32 %v6110_v52, 16  ;;  %v6127_v56 = vor.u32 %v6126_v59, %v6123_v8 }
 0x1e6   : > { %v6138_v44 = vrot.slane %v6137_v55, 4  ;;  %v6404_v19 = vrot.slane %v6402_v47, 5  ;;  %v6164_v30 = vshll.u32 %v6113_v3, 16  ;;  %v6390_v29 = vrot.slane %v6389_v63, 4 }
 0x1e7   : > { %v6400_v14 = vrot.slane %v6399_v43, 4  ;;  %v6151_v18 = vor.u32 %v6150_v12, %v6147_v5  ;;  %v6412_v48 = vrot.slane %v6410_v0, 5  ;;  %v6416_v22 = vshll.u32 %v6374_v38, 16  ;;  %v6114_v5 = vld [vmem:[#allocation2 + $0x24] sm:$0xf] }
 0x1e8   : > { %11177 = vmatpush3.bf16.msra.mxu1 %v11761_v16  ;;  %11201 = vmatpush3.bf16.msra.mxu0 %v11762_v51  ;;  %v6161_v16 = vor.u32 %v6160_v9, %v13053_v25  ;;  %v6409_v51 = vrot.slane %v6407_v53, 4  ;;  %v6420_v20 = vshrl.u32 %v6374_v38, 16  ;;  %v5929_v46 = vsel %vm12627_vm5, %v12919_v10, %v12903_v2  ;;  %v6375_v10 = vld [vmem:[#allocation2 + $0x5c] sm:$0x1]  ;;  %v6115_v9 = vld [vmem:[#allocation2 + $0x28] sm:$0xf] }
 0x1e9   : > { %11178 = vmatprep.subr.bf16.mxu1 %v11763_v42  ;;  %11202 = vmatprep.subr.bf16.mxu0 %v11764_v37  ;;  %v5681_v8 = vsel %vm12627_vm5, %v5676_v13, %v12941_v27  ;;  %v5691_v59 = vsel %vm12627_vm5, %v5686_v17, %v13033_v11  ;;  %v6142_v40 = vrot.slane %v6140_v7, 5  ;;  %v5943_v52 = vsel %vm12627_vm5, %v5938_v58, %v12976_v4  ;;  %v11767_v27 = vld [vmem:[%s14063_s3 + $0x400] sm:$0xff]  }
 0x1ea   : > { %v5953_v55 = vsel %vm12627_vm5, %v5948_v34, %v5952_v62  ;;  %v6128_v63 = vrot.slane %v6127_v56, 4  ;;  %v6166_v2 = vrot.slane %v6164_v30, 5  ;;  %v11768_v11 = vld [vmem:[%s14063_s3 + $0x440] sm:$0xff]   ;;  %v6395_v4 = vsel %vm12627_vm5, %v6390_v29, %v13010_v26 }
 0x1eb   : > { %v6143_v47 = vsel %vm12627_vm5, %v6138_v44, %v6142_v40  ;;  %v6405_v30 = vsel %vm12627_vm5, %v6400_v14, %v6404_v19  ;;  %v6152_v3 = vrot.slane %v6151_v18, 4  ;;  %v13090_v43 = vrot.slane %v6416_v22, 5  ;;  %v6377_v7 = vld [vmem:[#allocation2 + $0x64] sm:$0xf] }
 0x1ec   : > { %11179 = vmatpush3.bf16.msra.mxu1 %v11763_v42  ;;  %11203 = vmatpush3.bf16.msra.mxu0 %v11764_v37  ;;  %v6162_v42 = vrot.slane %v6161_v16, 4  ;;  %v6413_v37 = vor.u32 %v6412_v48, %v6409_v51  ;;  %v6422_v12 = vrot.slane %v6420_v20, 4  ;;  %v14073_v26 = vsel %vm12627_vm5, %v12868_v28, %v12808_v41  ;;  %v6116_v16 = vld [vmem:[#allocation2 + $0x2c] sm:$0x1] }
 0x1ed   : > { %11180 = vmatprep.subr.bf16.mxu1 %v11765_v33  ;;  %11204 = vmatprep.subr.bf16.mxu0 %v11766_v31  ;;  %v9378_v13 = vcombine.low %v14073_v26, %v5667_v6  ;;  %v14074_v19 = vsel %vm12627_vm5, %v12895_v54, %v12830_v15  ;;  %v13107_v53 = vcombine.low %v5681_v8, %v5691_v59  ;;  %v6426_v28 = vshll.u32 %v6375_v10, 16  ;;  %v6376_v6 = vld [vmem:[#allocation2 + $0x60] sm:$0xf]  ;;  %v11769_v15 = vld [vmem:[%s14063_s3 + $0x4b8] sm:$0xff]   ;;  %v11771_v10 = vld [vmem:[%s14063_s3 + $0x4b0] sm:$0xff]  }
 0x1ee   : > { %v9406_v17 = vcombine.low %v14074_v19, %v5929_v46  ;;  %v13109_v0 = vcombine.low %v5943_v52, %v5953_v55  ;;  %v6133_v57 = vsel %vm12627_vm5, %v6128_v63, %v12993_v32  ;;  %v6167_v41 = vsel %vm12627_vm5, %v6162_v42, %v6166_v2  ;;  %v11770_v54 = vld [vmem:[%s14063_s3 + $0x4f8] sm:$0xff]   ;;  %v6117_v63 = vld [vmem:[#allocation2 + $0x30] sm:$0xf] }
 0x1ef   : > { %v6169_v50 = vshrl.u32 %v6114_v5, 16  ;;  %v13122_v58 = vcombine.low %v6133_v57, %v6143_v47  ;;  %v13124_v34 = vcombine.low %v6395_v4, %v6405_v30  ;;  %v6172_v32 = vshll.u32 %v6114_v5, 16 }
 0x1f0   : > { %11181 = vmatpush3.bf16.msra.mxu1 %v11765_v33  ;;  %11205 = vmatpush3.bf16.msra.mxu0 %v11766_v31  ;;  %v6178_v62 = vshll.u32 %v6115_v9, 16  ;;  %v6157_v56 = vsel %vm12627_vm5, %v6152_v3, %v13053_v25  ;;  %v13129_v44 = vrot.slane %v6413_v37, 4  ;;  %v6423_v33 = vor.u32 %v6422_v12, %v13090_v43  ;;  %v6118_v12 = vld [vmem:[#allocation2 + $0x34] sm:$0xf] }
 0x1f1   : > { %11182 = vmatprep.subr.bf16.mxu1 %v11767_v27  ;;  %11206 = vmatprep.subr.bf16.mxu0 %v11768_v11  ;;  %v6182_v31 = vshrl.u32 %v6115_v9, 16  ;;  %v13133_v18 = vcombine.low %v6157_v56, %v6167_v41  ;;  %v6431_v51 = vshrl.u32 %v6376_v6, 16  ;;  %v6434_v48 = vshll.u32 %v6376_v6, 16  ;;  %v6379_v6 = vld [vmem:[#allocation2 + $0x6c] sm:$0xf] }
 0x1f2   : > { %v10898_v38 = vpop.f32.mrf.mxu1  ;;  %v13135_v20 = vrot.slane %v6426_v28, 5  ;;  %v13137_v46 = vrot.slane %v6169_v50, 4  ;;  %v6440_v25 = vshll.u32 %v6377_v7, 16  ;;  %v6444_v8 = vshrl.u32 %v6377_v7, 16  ;;  %v6378_v50 = vld [vmem:[#allocation2 + $0x68] sm:$0x1] }
 0x1f3   : > { %v3609_v29 = vadd.f32 %v10898_v38, %v12901_v60  ;;  %v10922_v14 = vpop.f32.mrf.mxu0  ;;  %v13142_v52 = vrot.slane %v6172_v32, 5  ;;  %v13144_v55 = vrot.slane %v6178_v62, 5  ;;  %v13158_v47 = vrot.slane %v6182_v31, 4 }
 0x1f4   : > { %11183 = vmatpush3.bf16.msra.mxu1 %v11767_v27  ;;  %11207 = vmatpush3.bf16.msra.mxu0 %v11768_v11  ;;  %v3576_v22 = vpop.f32.mrf.mxu1  ;;  %v11772_v27 = vld [vmem:[%s14063_s3 + $0x4f0] sm:$0xff]   ;;  %v13156_v11 = vrot.slane %v6423_v33, 4  ;;  %v6188_v4 = vshll.u32 %v6116_v16, 16  ;;  %v13165_v42 = vrot.slane %v6431_v51, 4  ;;  %v13167_v37 = vrot.slane %v6434_v48, 5 }
 0x1f5   : > { %11216 = vmatprep.subr.bf16.mxu1 %v11769_v15  ;;  %11240 = vmatprep.subr.bf16.mxu0 %v11770_v54  ;;  %v3607_v59 = vadd.f32 %v3576_v22, %v12936_v21  ;;  %v13140_v60 = vadd.f32 %v10922_v14, %v3609_v29  ;;  %v3746_v40 = vpop.f32.mrf.mxu0  ;;  %v6419_v21 = vsel %vm12627_vm5, %v13129_v44, %v13090_v43  ;;  %v13169_v26 = vrot.slane %v6440_v25, 5  ;;  %v6380_v29 = vld [vmem:[#allocation2 + $0x70] sm:$0xf]  ;;  %v11781_v43 = vld [vmem:[%s14063_s3 + $0x488] sm:$0xff]  }
 0x1f6   : > { %v10899_v2 = vpop.f32.mrf.mxu1  ;;  %v6446_v19 = vrot.slane %v6444_v8, 4  ;;  %v6193_v57 = vshrl.u32 %v6117_v63, 16  ;;  %v6175_v28 = vor.u32 %v13142_v52, %v13137_v46  ;;  %v6202_v32 = vshll.u32 %v6118_v12, 16  ;;  %v11775_v52 = vld [vmem:[%s14063_s3 + $0x4a0] sm:$0xff]   ;;  %v11782_v44 = vld [vmem:[%s14063_s3 + $0x4c8] sm:$0xff]  }
 0x1f7   : > { %11185 = vmatmul.mubr.bf16.vlgmr.msra.gmra.mxu1 %v12881_v36  ;;  %11209 = vmatmul.mubr.bf16.vlgmr.msra.gmra.mxu0 %v12891_v49  ;;  %v3610_v30 = vadd.f32 %v10899_v2, %v12950_v24  ;;  %v13163_v3 = vadd.f32 %v3746_v40, %v3607_v59  ;;  %v10923_v5 = vpop.f32.mrf.mxu0  ;;  %v6196_v36 = vshll.u32 %v6117_v63, 16  ;;  %v6206_v62 = vshrl.u32 %v6118_v12, 16  ;;  %v11776_v63 = vld [vmem:[%s14063_s3 + $0x4e0] sm:$0xff]  }
 0x1f8   : > { %11188 = vmatprep.mubr.bf16.mxu1 %v9378_v13  ;;  %11212 = vmatprep.mubr.bf16.mxu0 %v9406_v17  ;;  %v3579_v9 = vpop.f32.mrf.mxu1  ;;  %v11773_v17 = vld [vmem:[%s14063_s3 + $0x4a8] sm:$0xff]   ;;  %v6185_v33 = vor.u32 %v13158_v47, %v13144_v55  ;;  %v6437_v31 = vor.u32 %v13167_v37, %v13165_v42  ;;  %v6447_v16 = vor.u32 %v6446_v19, %v13169_v26  ;;  %v6450_v51 = vshll.u32 %v6378_v50, 16  ;;  %v6632_v37 = vld [vmem:[#allocation2 + $0xb4] sm:$0xf] }
 0x1f9   : > { %11217 = vmatpush3.bf16.msra.mxu1 %v11769_v15  ;;  %11241 = vmatpush3.bf16.msra.mxu0 %v11770_v54  ;;  %v3608_v49 = vadd.f32 %v3579_v9, %v12968_v45  ;;  %v13172_v24 = vadd.f32 %v10923_v5, %v3610_v30  ;;  %v3749_v41 = vpop.f32.mrf.mxu0  ;;  %v11774_v15 = vld [vmem:[%s14063_s3 + $0x4e8] sm:$0xff]   ;;  %v6429_v45 = vsel %vm12627_vm5, %v13156_v11, %v13135_v20  ;;  %v13186_v54 = vrot.slane %v6188_v4, 5  ;;  %v6897_v11 = vld [vmem:[#allocation2 + $0xfc] sm:$0xf] }
 0x1fa   : > { %11218 = vmatprep.subr.bf16.mxu1 %v11771_v10  ;;  %11242 = vmatprep.subr.bf16.mxu0 %v11772_v27  ;;  %v10902_v13 = vpop.f32.mrf.mxu1  ;;  %v13196_v48 = vrot.slane %v6193_v57, 4  ;;  %v13198_v22 = vrot.slane %v6196_v36, 5  ;;  %v6455_v8 = vshrl.u32 %v6379_v6, 16  ;;  %v6458_v59 = vshll.u32 %v6379_v6, 16  ;;  %v11778_v6 = vld [vmem:[%s14063_s3 + $0x4d8] sm:$0xff]  }
 0x1fb   : > { %v3613_v7 = vadd.f32 %v10902_v13, %v12986_v35  ;;  %v13189_v38 = vadd.f32 %v3749_v41, %v3608_v49  ;;  %v10926_v56 = vpop.f32.mrf.mxu0  ;;  %v13209_v2 = vrot.slane %v6202_v32, 5  ;;  %v6176_v5 = vrot.slane %v6175_v28, 4  ;;  %v6119_v41 = vld [vmem:[#allocation2 + $0x38] sm:$0x1]  ;;  %v6381_v28 = vld [vmem:[#allocation2 + $0x74] sm:$0x1] }
 0x1fc   : > { %v3592_v14 = vpop.f32.mrf.mxu1  ;;  %v6186_v42 = vrot.slane %v6185_v33, 4  ;;  %v6438_v9 = vrot.slane %v6437_v31, 4  ;;  %v6448_v19 = vrot.slane %v6447_v16, 4  ;;  %v6452_v57 = vrot.slane %v6450_v51, 5  ;;  %v6894_v33 = vld [vmem:[#allocation2 + $0xf0] sm:$0xf] }
 0x1fd   : > { %11219 = vmatpush3.bf16.msra.mxu1 %v11771_v10  ;;  %11243 = vmatpush3.bf16.msra.mxu0 %v11772_v27  ;;  %v3611_v35 = vadd.f32 %v3592_v14, %v13012_v1  ;;  %v13201_v46 = vadd.f32 %v10926_v56, %v3613_v7  ;;  %v3762_v25 = vpop.f32.mrf.mxu0  ;;  %v6208_v10 = vrot.slane %v6206_v62, 4  ;;  %v6464_v1 = vshll.u32 %v6380_v29, 16 }
 0x1fe   : > { %11220 = vmatprep.subr.bf16.mxu1 %v11773_v17  ;;  %11244 = vmatprep.subr.bf16.mxu0 %v11774_v15  ;;  %v10903_v40 = vpop.f32.mrf.mxu1  ;;  %v6468_v27 = vshrl.u32 %v6380_v29, 16  ;;  %v6460_v50 = vrot.slane %v6458_v59, 5  ;;  %v6648_v62 = vshll.u32 %v6632_v37, 16  ;;  %v6181_v31 = vsel %vm12627_vm5, %v6176_v5, %v13144_v55  ;;  %v11779_v55 = vld [vmem:[%s14063_s3 + $0x490] sm:$0xff]  }
 0x1ff   : > { %11189 = vmatmul.mubr.bf16.gmra.mxu1 %v13107_v53  ;;  %11213 = vmatmul.mubr.bf16.gmra.mxu0 %v13109_v0  ;;  %v3614_v47 = vadd.f32 %v10903_v40, %v13025_v23  ;;  %v13214_v4 = vadd.f32 %v3762_v25, %v3611_v35  ;;  %v10927_v30 = vpop.f32.mrf.mxu0  ;;  %v6199_v53 = vor.u32 %v13198_v22, %v13196_v48  ;;  %v6633_v0 = vld [vmem:[#allocation2 + $0xb8] sm:$0xf]  ;;  %v6212_v16 = vshll.u32 %v6119_v41, 16  ;;  %v6895_v25 = vld [vmem:[#allocation2 + $0xf4] sm:$0xf] }
 0x200   : > { %11232 = vmatprep.mubr.bf16.mxu1 %v13122_v58  ;;  %11256 = vmatprep.mubr.bf16.mxu0 %v13124_v34  ;;  %v3595_v12 = vpop.f32.mrf.mxu1  ;;  %v6457_v58 = vrot.slane %v6455_v8, 4  ;;  %v11777_v34 = vld [vmem:[%s14063_s3 + $0x498] sm:$0xff]   ;;  %v6209_v13 = vor.u32 %v6208_v10, %v13209_v2  ;;  %v6654_v7 = vshll.u32 %v6633_v0, 16  ;;  %v6658_v56 = vshrl.u32 %v6633_v0, 16 }
 0x201   : > { %11221 = vmatpush3.bf16.msra.mxu1 %v11773_v17  ;;  %11245 = vmatpush3.bf16.msra.mxu0 %v11774_v15  ;;  %v3612_v23 = vadd.f32 %v3595_v12, %v13040_v39  ;;  %v13221_v36 = vadd.f32 %v10927_v30, %v3614_v47  ;;  %v3765_v49 = vpop.f32.mrf.mxu0  ;;  %v13230_v39 = vrot.slane %v6464_v1, 5  ;;  %v6470_v17 = vrot.slane %v6468_v27, 4  ;;  %v6636_v12 = vld [vmem:[#allocation2 + $0xc4] sm:$0xf] }
 0x202   : > { %11222 = vmatprep.subr.bf16.mxu1 %v11775_v52  ;;  %11246 = vmatprep.subr.bf16.mxu0 %v11776_v63  ;;  %v6645_v15 = vshrl.u32 %v6632_v37, 16  ;;  %v6191_v29 = vsel %vm12627_vm5, %v6186_v42, %v13186_v54  ;;  %v6443_v14 = vsel %vm12627_vm5, %v6438_v9, %v13169_v26  ;;  %v6453_v51 = vsel %vm12627_vm5, %v6448_v19, %v6452_v57  ;;  %v11780_v26 = vld [vmem:[%s14063_s3 + $0x4d0] sm:$0xff]   ;;  %v6635_v37 = vld [vmem:[#allocation2 + $0xc0] sm:$0xf] }
 0x203   : > { %v13232_v32 = vadd.f32 %v3765_v49, %v3612_v23  ;;  %v13245_v48 = vrot.slane %v6199_v53, 4  ;;  %v6461_v22 = vor.u32 %v6460_v50, %v6457_v58  ;;  %v6474_v35 = vshll.u32 %v6381_v28, 16 }
 0x204   : > { %v13253_v54 = vrot.slane %v6209_v13, 4  ;;  %v6471_v8 = vor.u32 %v6470_v17, %v13230_v39  ;;  %v6907_v59 = vshrl.u32 %v6894_v33, 16  ;;  %v6910_v40 = vshll.u32 %v6894_v33, 16  ;;  %v6898_v13 = vld [vmem:[#allocation2 + $0x100] sm:$0xf] }
 0x205   : > { %11223 = vmatpush3.bf16.msra.mxu1 %v11775_v52  ;;  %11247 = vmatpush3.bf16.msra.mxu0 %v11776_v63  ;;  %v6634_v52 = vld [vmem:[#allocation2 + $0xbc] sm:$0x1]  ;;  %v6647_v63 = vrot.slane %v6645_v15, 4  ;;  %v6650_v10 = vrot.slane %v6648_v62, 5  ;;  %v13256_v1 = vrot.slane %v6654_v7, 5  ;;  %v6660_v27 = vrot.slane %v6658_v56, 4 }
 0x206   : > { %11224 = vmatprep.subr.bf16.mxu1 %v11777_v34  ;;  %11248 = vmatprep.subr.bf16.mxu0 %v11778_v6  ;;  %v13268_v47 = vcombine.low %v6419_v21, %v6429_v45  ;;  %v13270_v30 = vcombine.low %v6181_v31, %v6191_v29  ;;  %v6916_v5 = vshll.u32 %v6895_v25, 16  ;;  %v6920_v42 = vshrl.u32 %v6895_v25, 16  ;;  %v6896_v17 = vld [vmem:[#allocation2 + $0xf8] sm:$0x1]  ;;  %v11783_v56 = vld [vmem:[%s14063_s3 + $0x480] sm:$0xff]  }
 0x207   : > { %v13272_v9 = vcombine.low %v6443_v14, %v6453_v51  ;;  %v6214_v19 = vrot.slane %v6212_v16, 5  ;;  %v6462_v57 = vrot.slane %v6461_v22, 4  ;;  %v6476_v20 = vrot.slane %v6474_v35, 5  ;;  %v11784_v33 = vld [vmem:[%s14063_s3 + $0x4c0] sm:$0xff]   ;;  %v6637_v22 = vld [vmem:[#allocation2 + $0xc8] sm:$0x1] }
 0x208   : > { %v6472_v21 = vrot.slane %v6471_v8, 4  ;;  %v6664_v45 = vshll.u32 %v6634_v52, 16  ;;  %v6909_v53 = vrot.slane %v6907_v59, 4  ;;  %v6912_v0 = vrot.slane %v6910_v40, 5 }
 0x209   : > { %11225 = vmatpush3.bf16.msra.mxu1 %v11777_v34  ;;  %11249 = vmatpush3.bf16.msra.mxu0 %v11778_v6  ;;  %v6205_v23 = vsel %vm12627_vm5, %v13245_v48, %v13209_v2  ;;  %v6215_v49 = vsel %vm12627_vm5, %v13253_v54, %v6214_v19  ;;  %v6651_v41 = vor.u32 %v6650_v10, %v6647_v63  ;;  %v13288_v58 = vrot.slane %v6916_v5, 5  ;;  %v11785_v63 = vld [vmem:[%s14063_s3 + $0x538] sm:$0xff]  }
 0x20a   : > { %11226 = vmatprep.subr.bf16.mxu1 %v11779_v55  ;;  %11250 = vmatprep.subr.bf16.mxu0 %v11780_v26  ;;  %v6661_v28 = vor.u32 %v6660_v27, %v13256_v1  ;;  %v6922_v50 = vrot.slane %v6920_v42, 4  ;;  %v6669_v34 = vshrl.u32 %v6635_v37, 16  ;;  %v6672_v6 = vshll.u32 %v6635_v37, 16  ;;  %v11786_v10 = vld [vmem:[%s14063_s3 + $0x578] sm:$0xff]  }
 0x20b   : > { %v6678_v15 = vshll.u32 %v6636_v12, 16  ;;  %v6682_v62 = vshrl.u32 %v6636_v12, 16  ;;  %v6931_v7 = vshrl.u32 %v6897_v11, 16  ;;  %v6934_v2 = vshll.u32 %v6897_v11, 16  ;;  %v6638_v12 = vld [vmem:[#allocation2 + $0xcc] sm:$0xf] }
 0x20c   : > { %v6467_v31 = vsel %vm12627_vm5, %v6462_v57, %v13230_v39  ;;  %v6477_v29 = vsel %vm12627_vm5, %v6472_v21, %v6476_v20  ;;  %v13301_v14 = vrot.slane %v6664_v45, 5  ;;  %v6913_v16 = vor.u32 %v6912_v0, %v6909_v53 }
 0x20d   : > { %11227 = vmatpush3.bf16.msra.mxu1 %v11779_v55  ;;  %11251 = vmatpush3.bf16.msra.mxu0 %v11780_v26  ;;  %v13303_v51 = vrot.slane %v6651_v41, 4  ;;  %v13305_v48 = vrot.slane %v6661_v28, 4  ;;  %v6940_v35 = vshll.u32 %v6898_v13, 16  ;;  %v6944_v25 = vshrl.u32 %v6898_v13, 16 }
 0x20e   : > { %11228 = vmatprep.subr.bf16.mxu1 %v11781_v43  ;;  %11252 = vmatprep.subr.bf16.mxu0 %v11782_v44  ;;  %v6923_v55 = vor.u32 %v6922_v50, %v13288_v58  ;;  %v6926_v26 = vshll.u32 %v6896_v17, 16  ;;  %v6671_v54 = vrot.slane %v6669_v34, 4  ;;  %v6674_v8 = vrot.slane %v6672_v6, 5 }
 0x20f   : > { %v13308_v39 = vrot.slane %v6678_v15, 5  ;;  %v6684_v59 = vrot.slane %v6682_v62, 4  ;;  %v6933_v40 = vrot.slane %v6931_v7, 4  ;;  %v6936_v52 = vrot.slane %v6934_v2, 5  ;;  %v6640_v62 = vld [vmem:[#allocation2 + $0xd4] sm:$0x1] }
 0x210   : > { %v13316_v27 = vcombine.low %v6205_v23, %v6215_v49  ;;  %v13318_v5 = vcombine.low %v6467_v31, %v6477_v29  ;;  %v13320_v42 = vrot.slane %v6913_v16, 4  ;;  %v6688_v37 = vshll.u32 %v6637_v22, 16  ;;  %v6899_v23 = vld [vmem:[#allocation2 + $0x104] sm:$0x1]  ;;  %v6639_v49 = vld [vmem:[#allocation2 + $0xd0] sm:$0xf] }
 0x211   : > { %11229 = vmatpush3.bf16.msra.mxu1 %v11781_v43  ;;  %11253 = vmatpush3.bf16.msra.mxu0 %v11782_v44  ;;  %v6657_v20 = vsel %vm12627_vm5, %v13303_v51, %v13256_v1  ;;  %v6667_v11 = vsel %vm12627_vm5, %v13305_v48, %v13301_v14  ;;  %v13330_v43 = vrot.slane %v6940_v35, 5  ;;  %v6946_v44 = vrot.slane %v6944_v25, 4  ;;  %v11787_v2 = vld [vmem:[%s14063_s3 + $0x530] sm:$0xff]  }
 0x212   : > { %11230 = vmatprep.subr.bf16.mxu1 %v11783_v56  ;;  %11254 = vmatprep.subr.bf16.mxu0 %v11784_v33  ;;  %v6924_v45 = vrot.slane %v6923_v55, 4  ;;  %v6928_v53 = vrot.slane %v6926_v26, 5  ;;  %v6675_v0 = vor.u32 %v6674_v8, %v6671_v54  ;;  %v6685_v1 = vor.u32 %v6684_v59, %v13308_v39  ;;  %v13368_v59 = vld [vmem:[#allocation2 + $0x108] sm:$0xf] }
 0x213   : > { %v10946_v19 = vpop.f32.mrf.mxu1  ;;  %v10970_v57 = vpop.f32.mrf.mxu0  ;;  %v6937_v50 = vor.u32 %v6936_v52, %v6933_v40  ;;  %v6693_v34 = vshrl.u32 %v6638_v12, 16  ;;  %v6696_v6 = vshll.u32 %v6638_v12, 16  ;;  %v13341_v15 = vrot.slane %v6688_v37, 5  ;;  %v11790_v40 = vld [vmem:[%s14063_s3 + $0x568] sm:$0xff]  }
 0x214   : > { %v3949_v21 = vadd.f32 %v10946_v19, %v13140_v60  ;;  %v6919_v60 = vsel %vm12627_vm5, %v13320_v42, %v13288_v58  ;;  %v6950_v31 = vshll.u32 %v6899_v23, 16  ;;  %v6702_v29 = vshll.u32 %v6639_v49, 16 }
 0x215   : > { %11231 = vmatpush3.bf16.msra.mxu1 %v11783_v56  ;;  %11255 = vmatpush3.bf16.msra.mxu0 %v11784_v33  ;;  %v3916_v41 = vpop.f32.mrf.mxu1  ;;  %v4086_v28 = vpop.f32.mrf.mxu0  ;;  %v11788_v56 = vld [vmem:[%s14063_s3 + $0x570] sm:$0xff]   ;;  %v6947_v33 = vor.u32 %v6946_v44, %v13330_v43  ;;  %v6706_v14 = vshrl.u32 %v6639_v49, 16  ;;  %v6929_v51 = vsel %vm12627_vm5, %v6924_v45, %v6928_v53  ;;  %v13357_v48 = vrot.slane %v6675_v0, 4  ;;  %v6641_v0 = vld [vmem:[#allocation2 + $0xd8] sm:$0xf] }
 0x216   : > { %11264 = vmatprep.subr.bf16.mxu1 %v11785_v63  ;;  %11288 = vmatprep.subr.bf16.mxu0 %v11786_v10  ;;  %v3947_v13 = vadd.f32 %v3916_v41, %v13163_v3  ;;  %v13335_v17 = vadd.f32 %v10970_v57, %v3949_v21  ;;  %v13361_v25 = vrot.slane %v6685_v1, 4  ;;  %v6698_v55 = vrot.slane %v6696_v6, 5  ;;  %v6642_v1 = vld [vmem:[#allocation2 + $0xdc] sm:$0xf]  ;;  %v11792_v6 = vld [vmem:[%s14063_s3 + $0x560] sm:$0xff]  }
 0x217   : > { %v10947_v7 = vpop.f32.mrf.mxu1  ;;  %v10971_v3 = vpop.f32.mrf.mxu0  ;;  %v9488_v54 = vcombine.low %v6657_v20, %v6667_v11  ;;  %v6712_v8 = vshll.u32 %v6640_v62, 16  ;;  %v13382_v42 = vrot.slane %v6706_v14, 4  ;;  %v9516_v19 = vcombine.low %v6919_v60, %v6929_v51  ;;  %v6901_v20 = vld [vmem:[#allocation2 + $0x10c] sm:$0xf] }
 0x218   : > { %11233 = vmatmul.mubr.bf16.vlgmr.msra.gmra.mxu1 %v13133_v18  ;;  %11257 = vmatmul.mubr.bf16.vlgmr.msra.gmra.mxu0 %v13268_v47  ;;  %v3950_v58 = vadd.f32 %v10947_v7, %v13172_v24  ;;  %v13353_v16 = vadd.f32 %v4086_v28, %v3947_v13  ;;  %v13363_v18 = vrot.slane %v6937_v50, 4  ;;  %v6695_v47 = vrot.slane %v6693_v34, 4  ;;  %v11791_v34 = vld [vmem:[%s14063_s3 + $0x520] sm:$0xff]  }
 0x219   : > { %11236 = vmatprep.mubr.bf16.mxu1 %v13270_v30  ;;  %11260 = vmatprep.mubr.bf16.mxu0 %v13272_v9  ;;  %v3919_v22 = vpop.f32.mrf.mxu1  ;;  %v4089_v35 = vpop.f32.mrf.mxu0  ;;  %v11789_v9 = vld [vmem:[%s14063_s3 + $0x528] sm:$0xff]   ;;  %v6681_v57 = vsel %vm12627_vm5, %v13357_v48, %v13308_v39  ;;  %v6691_v21 = vsel %vm12627_vm5, %v13361_v25, %v13341_v15  ;;  %v6955_v53 = vshrl.u32 %v13368_v59, 16  ;;  %v13403_v41 = vrot.slane %v6712_v8, 5  ;;  %v11794_v8 = vld [vmem:[%s14063_s3 + $0x558] sm:$0xff]   ;;  %v11796_v15 = vld [vmem:[%s14063_s3 + $0x550] sm:$0xff]  }
 0x21a   : > { %11265 = vmatpush3.bf16.msra.mxu1 %v11785_v63  ;;  %11289 = vmatpush3.bf16.msra.mxu0 %v11786_v10  ;;  %v3948_v24 = vadd.f32 %v3919_v22, %v13189_v38  ;;  %v13366_v26 = vadd.f32 %v10971_v3, %v3950_v58  ;;  %v13376_v63 = vrot.slane %v6947_v33, 4  ;;  %v13378_v38 = vrot.slane %v6950_v31, 5 }
 0x21b   : > { %11266 = vmatprep.subr.bf16.mxu1 %v11787_v2  ;;  %11290 = vmatprep.subr.bf16.mxu0 %v11788_v56  ;;  %v10950_v30 = vpop.f32.mrf.mxu1  ;;  %v10974_v52 = vpop.f32.mrf.mxu0  ;;  %v13380_v10 = vrot.slane %v6702_v29, 5  ;;  %v6699_v45 = vor.u32 %v6698_v55, %v6695_v47  ;;  %v6958_v28 = vshll.u32 %v13368_v59, 16  ;;  %v6964_v62 = vshll.u32 %v6901_v20, 16  ;;  %v6904_v29 = vld [vmem:[#allocation2 + $0x118] sm:$0xf] }
 0x21c   : > { %v3953_v37 = vadd.f32 %v10950_v30, %v13201_v46  ;;  %v13385_v12 = vadd.f32 %v4089_v35, %v3948_v24  ;;  %v6943_v46 = vsel %vm12627_vm5, %v13363_v18, %v13330_v43  ;;  %v6968_v7 = vshrl.u32 %v6901_v20, 16 }
 0x21d   : > { %v3932_v11 = vpop.f32.mrf.mxu1  ;;  %v4102_v44 = vpop.f32.mrf.mxu0  ;;  %v6709_v60 = vor.u32 %v13382_v42, %v13380_v10  ;;  %v6717_v33 = vshrl.u32 %v6641_v0, 16  ;;  %v6720_v31 = vshll.u32 %v6641_v0, 16  ;;  %v13423_v51 = vrot.slane %v6699_v45, 4  ;;  %v7156_v0 = vld [vmem:[#allocation2 + $0x12c] sm:$0xf] }
 0x21e   : > { %11267 = vmatpush3.bf16.msra.mxu1 %v11787_v2  ;;  %11291 = vmatpush3.bf16.msra.mxu0 %v11788_v56  ;;  %v3951_v23 = vadd.f32 %v3932_v11, %v13214_v4  ;;  %v13401_v49 = vadd.f32 %v10974_v52, %v3953_v37  ;;  %v6953_v4 = vsel %vm12627_vm5, %v13376_v63, %v13378_v38  ;;  %v6903_v2 = vld [vmem:[#allocation2 + $0x114] sm:$0xf]  ;;  %v13425_v22 = vrot.slane %v6955_v53, 4 }
 0x21f   : > { %11268 = vmatprep.subr.bf16.mxu1 %v11789_v9  ;;  %11292 = vmatprep.subr.bf16.mxu0 %v11790_v40  ;;  %v10951_v50 = vpop.f32.mrf.mxu1  ;;  %v10975_v13 = vpop.f32.mrf.mxu0  ;;  %v6726_v35 = vshll.u32 %v6642_v1, 16  ;;  %v6730_v47 = vshrl.u32 %v6642_v1, 16  ;;  %v6979_v55 = vshrl.u32 %v6903_v2, 16  ;;  %v6982_v24 = vshll.u32 %v6903_v2, 16  ;;  %v7419_v2 = vld [vmem:[#allocation2 + $0xc4] sm:$0xf] }
 0x220   : > { %11237 = vmatmul.mubr.bf16.gmra.mxu1 %v13316_v27  ;;  %11261 = vmatmul.mubr.bf16.gmra.mxu0 %v13318_v5  ;;  %v3954_v56 = vadd.f32 %v10951_v50, %v13221_v36  ;;  %v13421_v3 = vadd.f32 %v4102_v44, %v3951_v23  ;;  %v6902_v5 = vld [vmem:[#allocation2 + $0x110] sm:$0x1]  ;;  %v6960_v59 = vrot.slane %v6958_v28, 5  ;;  %v13436_v30 = vrot.slane %v6964_v62, 5 }
 0x221   : > { %11280 = vmatprep.mubr.bf16.mxu1 %v9488_v54  ;;  %11304 = vmatprep.mubr.bf16.mxu0 %v9516_v19  ;;  %v3935_v14 = vpop.f32.mrf.mxu1  ;;  %v4105_v58 = vpop.f32.mrf.mxu0  ;;  %v11793_v54 = vld [vmem:[%s14063_s3 + $0x518] sm:$0xff]   ;;  %v6970_v52 = vrot.slane %v6968_v7, 4  ;;  %v6719_v63 = vrot.slane %v6717_v33, 4  ;;  %v6722_v38 = vrot.slane %v6720_v31, 5  ;;  %v13440_v42 = vrot.slane %v6709_v60, 4  ;;  %v11795_v23 = vld [vmem:[%s14063_s3 + $0x510] sm:$0xff]  }
 0x222   : > { %11269 = vmatpush3.bf16.msra.mxu1 %v11789_v9  ;;  %11293 = vmatpush3.bf16.msra.mxu0 %v11790_v40  ;;  %v3952_v27 = vadd.f32 %v3935_v14, %v13232_v32  ;;  %v13428_v36 = vadd.f32 %v10975_v13, %v3954_v56  ;;  %v6988_v9 = vshll.u32 %v6904_v29, 16  ;;  %v6992_v32 = vshrl.u32 %v6904_v29, 16  ;;  %v6643_v19 = vld [vmem:[#allocation2 + $0xe0] sm:$0x1]  ;;  %v11797_v56 = vld [vmem:[%s14063_s3 + $0x508] sm:$0xff]  }
 0x223   : > { %11270 = vmatprep.subr.bf16.mxu1 %v11791_v34  ;;  %11294 = vmatprep.subr.bf16.mxu0 %v11792_v6  ;;  %v6974_v37 = vshll.u32 %v6902_v5, 16  ;;  %v13442_v20 = vrot.slane %v6726_v35, 5  ;;  %v6732_v11 = vrot.slane %v6730_v47, 4  ;;  %v13454_v44 = vcombine.low %v6681_v57, %v6691_v21  ;;  %v7157_v21 = vld [vmem:[#allocation2 + $0x130] sm:$0xf] }
 0x224   : > { %v13438_v40 = vadd.f32 %v4105_v58, %v3952_v27  ;;  %v6981_v45 = vrot.slane %v6979_v55, 4  ;;  %v6984_v53 = vrot.slane %v6982_v24, 5  ;;  %v13467_v39 = vcombine.low %v6943_v46, %v6953_v4  ;;  %v7418_v13 = vld [vmem:[#allocation2 + $0xc0] sm:$0xf] }
 0x225   : > { %v6705_v48 = vsel %vm12627_vm5, %v13423_v51, %v13380_v10  ;;  %v13473_v25 = vrot.slane %v6988_v9, 5  ;;  %v6994_v57 = vrot.slane %v6992_v32, 4  ;;  %v6961_v28 = vor.u32 %v6960_v59, %v13425_v22  ;;  %v11799_v32 = vld [vmem:[%s14063_s3 + $0x500] sm:$0xff]  }
 0x226   : > { %11271 = vmatpush3.bf16.msra.mxu1 %v11791_v34  ;;  %11295 = vmatpush3.bf16.msra.mxu0 %v11792_v6  ;;  %v6971_v1 = vor.u32 %v6970_v52, %v13436_v30  ;;  %v6723_v50 = vor.u32 %v6722_v38, %v6719_v63  ;;  %v6736_v34 = vshll.u32 %v6643_v19, 16  ;;  %v6905_v6 = vld [vmem:[#allocation2 + $0x11c] sm:$0x1]  ;;  %v6715_v43 = vsel %vm12627_vm5, %v13440_v42, %v13403_v41  ;;  %v11798_v41 = vld [vmem:[%s14063_s3 + $0x548] sm:$0xff]   ;;  %v11800_v52 = vld [vmem:[%s14063_s3 + $0x540] sm:$0xff]  }
 0x227   : > { %11272 = vmatprep.subr.bf16.mxu1 %v11793_v54  ;;  %11296 = vmatprep.subr.bf16.mxu0 %v11794_v8  ;;  %v13481_v18 = vrot.slane %v6974_v37, 5  ;;  %v6733_v10 = vor.u32 %v6732_v11, %v13442_v20  ;;  %v7169_v46 = vshrl.u32 %v7156_v0, 16  ;;  %v6985_v4 = vor.u32 %v6984_v53, %v6981_v45 }
 0x228   : > { %v7172_v60 = vshll.u32 %v7156_v0, 16  ;;  %v7178_v62 = vshll.u32 %v7157_v21, 16  ;;  %v7182_v7 = vshrl.u32 %v7157_v21, 16  ;;  %v6995_v33 = vor.u32 %v6994_v57, %v13473_v25  ;;  %v7420_v0 = vld [vmem:[#allocation2 + $0xc8] sm:$0x1] }
 0x229   : > { %v6998_v31 = vshll.u32 %v6905_v6, 16  ;;  %v7431_v29 = vshrl.u32 %v7418_v13, 16  ;;  %v7434_v14 = vshll.u32 %v7418_v13, 16  ;;  %v6962_v58 = vrot.slane %v6961_v28, 4  ;;  %v7160_v28 = vld [vmem:[#allocation2 + $0x13c] sm:$0xf] }
 0x22a   : > { %11273 = vmatpush3.bf16.msra.mxu1 %v11793_v54  ;;  %11297 = vmatpush3.bf16.msra.mxu0 %v11794_v8  ;;  %v6972_v51 = vrot.slane %v6971_v1, 4  ;;  %v6724_v22 = vrot.slane %v6723_v50, 4  ;;  %v6738_v35 = vrot.slane %v6736_v34, 5  ;;  %v6734_v47 = vrot.slane %v6733_v10, 4  ;;  %v7158_v54 = vld [vmem:[#allocation2 + $0x134] sm:$0x1] }
 0x22b   : > { %11274 = vmatprep.subr.bf16.mxu1 %v11795_v23  ;;  %11298 = vmatprep.subr.bf16.mxu0 %v11796_v15  ;;  %v7171_v27 = vrot.slane %v7169_v46, 4  ;;  %v7440_v5 = vshll.u32 %v7419_v2, 16  ;;  %v7444_v55 = vshrl.u32 %v7419_v2, 16  ;;  %v6986_v24 = vrot.slane %v6985_v4, 4  ;;  %v11801_v34 = vld [vmem:[%s14063_s3 + $0x5b8] sm:$0xff]  }
 0x22c   : > { %v7174_v8 = vrot.slane %v7172_v60, 5  ;;  %v13491_v59 = vrot.slane %v7178_v62, 5  ;;  %v7184_v9 = vrot.slane %v7182_v7, 4  ;;  %v6996_v63 = vrot.slane %v6995_v33, 4  ;;  %v11802_v6 = vld [vmem:[%s14063_s3 + $0x5f8] sm:$0xff]  }
 0x22d   : > { %v7000_v38 = vrot.slane %v6998_v31, 5  ;;  %v7433_v42 = vrot.slane %v7431_v29, 4  ;;  %v7436_v37 = vrot.slane %v7434_v14, 5  ;;  %v13499_v19 = vcombine.low %v6705_v48, %v6715_v43 }
 0x22e   : > { %11275 = vmatpush3.bf16.msra.mxu1 %v11795_v23  ;;  %11299 = vmatpush3.bf16.msra.mxu0 %v11796_v15  ;;  %v6967_v11 = vsel %vm12627_vm5, %v6962_v58, %v13436_v30  ;;  %v6977_v45 = vsel %vm12627_vm5, %v6972_v51, %v13481_v18  ;;  %v6729_v53 = vsel %vm12627_vm5, %v6724_v22, %v13442_v20  ;;  %v7159_v23 = vld [vmem:[#allocation2 + $0x138] sm:$0xf]  ;;  %v7188_v57 = vshll.u32 %v7158_v54, 16  ;;  %v7421_v51 = vld [vmem:[#allocation2 + $0xcc] sm:$0xf] }
 0x22f   : > { %11276 = vmatprep.subr.bf16.mxu1 %v11797_v56  ;;  %11300 = vmatprep.subr.bf16.mxu0 %v11798_v41  ;;  %v6739_v15 = vsel %vm12627_vm5, %v6734_v47, %v6738_v35  ;;  %v13512_v48 = vrot.slane %v7440_v5, 5  ;;  %v7446_v21 = vrot.slane %v7444_v55, 4  ;;  %v6991_v30 = vsel %vm12627_vm5, %v6986_v24, %v13473_v25  ;;  %v7422_v55 = vld [vmem:[#allocation2 + $0xd0] sm:$0xf] }
 0x230   : > { %v7175_v1 = vor.u32 %v7174_v8, %v7171_v27  ;;  %v7185_v50 = vor.u32 %v7184_v9, %v13491_v59  ;;  %v7001_v13 = vsel %vm12627_vm5, %v6996_v63, %v7000_v38  ;;  %v7437_v43 = vor.u32 %v7436_v37, %v7433_v42  ;;  %v11803_v8 = vld [vmem:[%s14063_s3 + $0x5b0] sm:$0xff]  }
 0x231   : > { %v7450_v18 = vshll.u32 %v7420_v0, 16  ;;  %v7193_v25 = vshrl.u32 %v7159_v23, 16  ;;  %v9518_v4 = vcombine.low %v6967_v11, %v6977_v45  ;;  %v7196_v60 = vshll.u32 %v7159_v23, 16  ;;  %v11804_v9 = vld [vmem:[%s14063_s3 + $0x5f0] sm:$0xff]  }
 0x232   : > { %11277 = vmatpush3.bf16.msra.mxu1 %v11797_v56  ;;  %11301 = vmatpush3.bf16.msra.mxu0 %v11798_v41  ;;  %v7202_v62 = vshll.u32 %v7160_v28, 16  ;;  %v13527_v2 = vcombine.low %v6729_v53, %v6739_v15  ;;  %v13529_v56 = vrot.slane %v7188_v57, 5  ;;  %v7447_v41 = vor.u32 %v7446_v21, %v13512_v48 }
 0x233   : > { %11278 = vmatprep.subr.bf16.mxu1 %v11799_v32  ;;  %11302 = vmatprep.subr.bf16.mxu0 %v11800_v52  ;;  %v10994_v20 = vpop.f32.mrf.mxu1  ;;  %v7206_v33 = vshrl.u32 %v7160_v28, 16  ;;  %v13537_v58 = vrot.slane %v7175_v1, 4  ;;  %v7186_v35 = vrot.slane %v7185_v50, 4  ;;  %v13539_v47 = vrot.slane %v7437_v43, 4  ;;  %v11806_v1 = vld [vmem:[%s14063_s3 + $0x5e8] sm:$0xff]  }
 0x234   : > { %v4290_v10 = vadd.f32 %v10994_v20, %v13335_v17  ;;  %v11018_v46 = vpop.f32.mrf.mxu0  ;;  %v13535_v17 = vcombine.low %v6991_v30, %v7001_v13  ;;  %v13541_v27 = vrot.slane %v7450_v18, 5  ;;  %v13543_v5 = vrot.slane %v7193_v25, 4  ;;  %v7162_v20 = vld [vmem:[#allocation2 + $0x144] sm:$0xf] }
 0x235   : > { %v4257_v7 = vpop.f32.mrf.mxu1  ;;  %v13554_v63 = vrot.slane %v7202_v62, 5  ;;  %v7448_v42 = vrot.slane %v7447_v41, 4  ;;  %v7455_v37 = vshrl.u32 %v7421_v51, 16  ;;  %v7458_v11 = vshll.u32 %v7421_v51, 16  ;;  %v11807_v51 = vld [vmem:[%s14063_s3 + $0x5a0] sm:$0xff]  }
 0x236   : > { %11279 = vmatpush3.bf16.msra.mxu1 %v11799_v32  ;;  %11303 = vmatpush3.bf16.msra.mxu0 %v11800_v52  ;;  %v13532_v31 = vadd.f32 %v11018_v46, %v4290_v10  ;;  %v4288_v29 = vadd.f32 %v4257_v7, %v13353_v16  ;;  %v4428_v14 = vpop.f32.mrf.mxu0  ;;  %v7161_v32 = vld [vmem:[#allocation2 + $0x140] sm:$0x1]  ;;  %v7198_v52 = vrot.slane %v7196_v60, 5  ;;  %v7464_v23 = vshll.u32 %v7422_v55, 16  ;;  %v7423_v10 = vld [vmem:[#allocation2 + $0xd4] sm:$0x1] }
 0x237   : > { %11312 = vmatprep.subr.bf16.mxu1 %v11801_v34  ;;  %11336 = vmatprep.subr.bf16.mxu0 %v11802_v6  ;;  %v10995_v22 = vpop.f32.mrf.mxu1  ;;  %v7468_v15 = vshrl.u32 %v7422_v55, 16  ;;  %v7212_v57 = vshll.u32 %v7161_v32, 16  ;;  %v7460_v13 = vrot.slane %v7458_v11, 5  ;;  %v7163_v60 = vld [vmem:[#allocation2 + $0x148] sm:$0xf]  ;;  %v7217_v41 = vshrl.u32 %v7162_v20, 16 }
 0x238   : > { %v13545_v24 = vadd.f32 %v4428_v14, %v4288_v29  ;;  %v4291_v16 = vadd.f32 %v10995_v22, %v13366_v26  ;;  %v11019_v54 = vpop.f32.mrf.mxu0  ;;  %v7208_v26 = vrot.slane %v7206_v33, 4  ;;  %v7199_v50 = vor.u32 %v7198_v52, %v13543_v5  ;;  %v11808_v22 = vld [vmem:[%s14063_s3 + $0x5e0] sm:$0xff]  }
 0x239   : > { %11281 = vmatmul.mubr.bf16.vlgmr.msra.gmra.mxu1 %v13454_v44  ;;  %11305 = vmatmul.mubr.bf16.vlgmr.msra.gmra.mxu0 %v13467_v39  ;;  %v4260_v38 = vpop.f32.mrf.mxu1  ;;  %v7181_v39 = vsel %vm12627_vm5, %v13537_v58, %v13491_v59  ;;  %v11805_v59 = vld [vmem:[%s14063_s3 + $0x5a8] sm:$0xff]   ;;  %v13590_v46 = vrot.slane %v7464_v23, 5  ;;  %v7220_v33 = vshll.u32 %v7162_v20, 16  ;;  %v7230_v52 = vshrl.u32 %v7163_v60, 16  ;;  %v11811_v20 = vld [vmem:[%s14063_s3 + $0x590] sm:$0xff]  }
 0x23a   : > { %11284 = vmatprep.mubr.bf16.mxu1 %v13499_v19  ;;  %11308 = vmatprep.mubr.bf16.mxu0 %v9518_v4  ;;  %v13559_v45 = vadd.f32 %v11019_v54, %v4291_v16  ;;  %v4289_v53 = vadd.f32 %v4260_v38, %v13385_v12  ;;  %v4431_v0 = vpop.f32.mrf.mxu0  ;;  %v7191_v19 = vsel %vm12627_vm5, %v7186_v35, %v13529_v56  ;;  %v7470_v4 = vrot.slane %v7468_v15, 4  ;;  %v7425_v54 = vld [vmem:[#allocation2 + $0xdc] sm:$0xf]  ;;  %v7164_v38 = vld [vmem:[#allocation2 + $0x14c] sm:$0x1] }
 0x23b   : > { %11313 = vmatpush3.bf16.msra.mxu1 %v11801_v34  ;;  %11337 = vmatpush3.bf16.msra.mxu0 %v11802_v6  ;;  %v10998_v44 = vpop.f32.mrf.mxu1  ;;  %v7443_v12 = vsel %vm12627_vm5, %v13539_v47, %v13512_v48  ;;  %v7453_v48 = vsel %vm12627_vm5, %v7448_v42, %v13541_v27  ;;  %v7209_v6 = vor.u32 %v7208_v26, %v13554_v63  ;;  %v13592_v56 = vrot.slane %v7212_v57, 5  ;;  %v7424_v47 = vld [vmem:[#allocation2 + $0xd8] sm:$0xf] }
 0x23c   : > { %11314 = vmatprep.subr.bf16.mxu1 %v11803_v8  ;;  %11338 = vmatprep.subr.bf16.mxu0 %v11804_v9  ;;  %v13573_v21 = vadd.f32 %v4431_v0, %v4289_v53  ;;  %v4294_v28 = vadd.f32 %v10998_v44, %v13401_v49  ;;  %v11022_v30 = vpop.f32.mrf.mxu0  ;;  %v7457_v49 = vrot.slane %v7455_v37, 4  ;;  %v9544_v62 = vcombine.low %v7181_v39, %v7191_v19  ;;  %v11809_v53 = vld [vmem:[%s14063_s3 + $0x598] sm:$0xff]  }
 0x23d   : > { %v4273_v34 = vpop.f32.mrf.mxu1  ;;  %v9572_v29 = vcombine.low %v7443_v12, %v7453_v48  ;;  %v7200_v35 = vrot.slane %v7199_v50, 4  ;;  %v7210_v5 = vrot.slane %v7209_v6, 4  ;;  %v7474_v16 = vshll.u32 %v7423_v10, 16  ;;  %v11812_v48 = vld [vmem:[%s14063_s3 + $0x5d0] sm:$0xff]  }
 0x23e   : > { %v13587_v43 = vadd.f32 %v11022_v30, %v4294_v28  ;;  %v4292_v18 = vadd.f32 %v4273_v34, %v13421_v3  ;;  %v4444_v25 = vpop.f32.mrf.mxu0  ;;  %v7461_v55 = vor.u32 %v7460_v13, %v7457_v49  ;;  %v7471_v32 = vor.u32 %v7470_v4, %v13590_v46  ;;  %v7165_v49 = vld [vmem:[#allocation2 + $0x150] sm:$0xf] }
 0x23f   : > { %11315 = vmatpush3.bf16.msra.mxu1 %v11803_v8  ;;  %11339 = vmatpush3.bf16.msra.mxu0 %v11804_v9  ;;  %v10999_v7 = vpop.f32.mrf.mxu1  ;;  %v7222_v42 = vrot.slane %v7220_v33, 5  ;;  %v7479_v26 = vshrl.u32 %v7424_v47, 16  ;;  %v7482_v37 = vshll.u32 %v7424_v47, 16  ;;  %v7488_v0 = vshll.u32 %v7425_v54, 16 }
 0x240   : > { %11316 = vmatprep.subr.bf16.mxu1 %v11805_v59  ;;  %11340 = vmatprep.subr.bf16.mxu0 %v11806_v1  ;;  %v13594_v14 = vadd.f32 %v4444_v25, %v4292_v18  ;;  %v4295_v3 = vadd.f32 %v10999_v7, %v13428_v36  ;;  %v11023_v58 = vpop.f32.mrf.mxu0  ;;  %v7226_v36 = vshll.u32 %v7163_v60, 16  ;;  %v7492_v23 = vshrl.u32 %v7425_v54, 16  ;;  %v7166_v18 = vld [vmem:[#allocation2 + $0x154] sm:$0xf]  ;;  %v7427_v25 = vld [vmem:[#allocation2 + $0xe4] sm:$0xf] }
 0x241   : > { %11285 = vmatmul.mubr.bf16.gmra.mxu1 %v13527_v2  ;;  %11309 = vmatmul.mubr.bf16.gmra.mxu0 %v13535_v17  ;;  %v4276_v27 = vpop.f32.mrf.mxu1  ;;  %v7219_v17 = vrot.slane %v7217_v41, 4  ;;  %v7205_v15 = vsel %vm12627_vm5, %v7200_v35, %v13554_v63  ;;  %v7215_v44 = vsel %vm12627_vm5, %v7210_v5, %v13592_v56  ;;  %v13623_v39 = vrot.slane %v7461_v55, 4  ;;  %v7428_v7 = vld [vmem:[#allocation2 + $0xe8] sm:$0xf]  ;;  %v7680_v56 = vld [vmem:[#allocation2 + $0xfc] sm:$0xf] }
 0x242   : > { %11328 = vmatprep.mubr.bf16.mxu1 %v9544_v62  ;;  %11352 = vmatprep.mubr.bf16.mxu0 %v9572_v29  ;;  %v13605_v8 = vadd.f32 %v11023_v58, %v4295_v3  ;;  %v4293_v9 = vadd.f32 %v4276_v27, %v13438_v40  ;;  %v4447_v2 = vpop.f32.mrf.mxu0  ;;  %v11810_v40 = vld [vmem:[%s14063_s3 + $0x5d8] sm:$0xff]   ;;  %v13625_v19 = vrot.slane %v7474_v16, 5  ;;  %v13627_v12 = vrot.slane %v7471_v32, 4  ;;  %v7681_v58 = vld [vmem:[#allocation2 + $0x100] sm:$0xf] }
 0x243   : > { %11317 = vmatpush3.bf16.msra.mxu1 %v11805_v59  ;;  %11341 = vmatpush3.bf16.msra.mxu0 %v11806_v1  ;;  %v13629_v57 = vrot.slane %v7226_v36, 5  ;;  %v7232_v28 = vrot.slane %v7230_v52, 4  ;;  %v7236_v30 = vshll.u32 %v7164_v38, 16  ;;  %v7223_v59 = vor.u32 %v7222_v42, %v7219_v17  ;;  %v7426_v1 = vld [vmem:[#allocation2 + $0xe0] sm:$0x1] }
 0x244   : > { %11318 = vmatprep.subr.bf16.mxu1 %v11807_v51  ;;  %11342 = vmatprep.subr.bf16.mxu0 %v11808_v22  ;;  %v13609_v11 = vadd.f32 %v4447_v2, %v4293_v9  ;;  %v7481_v50 = vrot.slane %v7479_v26, 4  ;;  %v7484_v63 = vrot.slane %v7482_v37, 5  ;;  %v13637_v34 = vrot.slane %v7488_v0, 5  ;;  %v7167_v26 = vld [vmem:[#allocation2 + $0x158] sm:$0x1] }
 0x245   : > { %v7494_v6 = vrot.slane %v7492_v23, 4  ;;  %v13639_v13 = vcombine.low %v7205_v15, %v7215_v44  ;;  %v7467_v10 = vsel %vm12627_vm5, %v13623_v39, %v13590_v46  ;;  %v7477_v4 = vsel %vm12627_vm5, %v13627_v12, %v13625_v19 }
 0x246   : > { %v7233_v60 = vor.u32 %v7232_v28, %v13629_v57  ;;  %v13650_v62 = vrot.slane %v7236_v30, 5  ;;  %v13652_v41 = vrot.slane %v7223_v59, 4  ;;  %v7485_v33 = vor.u32 %v7484_v63, %v7481_v50  ;;  %v7429_v28 = vld [vmem:[#allocation2 + $0xec] sm:$0x1] }
 0x247   : > { %11319 = vmatpush3.bf16.msra.mxu1 %v11807_v51  ;;  %11343 = vmatpush3.bf16.msra.mxu0 %v11808_v22  ;;  %v7498_v29 = vshll.u32 %v7426_v1, 16  ;;  %v7241_v3 = vshrl.u32 %v7165_v49, 16  ;;  %v11813_v51 = vld [vmem:[%s14063_s3 + $0x588] sm:$0xff]   ;;  %v7495_v35 = vor.u32 %v7494_v6, %v13637_v34  ;;  %v7244_v47 = vshll.u32 %v7165_v49, 16 }
 0x248   : > { %11320 = vmatprep.subr.bf16.mxu1 %v11809_v53  ;;  %11344 = vmatprep.subr.bf16.mxu0 %v11810_v40  ;;  %v11814_v22 = vld [vmem:[%s14063_s3 + $0x5c8] sm:$0xff]   ;;  %v7250_v27 = vshll.u32 %v7166_v18, 16  ;;  %v7254_v5 = vshrl.u32 %v7166_v18, 16  ;;  %v7503_v55 = vshrl.u32 %v7427_v25, 16  ;;  %v7506_v16 = vshll.u32 %v7427_v25, 16 }
 0x249   : > { %v7512_v36 = vshll.u32 %v7428_v7, 16  ;;  %v7516_v54 = vshrl.u32 %v7428_v7, 16  ;;  %v7693_v9 = vshrl.u32 %v7680_v56, 16  ;;  %v7696_v32 = vshll.u32 %v7680_v56, 16  ;;  %v7682_v7 = vld [vmem:[#allocation2 + $0x104] sm:$0x1] }
 0x24a   : > { %v7702_v52 = vshll.u32 %v7681_v58, 16  ;;  %v7706_v2 = vshrl.u32 %v7681_v58, 16  ;;  %v7234_v38 = vrot.slane %v7233_v60, 4  ;;  %v7486_v17 = vrot.slane %v7485_v33, 4  ;;  %v11817_v33 = vld [vmem:[%s14063_s3 + $0x638] sm:$0xff]  }
 0x24b   : > { %11321 = vmatpush3.bf16.msra.mxu1 %v11809_v53  ;;  %11345 = vmatpush3.bf16.msra.mxu0 %v11810_v40  ;;  %v7500_v42 = vrot.slane %v7498_v29, 5  ;;  %v7243_v37 = vrot.slane %v7241_v3, 4  ;;  %v11815_v53 = vld [vmem:[%s14063_s3 + $0x580] sm:$0xff]   ;;  %v7496_v0 = vrot.slane %v7495_v35, 4  ;;  %v7246_v23 = vrot.slane %v7244_v47, 5 }
 0x24c   : > { %11322 = vmatprep.subr.bf16.mxu1 %v11811_v20  ;;  %11346 = vmatprep.subr.bf16.mxu0 %v11812_v48  ;;  %v11816_v40 = vld [vmem:[%s14063_s3 + $0x5c0] sm:$0xff]   ;;  %v13667_v15 = vrot.slane %v7250_v27, 5  ;;  %v7256_v44 = vrot.slane %v7254_v5, 4  ;;  %v7505_v30 = vrot.slane %v7503_v55, 4  ;;  %v7508_v59 = vrot.slane %v7506_v16, 5 }
 0x24d   : > { %v13669_v1 = vrot.slane %v7512_v36, 5  ;;  %v7518_v50 = vrot.slane %v7516_v54, 4  ;;  %v7695_v63 = vrot.slane %v7693_v9, 4  ;;  %v7708_v6 = vrot.slane %v7706_v2, 4 }
 0x24e   : > { %v7229_v49 = vsel %vm12627_vm5, %v13652_v41, %v13629_v57  ;;  %v7239_v18 = vsel %vm12627_vm5, %v7234_v38, %v13650_v62  ;;  %v7491_v25 = vsel %vm12627_vm5, %v7486_v17, %v13637_v34  ;;  %v7260_v60 = vshll.u32 %v7167_v26, 16 }
 0x24f   : > { %11323 = vmatpush3.bf16.msra.mxu1 %v11811_v20  ;;  %11347 = vmatpush3.bf16.msra.mxu0 %v11812_v48  ;;  %v7698_v20 = vrot.slane %v7696_v32, 5  ;;  %v13671_v48 = vrot.slane %v7702_v52, 5  ;;  %v7501_v57 = vsel %vm12627_vm5, %v7496_v0, %v7500_v42  ;;  %v7247_v41 = vor.u32 %v7246_v23, %v7243_v37  ;;  %v11818_v32 = vld [vmem:[%s14063_s3 + $0x630] sm:$0xff]  }
 0x250   : > { %11324 = vmatprep.subr.bf16.mxu1 %v11813_v51  ;;  %11348 = vmatprep.subr.bf16.mxu0 %v11814_v22  ;;  %v7257_v29 = vor.u32 %v7256_v44, %v13667_v15  ;;  %v7522_v62 = vshll.u32 %v7429_v28, 16  ;;  %v9573_v34 = vcombine.low %v7467_v10, %v7477_v4  ;;  %v9546_v35 = vcombine.low %v7229_v49, %v7239_v18 }
 0x251   : > { %v7699_v27 = vor.u32 %v7698_v20, %v7695_v63  ;;  %v7712_v5 = vshll.u32 %v7682_v7, 16  ;;  %v9574_v55 = vcombine.low %v7491_v25, %v7501_v57  ;;  %v7248_v39 = vrot.slane %v7247_v41, 4  ;;  %v7686_v41 = vld [vmem:[#allocation2 + $0x114] sm:$0xf] }
 0x252   : > { %v7258_v10 = vrot.slane %v7257_v29, 4  ;;  %v7262_v4 = vrot.slane %v7260_v60, 5  ;;  %v7524_v36 = vrot.slane %v7522_v62, 5 }
 0x253   : > { %11325 = vmatpush3.bf16.msra.mxu1 %v11813_v51  ;;  %11349 = vmatpush3.bf16.msra.mxu0 %v11814_v22  ;;  %v7509_v51 = vor.u32 %v7508_v59, %v7505_v30  ;;  %v7519_v22 = vor.u32 %v7518_v50, %v13669_v1  ;;  %v7700_v17 = vrot.slane %v7699_v27, 4  ;;  %v7714_v26 = vrot.slane %v7712_v5, 5  ;;  %v11819_v30 = vld [vmem:[%s14063_s3 + $0x628] sm:$0xff]  }
 0x254   : > { %11326 = vmatprep.subr.bf16.mxu1 %v11815_v53  ;;  %11350 = vmatprep.subr.bf16.mxu0 %v11816_v40  ;;  %v11042_v56 = vpop.f32.mrf.mxu1  ;;  %v7253_v0 = vsel %vm12627_vm5, %v7248_v39, %v13667_v15  ;;  %v7741_v27 = vshrl.u32 %v7686_v41, 16 }
 0x255   : > { %v4631_v3 = vadd.f32 %v11042_v56, %v13532_v31  ;;  %v11066_v58 = vpop.f32.mrf.mxu0  ;;  %v7709_v31 = vor.u32 %v7708_v6, %v13671_v48  ;;  %v7510_v2 = vrot.slane %v7509_v51, 4  ;;  %v7705_v59 = vsel %vm12627_vm5, %v7700_v17, %v13671_v48  ;;  %v11820_v48 = vld [vmem:[%s14063_s3 + $0x620] sm:$0xff]  }
 0x256   : > { %v4598_v47 = vpop.f32.mrf.mxu1 }
 0x257   : > { %11327 = vmatpush3.bf16.msra.mxu1 %v11815_v53  ;;  %11351 = vmatpush3.bf16.msra.mxu0 %v11816_v40  ;;  %v4629_v19 = vadd.f32 %v4598_v47, %v13545_v24  ;;  %v13703_v12 = vadd.f32 %v11066_v58, %v4631_v3  ;;  %v4768_v16 = vpop.f32.mrf.mxu0  ;;  %v7520_v24 = vrot.slane %v7519_v22, 4  ;;  %v7710_v42 = vrot.slane %v7709_v31, 4 }
 0x258   : > { %11360 = vmatprep.subr.bf16.mxu1 %v11817_v33  ;;  %v11043_v46 = vpop.f32.mrf.mxu1  ;;  %v7744_v31 = vshll.u32 %v7686_v41, 16 }
 0x259   : > { %v4632_v54 = vadd.f32 %v11043_v46, %v13559_v45  ;;  %v13706_v9 = vadd.f32 %v4768_v16, %v4629_v19  ;;  %v11067_v52 = vpop.f32.mrf.mxu0  ;;  %v7525_v28 = vsel %vm12627_vm5, %v7520_v24, %v7524_v36  ;;  %v11822_v46 = vld [vmem:[%s14063_s3 + $0x610] sm:$0xff]   ;;  %v7690_v24 = vld [vmem:[#allocation2 + $0x124] sm:$0xf] }
 0x25a   : > { %11329 = vmatmul.mubr.bf16.vlgmr.msra.gmra.mxu1 %v13639_v13  ;;  %11353 = vmatmul.mubr.bf16.vlgmr.msra.gmra.mxu0 %v9573_v34  ;;  %v4601_v38 = vpop.f32.mrf.mxu1  ;;  %v7263_v13 = vsel %vm12627_vm5, %v7258_v10, %v7262_v4  ;;  %v7743_v4 = vrot.slane %v7741_v27, 4  ;;  %v7746_v36 = vrot.slane %v7744_v31, 5 }
 0x25b   : > { %11332 = vmatprep.mubr.bf16.mxu1 %v9546_v35  ;;  %11356 = vmatprep.mubr.bf16.mxu0 %v9574_v55  ;;  %v4630_v45 = vadd.f32 %v4601_v38, %v13573_v21  ;;  %v13713_v37 = vadd.f32 %v11067_v52, %v4632_v54  ;;  %v4771_v53 = vpop.f32.mrf.mxu0  ;;  %v7515_v21 = vsel %vm12627_vm5, %v7510_v2, %v13669_v1  ;;  %v11821_v35 = vld [vmem:[%s14063_s3 + $0x618] sm:$0xff]   ;;  %v7685_v55 = vld [vmem:[#allocation2 + $0x110] sm:$0x1]  ;;  %v7689_v2 = vld [vmem:[#allocation2 + $0x120] sm:$0xf] }
 0x25c   : > { %11361 = vmatpush3.bf16.msra.mxu1 %v11817_v33  ;;  %v11046_v40 = vpop.f32.mrf.mxu1  ;;  %v9547_v6 = vcombine.low %v7253_v0, %v7263_v13  ;;  %v9575_v49 = vcombine.low %v7515_v21, %v7525_v28  ;;  %v7683_v33 = vld [vmem:[#allocation2 + $0x108] sm:$0xf]  ;;  %v7688_v54 = vld [vmem:[#allocation2 + $0x11c] sm:$0x1]  ;;  %v7736_v17 = vshll.u32 %v7685_v55, 16  ;;  %v7768_v13 = vshll.u32 %v7689_v2, 16 }
 0x25d   : > { %11362 = vmatprep.subr.bf16.mxu1 %v11818_v32  ;;  %v4635_v23 = vadd.f32 %v11046_v40, %v13587_v43  ;;  %v13721_v44 = vadd.f32 %v4771_v53, %v4630_v45  ;;  %v11070_v15 = vpop.f32.mrf.mxu0  ;;  %v7715_v43 = vsel %vm12627_vm5, %v7710_v42, %v7714_v26  ;;  %v7717_v34 = vshrl.u32 %v7683_v33, 16  ;;  %v11823_v42 = vld [vmem:[%s14063_s3 + $0x608] sm:$0xff]  }
 0x25e   : > { %v4614_v50 = vpop.f32.mrf.mxu1  ;;  %v9600_v25 = vcombine.low %v7705_v59, %v7715_v43  ;;  %v7720_v58 = vshll.u32 %v7683_v33, 16  ;;  %v7747_v45 = vor.u32 %v7746_v36, %v7743_v4  ;;  %v7760_v53 = vshll.u32 %v7688_v54, 16 }
 0x25f   : > { %v4633_v63 = vadd.f32 %v4614_v50, %v13594_v14  ;;  %v13737_v20 = vadd.f32 %v11070_v15, %v4635_v23  ;;  %v4784_v1 = vpop.f32.mrf.mxu0  ;;  %v7684_v14 = vld [vmem:[#allocation2 + $0x10c] sm:$0xf]  ;;  %v7719_v19 = vrot.slane %v7717_v34, 4  ;;  %v7765_v40 = vshrl.u32 %v7689_v2, 16  ;;  %v11824_v15 = vld [vmem:[%s14063_s3 + $0x600] sm:$0xff]  }
 0x260   : > { %11363 = vmatpush3.bf16.msra.mxu1 %v11818_v32  ;;  %v11047_v18 = vpop.f32.mrf.mxu1  ;;  %v7726_v51 = vshll.u32 %v7684_v14, 16  ;;  %v7730_v47 = vshrl.u32 %v7684_v14, 16  ;;  %v7722_v16 = vrot.slane %v7720_v58, 5  ;;  %v7774_v23 = vshll.u32 %v7690_v24, 16 }
 0x261   : > { %11364 = vmatprep.subr.bf16.mxu1 %v11819_v30  ;;  %v4636_v60 = vadd.f32 %v11047_v18, %v13605_v8  ;;  %v13740_v7 = vadd.f32 %v4784_v1, %v4633_v63  ;;  %v11071_v56 = vpop.f32.mrf.mxu0  ;;  %v7687_v8 = vld [vmem:[#allocation2 + $0x118] sm:$0xf]  ;;  %v7778_v21 = vshrl.u32 %v7690_v24, 16  ;;  %v7748_v43 = vrot.slane %v7747_v45, 4 }
 0x262   : > { %11333 = vmatmul.mubr.bf16.gmra.mxu1 %v9547_v6  ;;  %11357 = vmatmul.mubr.bf16.gmra.mxu0 %v9575_v49  ;;  %v4617_v57 = vpop.f32.mrf.mxu1  ;;  %v7750_v5 = vshll.u32 %v7687_v8, 16  ;;  %v7728_v39 = vrot.slane %v7726_v51, 5  ;;  %v7732_v10 = vrot.slane %v7730_v47, 4  ;;  %v7723_v38 = vor.u32 %v7722_v16, %v7719_v19  ;;  %v7691_v6 = vld [vmem:[#allocation2 + $0x128] sm:$0x1] }
 0x263   : > { %11376 = vmatprep.mubr.bf16.mxu1 %v9600_v25  ;;  %v4634_v29 = vadd.f32 %v4617_v57, %v13609_v11  ;;  %v13746_v62 = vadd.f32 %v11071_v56, %v4636_v60  ;;  %v4787_v3 = vpop.f32.mrf.mxu0  ;;  %v7754_v11 = vshrl.u32 %v7687_v8, 16  ;;  %v7762_v50 = vrot.slane %v7760_v53, 5 }
 0x264   : > { %11365 = vmatpush3.bf16.msra.mxu1 %v11819_v30  ;;  %v7752_v32 = vrot.slane %v7750_v5, 5  ;;  %v7733_v26 = vor.u32 %v7732_v10, %v7728_v39  ;;  %v7724_v28 = vrot.slane %v7723_v38, 4  ;;  %v7738_v30 = vrot.slane %v7736_v17, 5 }
 0x265   : > { %11366 = vmatprep.subr.bf16.mxu1 %v11820_v48  ;;  %v13748_v22 = vadd.f32 %v4787_v3, %v4634_v29  ;;  %v7756_v52 = vrot.slane %v7754_v11, 4  ;;  %v7767_v63 = vrot.slane %v7765_v40, 4  ;;  %v7770_v49 = vrot.slane %v7768_v13, 5 }
 0x266   : > { %v7734_v59 = vrot.slane %v7733_v26, 4  ;;  %v7776_v18 = vrot.slane %v7774_v23, 5  ;;  %v7780_v25 = vrot.slane %v7778_v21, 4  ;;  %v7729_v56 = vsel %vm12627_vm5, %v7724_v28, %v7728_v39 }
 0x267   : > { %v7757_v0 = vor.u32 %v7756_v52, %v7752_v32  ;;  %v7753_v14 = vsel %vm12627_vm5, %v7748_v43, %v7752_v32  ;;  %v7784_v57 = vshll.u32 %v7691_v6, 16  ;;  %v7771_v3 = vor.u32 %v7770_v49, %v7767_v63 }
 0x268   : > { %11367 = vmatpush3.bf16.msra.mxu1 %v11820_v48  ;;  %v7739_v33 = vsel %vm12627_vm5, %v7734_v59, %v7738_v30  ;;  %v7781_v8 = vor.u32 %v7780_v25, %v7776_v18 }
 0x269   : > { %11368 = vmatprep.subr.bf16.mxu1 %v11821_v35  ;;  %v7758_v1 = vrot.slane %v7757_v0, 4  ;;  %v9601_v47 = vcombine.low %v7729_v56, %v7739_v33  ;;  %v7786_v11 = vrot.slane %v7784_v57, 5  ;;  %v7772_v19 = vrot.slane %v7771_v3, 4 }
 0x26a   : > { %v7782_v16 = vrot.slane %v7781_v8, 4  ;;  %v14069_v3 = vmov 0.0   ;;  %v11826_v8 = vld [vmem:[%s14065_s5 + $0x38] sm:$0xff]  }
 0x26b   : > { %v7763_v29 = vsel %vm12627_vm5, %v7758_v1, %v7762_v50  ;;  %v7777_v54 = vsel %vm12627_vm5, %v7772_v19, %v7776_v18  ;;  %11384 = vmatprep.subr.bf16.mxu0 %v14069_v3  ;;  %11400 = vmatprep.mubr.msk.bf16.mxu0 %vm11884_vm6, %v14069_v3 }
 0x26c   : > { %11369 = vmatpush3.bf16.msra.mxu1 %v11821_v35  ;;  %v9602_v27 = vcombine.low %v7753_v14, %v7763_v29  ;;  %v11825_v29 = vld [vmem:[%s14065_s5 + $0x78] sm:$0xff]  }
 0x26d   : > { %11370 = vmatprep.subr.bf16.mxu1 %v11822_v46  ;;  %11385 = vmatpush3.bf16.msra.mxu0 %v11825_v29 }
 0x26e   : > { %11386 = vmatprep.subr.bf16.mxu0 %v14069_v3 }
 0x270   : > { %11371 = vmatpush3.bf16.msra.mxu1 %v11822_v46 }
 0x271   : > { %11372 = vmatprep.subr.bf16.mxu1 %v11823_v42 }
 0x274   : > { %11373 = vmatpush3.bf16.msra.mxu1 %v11823_v42 }
 0x275   : > { %11374 = vmatprep.subr.bf16.mxu1 %v11824_v15  ;;  %v11090_v60 = vpop.f32.mrf.mxu1  ;;  %v11114_v48 = vpop.f32.mrf.mxu0 }
 0x276   : > { %v4971_v41 = vadd.f32 %v11090_v60, %v13703_v12 }
 0x277   : > { %v4938_v34 = vpop.f32.mrf.mxu1  ;;  %v5109_v58 = vpop.f32.mrf.mxu0 }
 0x278   : > { %11375 = vmatpush3.bf16.msra.mxu1 %v11824_v15  ;;  %v5142_v51 = vadd.f32 %v11114_v48, %v4971_v41  ;;  %v4969_v35 = vadd.f32 %v4938_v34, %v13706_v9  ;;  %v11827_v34 = vld [vmem:[%s14065_s5 + $0x70] sm:$0xff]  }
 0x279   : > { %v11091_v31 = vpop.f32.mrf.mxu1  ;;  %v13772_v5 = vpop.f32.mrf.mxu0  ;;  %11404 = vmatprep.subr.bf16.mxu1 %v14069_v3  ;;  %11387 = vmatpush3.bf16.msra.mxu0 %v11827_v34 }
 0x27a   : > { %v5140_v55 = vadd.f32 %v5109_v58, %v4969_v35  ;;  %v13775_v12 = vadd.f32 %v11091_v31, %v13713_v37  ;;  %v7787_v37 = vsel %vm12627_vm5, %v7782_v16, %v7786_v11  ;;  %v11828_v58 = vld [vmem:[%s14065_s5 + $0x30] sm:$0xff]   ;;  %11388 = vmatprep.subr.bf16.mxu0 %v14069_v3  ;;  %v11830_v35 = vld [vmem:[%s14065_s5 + $0x28] sm:$0xff]  }
 0x27b   : > { %11377 = vmatmul.mubr.bf16.vlgmr.msra.gmra.mxu1 %v9601_v47  ;;  %v4941_v46 = vpop.f32.mrf.mxu1  ;;  %v13777_v39 = vpop.f32.mrf.mxu0  ;;  %v9603_v38 = vcombine.low %v7777_v54, %v7787_v37  ;;  %v11831_v47 = vld [vmem:[%s14065_s5 + $0x60] sm:$0xff]  }
 0x27c   : > { %11380 = vmatprep.mubr.bf16.mxu1 %v9602_v27  ;;  %v13780_v10 = vadd.f32 %v4941_v46, %v13721_v44  ;;  %11405 = vmatpush3.bf16.msra.mxu1 %v11826_v8  ;;  %v11832_v27 = vld [vmem:[%s14065_s5 + $0x20] sm:$0xff]   ;;  %v11834_v46 = vld [vmem:[%s14065_s5 + $0x18] sm:$0xff]  }
 0x27d   : > { %v11094_v9 = vpop.f32.mrf.mxu1  ;;  %v11118_v4 = vpop.f32.mrf.mxu0  ;;  %11406 = vmatprep.subr.bf16.mxu1 %v14069_v3 }
 0x27e   : > { %v4975_v36 = vadd.f32 %v11094_v9, %v13737_v20 }
 0x27f   : > { %v4954_v32 = vpop.f32.mrf.mxu1  ;;  %v5125_v52 = vpop.f32.mrf.mxu0 }
 0x280   : > { %v5146_v2 = vadd.f32 %v11118_v4, %v4975_v36  ;;  %v4973_v24 = vadd.f32 %v4954_v32, %v13740_v7  ;;  %11407 = vmatpush3.bf16.msra.mxu1 %v11828_v58 }
 0x281   : > { %v11095_v17 = vpop.f32.mrf.mxu1  ;;  %v11119_v42 = vpop.f32.mrf.mxu0  ;;  %11408 = vmatprep.subr.bf16.mxu1 %v14069_v3 }
 0x282   : > { %v5144_v44 = vadd.f32 %v5125_v52, %v4973_v24  ;;  %v4976_v26 = vadd.f32 %v11095_v17, %v13746_v62  ;;  %v11835_v52 = vld [vmem:[%s14065_s5 + $0x50] sm:$0xff]  }
 0x283   : > { %11381 = vmatmul.mubr.bf16.gmra.mxu1 %v9603_v38  ;;  %v4957_v45 = vpop.f32.mrf.mxu1  ;;  %v5128_v40 = vpop.f32.mrf.mxu0 }
 0x284   : > { %v5147_v20 = vadd.f32 %v11119_v42, %v4976_v26  ;;  %v4974_v53 = vadd.f32 %v4957_v45, %v13748_v22  ;;  %11409 = vmatpush3.bf16.msra.mxu1 %v11830_v35  ;;  %v11836_v42 = vld [vmem:[%s14065_s5 + $0x10] sm:$0xff]   ;;  %11420 = vmatprep.mubr.msk.bf16.mxu1 %vm11884_vm6, %v14069_v3 }
 0x285   : > { %11410 = vmatprep.subr.bf16.mxu1 %v14069_v3 }
 0x286   : > { %v5145_v0 = vadd.f32 %v5128_v40, %v4974_v53  ;;  %v11837_v53 = vld [vmem:[%s14065_s5 + $0x48] sm:$0xff]  }
 0x287   : > { %v11838_v40 = vld [vmem:[%s14065_s5 + $0x8] sm:$0xff]  }
 0x288   : > { %11411 = vmatpush3.bf16.msra.mxu1 %v11832_v27 }
 0x289   : > { %11412 = vmatprep.subr.bf16.mxu1 %v14069_v3 }
 0x28c   : > { %11413 = vmatpush3.bf16.msra.mxu1 %v11834_v46 }
 0x28d   : > { %11414 = vmatprep.subr.bf16.mxu1 %v14069_v3 }
 0x290   : > { %11415 = vmatpush3.bf16.msra.mxu1 %v11836_v42 }
 0x291   : > { %11416 = vmatprep.subr.bf16.mxu1 %v14069_v3 }
 0x294   : > { %11417 = vmatpush3.bf16.msra.mxu1 %v11838_v40  ;;  %v5141_v40 = vadd.f32 %v13777_v39, %v13780_v10 }
 0x295   : > { %11418 = vmatprep.subr.bf16.mxu1 %v14069_v3 }
 0x296   : > { %v11138_v61 = vpop.f32.mrf.mxu1  ;;  %v13790_v13 = vpop.f32.mrf.mxu0 }
 0x297   : > { %v13792_v23 = vadd.f32 %v11138_v61, %v5142_v51  ;;  %v11829_v51 = vld [vmem:[%s14065_s5 + $0x68] sm:$0xff]   ;;  %v11840_v61 = vld [vmem:[%s14065_s5] sm:$0xff]  }
 0x298   : > { %v5280_v21 = vpop.f32.mrf.mxu1  ;;  %v13794_v7 = vpop.f32.mrf.mxu0  ;;  %11389 = vmatpush3.bf16.msra.mxu0 %v11829_v51  ;;  %11419 = vmatpush3.bf16.msra.mxu1 %v11840_v61 }
 0x299   : > { %v13796_v28 = vadd.f32 %v5280_v21, %v5140_v55  ;;  %11390 = vmatprep.subr.bf16.mxu0 %v14069_v3  ;;  %v11833_v55 = vld [vmem:[%s14065_s5 + $0x58] sm:$0xff]   ;;  %11444 = vmatprep.subr.bf16.mxu1 %v14069_v3 }
 0x29a   : > { %v13798_v30 = vpop.f32.mrf.mxu1  ;;  %v13800_v62 = vpop.f32.mrf.mxu0 }
 0x29c   : > { %v13802_v15 = vpop.f32.mrf.mxu1  ;;  %v13804_v59 = vpop.f32.mrf.mxu0  ;;  %11391 = vmatpush3.bf16.msra.mxu0 %v11831_v47 }
 0x29d   : > { %11392 = vmatprep.subr.bf16.mxu0 %v14069_v3 }
 0x29e   : > { %v11142_v22 = vpop.f32.mrf.mxu1  ;;  %v11166_v43 = vpop.f32.mrf.mxu0 }
 0x29f   : > { %v5317_v50 = vadd.f32 %v11142_v22, %v5146_v2 }
 0x2a0   : > { %v5296_v63 = vpop.f32.mrf.mxu1  ;;  %v5561_v1 = vpop.f32.mrf.mxu0  ;;  %11393 = vmatpush3.bf16.msra.mxu0 %v11833_v55 }
 0x2a1   : > { %v5582_v6 = vadd.f32 %v11166_v43, %v5317_v50  ;;  %v5315_v49 = vadd.f32 %v5296_v63, %v5144_v44  ;;  %11394 = vmatprep.subr.bf16.mxu0 %v14069_v3 }
 0x2a2   : > { %v11143_v18 = vpop.f32.mrf.mxu1  ;;  %v11167_v25 = vpop.f32.mrf.mxu0 }
 0x2a3   : > { %v5580_v60 = vadd.f32 %v5561_v1, %v5315_v49  ;;  %v5318_v48 = vadd.f32 %v11143_v18, %v5147_v20 }
 0x2a4   : > { %v5299_v56 = vpop.f32.mrf.mxu1  ;;  %v5564_v57 = vpop.f32.mrf.mxu0  ;;  %11395 = vmatpush3.bf16.msra.mxu0 %v11835_v52 }
 0x2a5   : > { %v5583_v33 = vadd.f32 %v11167_v25, %v5318_v48  ;;  %v5316_v14 = vadd.f32 %v5299_v56, %v5145_v0  ;;  %11396 = vmatprep.subr.bf16.mxu0 %v14069_v3  ;;  %v11839_v0 = vld [vmem:[%s14065_s5 + $0x40] sm:$0xff]  }
 0x2a7   : > { %v5581_v41 = vadd.f32 %v5564_v57, %v5316_v14 }
 0x2a8   : > { %11397 = vmatpush3.bf16.msra.mxu0 %v11837_v53 }
 0x2a9   : > { %11398 = vmatprep.subr.bf16.mxu0 %v14069_v3 }
 0x2ac   : > { %11399 = vmatpush3.bf16.msra.mxu0 %v11839_v0  ;;  %v5578_v0 = vadd.f32 %v13790_v13, %v13792_v23 }
 0x2ad   : > { %11424 = vmatprep.subr.bf16.mxu0 %v14069_v3  ;;  %v5312_v3 = vadd.f32 %v13802_v15, %v5141_v40 }
 0x2af   : > { %v5577_v39 = vadd.f32 %v13804_v59, %v5312_v3 }
 0x2b7   : > { %v13838_v31 = vpop.f32.mrf.mxu1  ;;  %v13840_v11 = vpop.f32.mrf.mxu0 }
 0x2b9   : > { %v13846_v19 = vpop.f32.mrf.mxu1  ;;  %v13848_v16 = vpop.f32.mrf.mxu0 }
 0x2bb   : > { %v13854_v9 = vpop.f32.mrf.mxu1  ;;  %v13856_v4 = vpop.f32.mrf.mxu0 }
 0x2bd   : > { %v13859_v36 = vpop.f32.mrf.mxu1  ;;  %v13861_v54 = vpop.f32.mrf.mxu0 }
 0x2bf   : > { %v11190_v37 = vpop.f32.mrf.mxu1  ;;  %v11214_v2 = vpop.f32.mrf.mxu0 }
 0x2c0   : > { %v5844_v32 = vadd.f32 %v11190_v37, %v5582_v6 }
 0x2c1   : > { %v5823_v24 = vpop.f32.mrf.mxu1  ;;  %v6085_v6 = vpop.f32.mrf.mxu0 }
 0x2c2   : > { %v6106_v38 = vadd.f32 %v11214_v2, %v5844_v32  ;;  %v13867_v17 = vadd.f32 %v5823_v24, %v5580_v60 }
 0x2c3   : > { %v11191_v44 = vpop.f32.mrf.mxu1  ;;  %v13900_v49 = vpop.f32.mrf.mxu0 }
 0x2c4   : > { %v13873_v26 = vadd.f32 %v11191_v44, %v5583_v33  ;;  %v5143_v44 = vadd.f32 %v13772_v5, %v13775_v12 }
 0x2c5   : > { %v5826_v45 = vpop.f32.mrf.mxu1  ;;  %v13902_v18 = vpop.f32.mrf.mxu0 }
 0x2c6   : > { %v13876_v20 = vadd.f32 %v5826_v45, %v5581_v41  ;;  %v5314_v61 = vadd.f32 %v13798_v30, %v5143_v44  ;;  %v5839_v30 = vadd.f32 %v13859_v36, %v5577_v39  ;;  %v6107_v36 = vadd.f32 %v13900_v49, %v13873_v26 }
 0x2c8   : > { %v5579_v12 = vadd.f32 %v13800_v62, %v5314_v61  ;;  %v6104_v61 = vadd.f32 %v6085_v6, %v13867_v17 }
 0x2ca   : > { %v5841_v13 = vadd.f32 %v13854_v9, %v5579_v12 }
 0x2cc   : > { %v6103_v44 = vadd.f32 %v13856_v4, %v5841_v13 }
 0x2d8   : > { %v11234_v21 = vpop.f32.mrf.mxu1  ;;  %v11258_v25 = vpop.f32.mrf.mxu0 }
 0x2da   : > { %v6331_v22 = vpop.f32.mrf.mxu1  ;;  %v6593_v60 = vpop.f32.mrf.mxu0 }
 0x2dc   : > { %v11235_v43 = vpop.f32.mrf.mxu1  ;;  %v11259_v56 = vpop.f32.mrf.mxu0 }
 0x2dd   : > { %v6365_v3 = vadd.f32 %v11235_v43, %v6103_v44 }
 0x2de   : > { %v6334_v50 = vpop.f32.mrf.mxu1  ;;  %v6596_v14 = vpop.f32.mrf.mxu0 }
 0x2e0   : > { %v11238_v63 = vpop.f32.mrf.mxu1  ;;  %v13908_v41 = vpop.f32.mrf.mxu0 }
 0x2e1   : > { %v13898_v1 = vadd.f32 %v11238_v63, %v6106_v38  ;;  %v5576_v63 = vadd.f32 %v13794_v7, %v13796_v28 }
 0x2e2   : > { %v6347_v48 = vpop.f32.mrf.mxu1  ;;  %v13910_v8 = vpop.f32.mrf.mxu0 }
 0x2e3   : > { %v6630_v17 = vadd.f32 %v13908_v41, %v13898_v1 }
 0x2e4   : > { %v13904_v33 = vpop.f32.mrf.mxu1  ;;  %v13912_v58 = vpop.f32.mrf.mxu0 }
 0x2e5   : > { %v6369_v43 = vadd.f32 %v13904_v33, %v6107_v36 }
 0x2e6   : > { %v13906_v57 = vpop.f32.mrf.mxu1  ;;  %v13914_v35 = vpop.f32.mrf.mxu0 }
 0x2f9   : > { %v11282_v29 = vpop.f32.mrf.mxu1  ;;  %v11306_v27 = vpop.f32.mrf.mxu0 }
 0x2fb   : > { %v6855_v34 = vpop.f32.mrf.mxu1  ;;  %v7117_v46 = vpop.f32.mrf.mxu0 }
 0x2fd   : > { %v11283_v51 = vpop.f32.mrf.mxu1  ;;  %v11307_v32 = vpop.f32.mrf.mxu0 }
 0x2ff   : > { %v6858_v47 = vpop.f32.mrf.mxu1  ;;  %v7120_v2 = vpop.f32.mrf.mxu0 }
 0x301   : > { %v11286_v55 = vpop.f32.mrf.mxu1  ;;  %v13922_v38 = vpop.f32.mrf.mxu0 }
 0x302   : > { %14076 = vst [vmem:[#allocation4_spill] sm:$0xff] %v13922_v38 }
 0x303   : > { %v13916_v37 = vpop.f32.mrf.mxu1  ;;  %v13926_v45 = vpop.f32.mrf.mxu0 }
 0x304   : > { %14077 = vst [vmem:[#allocation5_spill] sm:$0xff] %v13926_v45  ;;  %v5838_v45 = vadd.f32 %v13846_v19, %v5576_v63  ;;  %v6101_v19 = vadd.f32 %v13861_v54, %v5839_v30  ;;  %v6105_v54 = vadd.f32 %v13902_v18, %v13876_v20 }
 0x305   : > { %v13918_v52 = vpop.f32.mrf.mxu1  ;;  %v13937_v38 = vpop.f32.mrf.mxu0 }
 0x306   : > { %v6100_v28 = vadd.f32 %v13848_v16, %v5838_v45  ;;  %v6363_v9 = vadd.f32 %v6334_v50, %v6101_v19  ;;  %v6627_v16 = vadd.f32 %v11259_v56, %v6365_v3  ;;  %v6367_v26 = vadd.f32 %v13906_v57, %v6105_v54 }
 0x307   : > { %v13920_v24 = vpop.f32.mrf.mxu1  ;;  %v13944_v23 = vpop.f32.mrf.mxu0 }
 0x308   : > { %14075 = vst [vmem:[#allocation3_spill] sm:$0xff] %v13920_v24  ;;  %v5840_v24 = vadd.f32 %v13838_v31, %v5578_v0  ;;  %v6362_v62 = vadd.f32 %v6331_v22, %v6100_v28  ;;  %v6625_v22 = vadd.f32 %v6596_v14, %v6363_v9  ;;  %v6889_v39 = vadd.f32 %v11283_v51, %v6627_v16 }
 0x309   : > { %v6892_v14 = vadd.f32 %v11286_v55, %v6630_v17  ;;  %v6629_v1 = vadd.f32 %v13914_v35, %v6367_v26 }
 0x30a   : > { %v6102_v10 = vadd.f32 %v13840_v11, %v5840_v24  ;;  %v6624_v24 = vadd.f32 %v6593_v60, %v6362_v62 }
 0x30c   : > { %v6364_v15 = vadd.f32 %v11234_v21, %v6102_v10  ;;  %v6886_v45 = vadd.f32 %v6855_v34, %v6624_v24  ;;  %v6366_v21 = vadd.f32 %v6347_v48, %v6104_v61  ;;  %v7151_v48 = vadd.f32 %v11307_v32, %v6889_v39 }
 0x30d   : > { %v6631_v34 = vadd.f32 %v13912_v58, %v6369_v43 }
 0x30e   : > { %v6626_v59 = vadd.f32 %v11258_v25, %v6364_v15  ;;  %v7148_v6 = vadd.f32 %v7117_v46, %v6886_v45  ;;  %v6887_v25 = vadd.f32 %v6858_v47, %v6625_v22  ;;  %v6628_v56 = vadd.f32 %v13910_v8, %v6366_v21  ;;  %v14078_v46 = vld [vmem:[#allocation4_spill] sm:$0xff] }
 0x30f   : > { %v6893_v41 = vadd.f32 %v13918_v52, %v6631_v34  ;;  %v7154_v57 = vadd.f32 %v14078_v46, %v6892_v14  ;;  %v14080_v58 = vld [vmem:[#allocation3_spill] sm:$0xff]  ;;  %v14081_v14 = vmov 0.0   ;;  %v11846_v46 = vld [vmem:[%s14065_s5 + $0xe8] sm:$0xff]  }
 0x310   : > { %v6888_v0 = vadd.f32 %v11282_v29, %v6626_v59  ;;  %v6890_v20 = vadd.f32 %v13916_v37, %v6628_v56  ;;  %v7149_v33 = vadd.f32 %v7120_v2, %v6887_v25  ;;  %v6891_v13 = vadd.f32 %v14080_v58, %v6629_v1  ;;  %v9612_v37 = vld [vmem:[%s14064_s4] ss:$0 sm:$0xff]  ;;  %v11845_v1 = vld [vmem:[%s14065_s5 + $0xa8] sm:$0xff]   ;;  %v11852_v58 = vld [vmem:[%s14065_s5 + $0xd0] sm:$0xff]  }
 0x311   : > { %v7155_v52 = vadd.f32 %v13937_v38, %v6893_v41 }
 0x312   : > { %v7150_v12 = vadd.f32 %v11306_v27, %v6888_v0  ;;  %v7153_v19 = vadd.f32 %v13944_v23, %v6891_v13  ;;  %v11841_v23 = vld [vmem:[%s14065_s5 + $0xb8] sm:$0xff]   ;;  %v11853_v13 = vld [vmem:[%s14065_s5 + $0x88] sm:$0xff]  }
 0x31a   : > { %v11330_v42 = vpop.f32.mrf.mxu1  ;;  %v11354_v31 = vpop.f32.mrf.mxu0 }
 0x31b   : > { %v7412_v60 = vadd.f32 %v11330_v42, %v7150_v12 }
 0x31c   : > { %v7379_v53 = vpop.f32.mrf.mxu1  ;;  %v7641_v11 = vpop.f32.mrf.mxu0 }
 0x31d   : > { %v7410_v29 = vadd.f32 %v7379_v53, %v7148_v6  ;;  %v7674_v51 = vadd.f32 %v11354_v31, %v7412_v60  ;;  %v14079_v53 = vld [vmem:[#allocation5_spill] sm:$0xff]  ;;  %v11842_v6 = vld [vmem:[%s14065_s5 + $0xf8] sm:$0xff]  }
 0x31e   : > { %v11331_v5 = vpop.f32.mrf.mxu1  ;;  %v11355_v4 = vpop.f32.mrf.mxu0  ;;  %v7152_v10 = vadd.f32 %v14079_v53, %v6890_v20  ;;  %v11850_v53 = vld [vmem:[%s14065_s5 + $0xd8] sm:$0xff]  }
 0x31f   : > { %v7413_v27 = vadd.f32 %v11331_v5, %v7151_v48  ;;  %v7672_v42 = vadd.f32 %v7641_v11, %v7410_v29  ;;  %v11843_v48 = vld [vmem:[%s14065_s5 + $0xb0] sm:$0xff]  }
 0x320   : > { %v7382_v7 = vpop.f32.mrf.mxu1  ;;  %v7644_v49 = vpop.f32.mrf.mxu0 }
 0x321   : > { %v7411_v32 = vadd.f32 %v7382_v7, %v7149_v33  ;;  %v7675_v5 = vadd.f32 %v11355_v4, %v7413_v27 }
 0x322   : > { %v11334_v40 = vpop.f32.mrf.mxu1  ;;  %v11358_v47 = vpop.f32.mrf.mxu0 }
 0x323   : > { %v7416_v35 = vadd.f32 %v11334_v40, %v7154_v57  ;;  %v7673_v44 = vadd.f32 %v7644_v49, %v7411_v32  ;;  %v11848_v32 = vld [vmem:[%s14065_s5 + $0xe0] sm:$0xff]  }
 0x324   : > { %v7395_v63 = vpop.f32.mrf.mxu1  ;;  %v7657_v15 = vpop.f32.mrf.mxu0 }
 0x325   : > { %v7414_v30 = vadd.f32 %v7395_v63, %v7152_v10  ;;  %v7678_v11 = vadd.f32 %v11358_v47, %v7416_v35  ;;  %v11851_v10 = vld [vmem:[%s14065_s5 + $0x90] sm:$0xff]  }
 0x326   : > { %v11335_v50 = vpop.f32.mrf.mxu1  ;;  %v11359_v16 = vpop.f32.mrf.mxu0 }
 0x327   : > { %v7417_v59 = vadd.f32 %v11335_v50, %v7155_v52  ;;  %v7676_v61 = vadd.f32 %v7657_v15, %v7414_v30 }
 0x328   : > { %v7398_v18 = vpop.f32.mrf.mxu1  ;;  %v7660_v50 = vpop.f32.mrf.mxu0 }
 0x329   : > { %v7415_v40 = vadd.f32 %v7398_v18, %v7153_v19  ;;  %v7679_v4 = vadd.f32 %v11359_v16, %v7417_v59  ;;  %v11844_v18 = vld [vmem:[%s14065_s5 + $0xf0] sm:$0xff]  }
 0x32b   : > { %v7677_v25 = vadd.f32 %v7660_v50, %v7415_v40 }
 0x33b   : > { %v11378_v8 = vpop.f32.mrf.mxu1 }
 0x33c   : > { %v7936_v55 = vadd.f32 %v11378_v8, %v7674_v51 }
 0x33d   : > { %v7903_v2 = vpop.f32.mrf.mxu1 }
 0x33e   : > { %v7934_v28 = vadd.f32 %v7903_v2, %v7672_v42  ;;  %v7951_v7 = vadd.f32 %v9612_v37, %v7936_v55  ;;  %v11847_v42 = vld [vmem:[%s14065_s5 + $0xa0] sm:$0xff]   ;;  %v11849_v55 = vld [vmem:[%s14065_s5 + $0x98] sm:$0xff]  }
 0x33f   : > { %v11379_v31 = vpop.f32.mrf.mxu1  ;;  %v11855_v2 = vld [vmem:[%s14065_s5 + $0x80] sm:$0xff]  }
 0x340   : > { %v7937_v62 = vadd.f32 %v11379_v31, %v7675_v5  ;;  %v7949_v24 = vadd.f32 %v9612_v37, %v7934_v28  ;;  %v7959_v36 = vmax.f32 %v7951_v7, 0.0  ;;  %v11856_v5 = vld [vmem:[%s14065_s5 + $0xc0] sm:$0xff]  }
 0x341   : > { %v7906_v3 = vpop.f32.mrf.mxu1 }
 0x342   : > { %v7952_v9 = vadd.f32 %v9612_v37, %v7937_v62  ;;  %v7935_v0 = vadd.f32 %v7906_v3, %v7673_v44  ;;  %v7957_v12 = vmax.f32 %v7949_v24, 0.0  ;;  %v9693_v24 = vld [vmem:[%s14066_s6] ss:$0 sm:$0xff] }
 0x343   : > { %v11382_v45 = vpop.f32.mrf.mxu1 }
 0x344   : > { %v7960_v38 = vmax.f32 %v7952_v9, 0.0  ;;  %v7950_v63 = vadd.f32 %v9612_v37, %v7935_v0  ;;  %v7940_v21 = vadd.f32 %v11382_v45, %v7678_v11 }
 0x345   : > { %v7919_v22 = vpop.f32.mrf.mxu1 }
 0x346   : > { %v7966_v39 = vpack.c.bf16 %v7960_v38, %v7959_v36  ;;  %v7958_v54 = vmax.f32 %v7950_v63, 0.0  ;;  %v7938_v43 = vadd.f32 %v7919_v22, %v7676_v61  ;;  %v7955_v56 = vadd.f32 %v9612_v37, %v7940_v21  ;;  %v8407_v36 = vld [vmem:[%s14067_s7] sm:$0xff] }
 0x347   : > { %v11383_v17 = vpop.f32.mrf.mxu1 }
 0x348   : > { %v7965_v60 = vpack.c.bf16 %v7958_v54, %v7957_v12  ;;  %v7941_v26 = vadd.f32 %v11383_v17, %v7679_v4  ;;  %11401 = vmatmul.mubr.bf16.vlgmr.msra.gmra.mxu0 %v7966_v39  ;;  %v7953_v29 = vadd.f32 %v9612_v37, %v7938_v43  ;;  %v7963_v33 = vmax.f32 %v7955_v56, 0.0  ;;  %v8408_v39 = vld [vmem:[%s14067_s7 + $0x8] sm:$0xff] }
 0x349   : > { %11425 = vmatpush3.bf16.msra.mxu0 %v11841_v23  ;;  %v7922_v49 = vpop.f32.mrf.mxu1  ;;  %11440 = vmatprep.mubr.msk.bf16.mxu0 %vm11884_vm6, %v14081_v14 }
 0x34a   : > { %v7956_v34 = vadd.f32 %v9612_v37, %v7941_v26  ;;  %v7939_v20 = vadd.f32 %v7922_v49, %v7677_v25  ;;  %11421 = vmatmul.mubr.bf16.vlgmr.msra.gmra.mxu1 %v7965_v60  ;;  %11426 = vmatprep.subr.bf16.mxu0 %v14081_v14  ;;  %v7961_v41 = vmax.f32 %v7953_v29, 0.0 }
 0x34b   : > { %11445 = vmatpush3.bf16.msra.mxu1 %v11842_v6  ;;  %11460 = vmatprep.mubr.msk.bf16.mxu1 %vm11884_vm6, %v14081_v14 }
 0x34c   : > { %v7964_v51 = vmax.f32 %v7956_v34, 0.0  ;;  %v7954_v27 = vadd.f32 %v9612_v37, %v7939_v20  ;;  %11446 = vmatprep.subr.bf16.mxu1 %v14081_v14  ;;  %v11854_v37 = vld [vmem:[%s14065_s5 + $0xc8] sm:$0xff]  }
 0x34d   : > { %11427 = vmatpush3.bf16.msra.mxu0 %v11843_v48 }
 0x34e   : > { %v7968_v47 = vpack.c.bf16 %v7964_v51, %v7963_v33  ;;  %v7962_v8 = vmax.f32 %v7954_v27, 0.0  ;;  %11428 = vmatprep.subr.bf16.mxu0 %v14081_v14 }
 0x34f   : > { %11447 = vmatpush3.bf16.msra.mxu1 %v11844_v18 }
 0x350   : > { %v7967_v57 = vpack.c.bf16 %v7962_v8, %v7961_v41  ;;  %11448 = vmatprep.subr.bf16.mxu1 %v14081_v14 }
 0x351   : > { %11429 = vmatpush3.bf16.msra.mxu0 %v11845_v1 }
 0x352   : > { %11430 = vmatprep.subr.bf16.mxu0 %v14081_v14 }
 0x353   : > { %11449 = vmatpush3.bf16.msra.mxu1 %v11846_v46 }
 0x354   : > { %11450 = vmatprep.subr.bf16.mxu1 %v14081_v14 }
 0x355   : > { %11431 = vmatpush3.bf16.msra.mxu0 %v11847_v42 }
 0x356   : > { %11432 = vmatprep.subr.bf16.mxu0 %v14081_v14 }
 0x357   : > { %11451 = vmatpush3.bf16.msra.mxu1 %v11848_v32 }
 0x358   : > { %11452 = vmatprep.subr.bf16.mxu1 %v14081_v14 }
 0x359   : > { %11433 = vmatpush3.bf16.msra.mxu0 %v11849_v55 }
 0x35a   : > { %11434 = vmatprep.subr.bf16.mxu0 %v14081_v14 }
 0x35b   : > { %11453 = vmatpush3.bf16.msra.mxu1 %v11850_v53 }
 0x35c   : > { %11454 = vmatprep.subr.bf16.mxu1 %v14081_v14 }
 0x35d   : > { %11435 = vmatpush3.bf16.msra.mxu0 %v11851_v10 }
 0x35e   : > { %11436 = vmatprep.subr.bf16.mxu0 %v14081_v14 }
 0x35f   : > { %11455 = vmatpush3.bf16.msra.mxu1 %v11852_v58 }
 0x360   : > { %11456 = vmatprep.subr.bf16.mxu1 %v14081_v14 }
 0x361   : > { %11437 = vmatpush3.bf16.msra.mxu0 %v11853_v13 }
 0x362   : > { %11438 = vmatprep.subr.bf16.mxu0 %v14081_v14 }
 0x363   : > { %11457 = vmatpush3.bf16.msra.mxu1 %v11854_v37 }
 0x364   : > { %11458 = vmatprep.subr.bf16.mxu1 %v14081_v14 }
 0x365   : > { %11439 = vmatpush3.bf16.msra.mxu0 %v11855_v2 }
 0x367   : > { %11459 = vmatpush3.bf16.msra.mxu1 %v11856_v5 }
 0x368   : > { %11441 = vmatmul.mubr.bf16.vlgmr.msra.gmra.mxu0 %v7967_v57 }
 0x36a   : > { %11461 = vmatmul.mubr.bf16.vlgmr.msra.gmra.mxu1 %v7968_v47 }
 0x408   : > { %v8084_v35 = vpop.f32.mrf.mxu0 }
 0x40a   : > { %v11402_v28 = vpop.f32.mrf.mxu0  ;;  %v8173_v52 = vpop.f32.mrf.mxu1 }
 0x40b   : > { %v8174_v62 = vadd.f32 %v8173_v52, %v8084_v35 }
 0x40c   : > { %v8087_v30 = vpop.f32.mrf.mxu0  ;;  %v11422_v15 = vpop.f32.mrf.mxu1 }
 0x40e   : > { %v11403_v31 = vpop.f32.mrf.mxu0  ;;  %v8176_v44 = vpop.f32.mrf.mxu1 }
 0x40f   : > { %v8177_v9 = vadd.f32 %v8176_v44, %v8087_v30 }
 0x410   : > { %v11423_v7 = vpop.f32.mrf.mxu1 }
 0x428   : > { %v8279_v19 = vpop.f32.mrf.mxu0 }
 0x429   : > { %v8286_v59 = vadd.f32 %v8279_v19, %v8174_v62 }
 0x42a   : > { %v11442_v3 = vpop.f32.mrf.mxu0  ;;  %v8387_v11 = vpop.f32.mrf.mxu1 }
 0x42b   : > { %v8394_v0 = vadd.f32 %v8387_v11, %v8286_v59 }
 0x42c   : > { %v8282_v61 = vpop.f32.mrf.mxu0  ;;  %v11462_v16 = vpop.f32.mrf.mxu1 }
 0x42d   : > { %v8403_v40 = vadd.f32 %v9693_v24, %v8394_v0  ;;  %v8287_v45 = vadd.f32 %v8282_v61, %v8177_v9 }
 0x42e   : > { %v11443_v38 = vpop.f32.mrf.mxu0  ;;  %v8390_v63 = vpop.f32.mrf.mxu1 }
 0x42f   : > { %v8405_v21 = vmul.f32 4.0, %v8403_v40  ;;  %v8395_v4 = vadd.f32 %v8390_v63, %v8287_v45 }
 0x430   : > { %v11463_v22 = vpop.f32.mrf.mxu1 }
 0x431   : > { %v8409_v23 = vadd.f32 %v8407_v36, %v8405_v21  ;;  %v8404_v12 = vadd.f32 %v9693_v24, %v8395_v4 }
 0x433   : > { %8411 = vst [vmem:[%s363_s25] sm:$0xff] %v8409_v23  ;;  %v8406_v54 = vmul.f32 4.0, %v8404_v12 }
 0x435   : > { %v8410_v43 = vadd.f32 %v8408_v39, %v8406_v54 }
 0x437   : > { %8412 = vst [vmem:[%s363_s25 + $0x8] sm:$0xff] %v8410_v43 }
 0x438 PF: > { %s18_s29 = sadd.s32 1, %s11880_s29   ;;  %s14082_s27 = smov %s11876_s28 }
 0x439   : > { %p15_p5 = scmp.ge.s32.totalorder %s18_s29, 4   ;;  %s14083_s28 = smov %s14085_s30 }
 0x43b   :  { %17 = sbr.rel (!%p15_p5) target bundleno = 2 (0x2), region = 134 }

</bundles_post_ra>
